<compile_context>
chip_gen: v7x
topology: tpu7x:2x2x1
jax: 0.10.0
libtpu: 0.0.40
codegen_flags: <defaults>
</compile_context>

<pallas_src>
import functools

import jax
import jax.numpy as jnp
from jax.experimental import pallas as pl
from jax.experimental.pallas import tpu as pltpu

# ----------------------------- model config ---------------------------------
IMAGE_SIZE = 16
PATCH_SIZE = 4
CHANNELS = 3
DIM = 32
DEPTH = 2
HEADS = 4
MLP_DIM = 64
NUM_CLASSES = 10
BATCH = 2

NUM_PATCHES = (IMAGE_SIZE // PATCH_SIZE) ** 2          # 16
PATCH_DIM = CHANNELS * PATCH_SIZE * PATCH_SIZE         # 48
SEQ = NUM_PATCHES + 1                                  # 17 (cls token)
HEAD_DIM = DIM // HEADS                                # 8


# ----------------------------- shared math -----------------------------------
def _layernorm(x, g, b, eps=1e-5):
    mu = jnp.mean(x, axis=-1, keepdims=True)
    var = jnp.mean(jnp.square(x - mu), axis=-1, keepdims=True)
    return (x - mu) * jax.lax.rsqrt(var + eps) * g + b


def _gelu_tanh(x):
    # tanh-approx GELU (EUP tanh); |err| vs exact-erf GELU << 2e-3 tolerance.
    c = 0.7978845608028654  # sqrt(2/pi)
    return 0.5 * x * (1.0 + jnp.tanh(c * (x + 0.044715 * x * x * x)))


# ----------------------------- fused Pallas kernel ---------------------------
def vit_fused_kernel(patches_ref,
                     ln0_g_ref, ln0_b_ref, w_patch_ref, b_patch_ref,
                     ln1_g_ref, ln1_b_ref, cls_ref, pos_ref,
                     wqkv_ref, bqkv_ref, wo_ref, bo_ref,
                     g1_ref, b1_ref, w1_ref, bb1_ref, w2_ref, bb2_ref,
                     g2_ref, b2_ref,
                     head_g_ref, head_b_ref, w_head_ref, b_head_ref,
                     out_ref, *, depth, heads, head_dim):
    # ---------------- patch embedding -----------------------------------
    # patches_ref: (1, S, P); row 0 is a zero pad that will hold the cls token.
    p = patches_ref[0]                                              # (S, P)
    xe = _layernorm(p, ln0_g_ref[...], ln0_b_ref[...])              # LN(patch_dim)
    xe = jnp.dot(xe, w_patch_ref[...],
                 preferred_element_type=jnp.float32) + b_patch_ref[...]
    xe = _layernorm(xe, ln1_g_ref[...], ln1_b_ref[...])             # LN(dim)
    row_ids = jax.lax.broadcasted_iota(jnp.int32, xe.shape, 0)      # (S, D)
    x = jnp.where(row_ids == 0, cls_ref[...], xe) + pos_ref[...]    # (S, D)
    # TODO(synk): nn.Dropout(0.1) layers are eval-mode identities here.

    d = heads * head_dim
    scale = 1.0 / (head_dim ** 0.5)

    # ---------------- transformer encoder (post-norm, eval) -------------
    for l in range(depth):                                          # static unroll
        wqkv = wqkv_ref[l]
        qkv = jnp.dot(x, wqkv, preferred_element_type=jnp.float32) + bqkv_ref[l]
        q = qkv[:, 0 * d:1 * d]
        k = qkv[:, 1 * d:2 * d]
        v = qkv[:, 2 * d:3 * d]
        wo = wo_ref[l]
        attn = jnp.zeros(x.shape, jnp.float32)                      # (S, D) acc
        for h in range(heads):                                      # static unroll
            sl = slice(h * head_dim, (h + 1) * head_dim)
            qh = q[:, sl] * scale                                   # (S, Dh)
            kh = k[:, sl]
            vh = v[:, sl]
            s = jax.lax.dot_general(qh, kh, (((1,), (1,)), ((), ())),
                                    preferred_element_type=jnp.float32)  # (S, S)
            s = s - jnp.max(s, axis=-1, keepdims=True)
            e = jnp.exp(s)
            inv = pl.reciprocal(jnp.sum(e, axis=-1, keepdims=True), approx=True)
            pr = e * inv
            oh = jnp.dot(pr, vh, preferred_element_type=jnp.float32)     # (S, Dh)
            # accumulate directly into the output projection (no lane concat)
            attn = attn + jnp.dot(oh, wo[sl, :],
                                  preferred_element_type=jnp.float32)    # (S, D)
        attn = attn + bo_ref[l]
        x = _layernorm(x + attn, g1_ref[l], b1_ref[l])
        hdn = jnp.dot(x, w1_ref[l], preferred_element_type=jnp.float32) + bb1_ref[l]
        hdn = _gelu_tanh(hdn)
        ff = jnp.dot(hdn, w2_ref[l], preferred_element_type=jnp.float32) + bb2_ref[l]
        x = _layernorm(x + ff, g2_ref[l], b2_ref[l])

    # ---------------- classification head -------------------------------
    cls_tok = x[0:1, :]                                             # (1, D)
    y = _layernorm(cls_tok, head_g_ref[...], head_b_ref[...])
    out_ref[0] = jnp.dot(y, w_head_ref[...],
                         preferred_element_type=jnp.float32) + b_head_ref[...]


# ----------------------------- pallas_call wrapper ----------------------------
def _full(shape):
    # BlockSpec for a replicated (non-batch-tiled) operand (constant index_map).
    return pl.BlockSpec(shape, lambda b, _n=len(shape): (0,) * _n)


def vit_forward_pallas(img, params):
    patches = _extract_patches(img, PATCH_SIZE, PATCH_SIZE)         # (B, N, P)
    B = patches.shape[0]
    # Prepend a zero row that will be replaced by the cls token in-kernel
    # (avoids a sublane concat inside the kernel; 16 vs 17 rows both pad to 24).
    patches_padded = jnp.concatenate(
        [jnp.zeros((B, 1, PATCH_DIM), jnp.float32), patches], axis=1)  # (B, S, P)

    L = params['stacked']
    kern = functools.partial(vit_fused_kernel, depth=DEPTH, heads=HEADS,
                             head_dim=HEAD_DIM)
    out = pl.pallas_call(
        kern,
        out_shape=jax.ShapeDtypeStruct((B, 1, NUM_CLASSES), jnp.float32),
        grid_spec=pl.GridSpec(
            grid=(B,),
            in_specs=[
                pl.BlockSpec((1, SEQ, PATCH_DIM), lambda b: (b, 0, 0)),
                _full((1, PATCH_DIM)), _full((1, PATCH_DIM)),       # ln0 g/b
                _full((PATCH_DIM, DIM)), _full((1, DIM)),           # patch linear
                _full((1, DIM)), _full((1, DIM)),                   # ln1 g/b
                _full((1, DIM)),                                    # cls token
                _full((SEQ, DIM)),                                  # pos embedding
                _full((DEPTH, DIM, 3 * DIM)), _full((DEPTH, 1, 3 * DIM)),  # qkv
                _full((DEPTH, DIM, DIM)), _full((DEPTH, 1, DIM)),          # out proj
                _full((DEPTH, 1, DIM)), _full((DEPTH, 1, DIM)),            # norm1
                _full((DEPTH, DIM, MLP_DIM)), _full((DEPTH, 1, MLP_DIM)),  # linear1
                _full((DEPTH, MLP_DIM, DIM)), _full((DEPTH, 1, DIM)),      # linear2
                _full((DEPTH, 1, DIM)), _full((DEPTH, 1, DIM)),            # norm2
                _full((1, DIM)), _full((1, DIM)),                   # head LN g/b
                _full((DIM, NUM_CLASSES)), _full((1, NUM_CLASSES)), # head linear
            ],
            out_specs=pl.BlockSpec((1, 1, NUM_CLASSES), lambda b: (b, 0, 0)),
        ),
        compiler_params=pltpu.CompilerParams(dimension_semantics=("parallel",)),
    )(patches_padded,
      params['ln0_g'], params['ln0_b'], params['w_patch'], params['b_patch'],
      params['ln1_g'], params['ln1_b'], params['cls'], params['pos'],
      L['wqkv'], L['bqkv'], L['wo'], L['bo'],
      L['g1'], L['b1'], L['w1'], L['bb1'], L['w2'], L['bb2'],
      L['g2'], L['b2'],
      params['head_g'], params['head_b'], params['w_head'], params['b_head'])
    return out[:, 0, :]                                             # (B, num_classes)


# ----------------------------- glue (plain JAX) -------------------------------
def _extract_patches(img, ph, pw):
    # einops: 'b c (h p1) (w p2) -> b (h w) (p1 p2 c)'
    B, C, H, W = img.shape
    h, w = H // ph, W // pw
    x = img.reshape(B, C, h, ph, w, pw)
    x = x.transpose(0, 2, 4, 3, 5, 1)          # b h w p1 p2 c
    return x.reshape(B, h * w, ph * pw * C)


# ----------------------------- plain-JAX reference ---------------------------
def vit_forward_ref(img, params):
    B = img.shape[0]
    D = DIM
    patches = _extract_patches(img, PATCH_SIZE, PATCH_SIZE)
    x = _layernorm(patches, params['ln0_g'], params['ln0_b'])
    x = x @ params['w_patch'] + params['b_patch']
    x = _layernorm(x, params['ln1_g'], params['ln1_b'])
    cls = jnp.broadcast_to(params['cls'][None, :, :], (B, 1, D))
    x = jnp.concatenate([cls, x], axis=1) + params['pos'][None]
    S = x.shape[1]
    for L in params['layers']:
        qkv = x @ L['wqkv'] + L['bqkv']
        q, k, v = jnp.split(qkv, 3, axis=-1)
        sh = lambda t: t.reshape(B, S, HEADS, HEAD_DIM).transpose(0, 2, 1, 3)
        q, k, v = sh(q), sh(k), sh(v)
        s = jnp.einsum('bhsd,bhtd->bhst', q, k) / (HEAD_DIM ** 0.5)
        p = jax.nn.softmax(s, axis=-1)
        o = jnp.einsum('bhst,bhtd->bhsd', p, v).transpose(0, 2, 1, 3).reshape(B, S, D)
        o = o @ L['wo'] + L['bo']
        x = _layernorm(x + o, L['g1'], L['b1'])
        hdn = x @ L['w1'] + L['bb1']
        hdn = 0.5 * hdn * (1.0 + jax.scipy.special.erf(hdn / jnp.sqrt(2.0)))
        ff = hdn @ L['w2'] + L['bb2']
        x = _layernorm(x + ff, L['g2'], L['b2'])
    cls_f = x[:, 0]
    return _layernorm(cls_f, params['head_g'], params['head_b']) @ params['w_head'] + params['b_head']


# ----------------------------- parameter init --------------------------------
def init_params(key):
    keys = iter(jax.random.split(key, 128))

    def nrm(shape, scale=0.02):
        return (scale * jax.random.normal(next(keys), shape)).astype(jnp.float32)

    params = {
        'ln0_g': 1.0 + nrm((1, PATCH_DIM)), 'ln0_b': nrm((1, PATCH_DIM)),
        'w_patch': nrm((PATCH_DIM, DIM)),   'b_patch': nrm((1, DIM)),
        'ln1_g': 1.0 + nrm((1, DIM)),       'ln1_b': nrm((1, DIM)),
        'cls': nrm((1, DIM), 1.0),          'pos': nrm((SEQ, DIM), 1.0),
        'head_g': 1.0 + nrm((1, DIM)),      'head_b': nrm((1, DIM)),
        'w_head': nrm((DIM, NUM_CLASSES)),  'b_head': nrm((1, NUM_CLASSES)),
        'layers': [],
    }
    for _ in range(DEPTH):
        params['layers'].append({
            'wqkv': nrm((DIM, 3 * DIM)), 'bqkv': nrm((1, 3 * DIM)),
            'wo': nrm((DIM, DIM)),       'bo': nrm((1, DIM)),
            'g1': 1.0 + nrm((1, DIM)),   'b1': nrm((1, DIM)),
            'w1': nrm((DIM, MLP_DIM)),   'bb1': nrm((1, MLP_DIM)),
            'w2': nrm((MLP_DIM, DIM)),   'bb2': nrm((1, DIM)),
            'g2': 1.0 + nrm((1, DIM)),   'b2': nrm((1, DIM)),
        })
    # Stack per-layer weights along a leading DEPTH axis for the fused kernel.
    params['stacked'] = {
        k: jnp.stack([Lp[k] for Lp in params['layers']], axis=0)
        for k in params['layers'][0].keys()
    }
    return params


# ----------------------------- main ------------------------------------------
if __name__ == "__main__":
    key = jax.random.PRNGKey(0)
    k_img, k_params = jax.random.split(key)
    img = jax.random.normal(k_img, (BATCH, CHANNELS, IMAGE_SIZE, IMAGE_SIZE),
                            dtype=jnp.float32)
    params = init_params(k_params)

    out = vit_forward_pallas(img, params)
    out = jax.block_until_ready(out)
    assert out.shape == (BATCH, NUM_CLASSES), out.shape

    ref = jax.block_until_ready(vit_forward_ref(img, params))
    assert jnp.all(jnp.isfinite(out))
    assert jnp.allclose(out, ref, atol=2e-3, rtol=2e-3), (
        f"mismatch: max abs diff {jnp.max(jnp.abs(out - ref))}")

    print("KERNEL_OK")
</pallas_src>

<mosaic_0001>
module attributes {stable_mosaic.version = 11 : i64} {
  func.func @vit_fused_kernel(%arg0: i32, %arg1: memref<1x17x48xf32, #tpu.memory_space<vmem>>, %arg2: memref<1x48xf32, #tpu.memory_space<vmem>>, %arg3: memref<1x48xf32, #tpu.memory_space<vmem>>, %arg4: memref<48x32xf32, #tpu.memory_space<vmem>>, %arg5: memref<1x32xf32, #tpu.memory_space<vmem>>, %arg6: memref<1x32xf32, #tpu.memory_space<vmem>>, %arg7: memref<1x32xf32, #tpu.memory_space<vmem>>, %arg8: memref<1x32xf32, #tpu.memory_space<vmem>>, %arg9: memref<17x32xf32, #tpu.memory_space<vmem>>, %arg10: memref<2x32x96xf32, #tpu.memory_space<vmem>>, %arg11: memref<2x1x96xf32, #tpu.memory_space<vmem>>, %arg12: memref<2x32x32xf32, #tpu.memory_space<vmem>>, %arg13: memref<2x1x32xf32, #tpu.memory_space<vmem>>, %arg14: memref<2x1x32xf32, #tpu.memory_space<vmem>>, %arg15: memref<2x1x32xf32, #tpu.memory_space<vmem>>, %arg16: memref<2x32x64xf32, #tpu.memory_space<vmem>>, %arg17: memref<2x1x64xf32, #tpu.memory_space<vmem>>, %arg18: memref<2x64x32xf32, #tpu.memory_space<vmem>>, %arg19: memref<2x1x32xf32, #tpu.memory_space<vmem>>, %arg20: memref<2x1x32xf32, #tpu.memory_space<vmem>>, %arg21: memref<2x1x32xf32, #tpu.memory_space<vmem>>, %arg22: memref<1x32xf32, #tpu.memory_space<vmem>>, %arg23: memref<1x32xf32, #tpu.memory_space<vmem>>, %arg24: memref<32x10xf32, #tpu.memory_space<vmem>>, %arg25: memref<1x10xf32, #tpu.memory_space<vmem>>, %arg26: memref<1x1x10xf32, #tpu.memory_space<vmem>>) attributes {dimension_semantics = [#tpu.dimension_semantics<parallel>], iteration_bounds = array<i64: 2>, scalar_prefetch = 0 : i64, scratch_operands = 0 : i64, tpu.core_type = #tpu.core_type<tc>, window_params = [{transform_indices = @transform_0, window_bounds = array<i64: 1, 17, 48>}, {pipeline_mode = #tpu.pipeline_mode<synchronous>, transform_indices = @transform_1, window_bounds = array<i64: 1, 48>}, {pipeline_mode = #tpu.pipeline_mode<synchronous>, transform_indices = @transform_2, window_bounds = array<i64: 1, 48>}, {pipeline_mode = #tpu.pipeline_mode<synchronous>, transform_indices = @transform_3, window_bounds = array<i64: 48, 32>}, {pipeline_mode = #tpu.pipeline_mode<synchronous>, transform_indices = @transform_4, window_bounds = array<i64: 1, 32>}, {pipeline_mode = #tpu.pipeline_mode<synchronous>, transform_indices = @transform_5, window_bounds = array<i64: 1, 32>}, {pipeline_mode = #tpu.pipeline_mode<synchronous>, transform_indices = @transform_6, window_bounds = array<i64: 1, 32>}, {pipeline_mode = #tpu.pipeline_mode<synchronous>, transform_indices = @transform_7, window_bounds = array<i64: 1, 32>}, {pipeline_mode = #tpu.pipeline_mode<synchronous>, transform_indices = @transform_8, window_bounds = array<i64: 17, 32>}, {pipeline_mode = #tpu.pipeline_mode<synchronous>, transform_indices = @transform_9, window_bounds = array<i64: 2, 32, 96>}, {pipeline_mode = #tpu.pipeline_mode<synchronous>, transform_indices = @transform_10, window_bounds = array<i64: 2, 1, 96>}, {pipeline_mode = #tpu.pipeline_mode<synchronous>, transform_indices = @transform_11, window_bounds = array<i64: 2, 32, 32>}, {pipeline_mode = #tpu.pipeline_mode<synchronous>, transform_indices = @transform_12, window_bounds = array<i64: 2, 1, 32>}, {pipeline_mode = #tpu.pipeline_mode<synchronous>, transform_indices = @transform_13, window_bounds = array<i64: 2, 1, 32>}, {pipeline_mode = #tpu.pipeline_mode<synchronous>, transform_indices = @transform_14, window_bounds = array<i64: 2, 1, 32>}, {pipeline_mode = #tpu.pipeline_mode<synchronous>, transform_indices = @transform_15, window_bounds = array<i64: 2, 32, 64>}, {pipeline_mode = #tpu.pipeline_mode<synchronous>, transform_indices = @transform_16, window_bounds = array<i64: 2, 1, 64>}, {pipeline_mode = #tpu.pipeline_mode<synchronous>, transform_indices = @transform_17, window_bounds = array<i64: 2, 64, 32>}, {pipeline_mode = #tpu.pipeline_mode<synchronous>, transform_indices = @transform_18, window_bounds = array<i64: 2, 1, 32>}, {pipeline_mode = #tpu.pipeline_mode<synchronous>, transform_indices = @transform_19, window_bounds = array<i64: 2, 1, 32>}, {pipeline_mode = #tpu.pipeline_mode<synchronous>, transform_indices = @transform_20, window_bounds = array<i64: 2, 1, 32>}, {pipeline_mode = #tpu.pipeline_mode<synchronous>, transform_indices = @transform_21, window_bounds = array<i64: 1, 32>}, {pipeline_mode = #tpu.pipeline_mode<synchronous>, transform_indices = @transform_22, window_bounds = array<i64: 1, 32>}, {pipeline_mode = #tpu.pipeline_mode<synchronous>, transform_indices = @transform_23, window_bounds = array<i64: 32, 10>}, {pipeline_mode = #tpu.pipeline_mode<synchronous>, transform_indices = @transform_24, window_bounds = array<i64: 1, 10>}, {transform_indices = @transform_25, window_bounds = array<i64: 1, 1, 10>}]} {
    %c0 = arith.constant 0 : index
    %c0_0 = arith.constant 0 : index
    %c0_1 = arith.constant 0 : index
    %0 = vector.load %arg1[%c0, %c0_0, %c0_1] : memref<1x17x48xf32, #tpu.memory_space<vmem>>, vector<1x17x48xf32>
    %1 = vector.shape_cast %0 : vector<1x17x48xf32> to vector<17x48xf32>
    %c0_2 = arith.constant 0 : index
    %c0_3 = arith.constant 0 : index
    %2 = vector.load %arg2[%c0_2, %c0_3] : memref<1x48xf32, #tpu.memory_space<vmem>>, vector<1x48xf32>
    %c0_4 = arith.constant 0 : index
    %c0_5 = arith.constant 0 : index
    %3 = vector.load %arg3[%c0_4, %c0_5] : memref<1x48xf32, #tpu.memory_space<vmem>>, vector<1x48xf32>
    %cst = arith.constant dense<0.000000e+00> : vector<17xf32>
    %4 = vector.multi_reduction <add>, %1, %cst [1] : vector<17x48xf32> to vector<17xf32>
    %5 = vector.shape_cast %4 : vector<17xf32> to vector<17x1xf32>
    %cst_6 = arith.constant 4.800000e+01 : f32
    %6 = vector.broadcast %cst_6 : f32 to vector<17x1xf32>
    %7 = arith.divf %5, %6 : vector<17x1xf32>
    %8 = vector.broadcast %7 : vector<17x1xf32> to vector<17x48xf32>
    %9 = arith.subf %1, %8 : vector<17x48xf32>
    %10 = arith.mulf %9, %9 : vector<17x48xf32>
    %cst_7 = arith.constant dense<0.000000e+00> : vector<17xf32>
    %11 = vector.multi_reduction <add>, %10, %cst_7 [1] : vector<17x48xf32> to vector<17xf32>
    %12 = vector.shape_cast %11 : vector<17xf32> to vector<17x1xf32>
    %cst_8 = arith.constant 4.800000e+01 : f32
    %13 = vector.broadcast %cst_8 : f32 to vector<17x1xf32>
    %14 = arith.divf %12, %13 : vector<17x1xf32>
    %15 = vector.broadcast %7 : vector<17x1xf32> to vector<17x48xf32>
    %16 = arith.subf %1, %15 : vector<17x48xf32>
    %cst_9 = arith.constant 9.99999974E-6 : f32
    %17 = vector.broadcast %cst_9 : f32 to vector<17x1xf32>
    %18 = arith.addf %14, %17 : vector<17x1xf32>
    %19 = math.rsqrt %18 : vector<17x1xf32>
    %20 = vector.broadcast %19 : vector<17x1xf32> to vector<17x48xf32>
    %21 = arith.mulf %16, %20 : vector<17x48xf32>
    %22 = vector.broadcast %2 : vector<1x48xf32> to vector<17x48xf32>
    %23 = arith.mulf %21, %22 : vector<17x48xf32>
    %24 = vector.broadcast %3 : vector<1x48xf32> to vector<17x48xf32>
    %25 = arith.addf %23, %24 : vector<17x48xf32>
    %c0_10 = arith.constant 0 : index
    %c0_11 = arith.constant 0 : index
    %26 = vector.load %arg4[%c0_10, %c0_11] : memref<48x32xf32, #tpu.memory_space<vmem>>, vector<48x32xf32>
    %cst_12 = arith.constant dense<0.000000e+00> : vector<17x32xf32>
    %27 = tpu.matmul %25, %26, %cst_12 {dimension_numbers = #tpu.dot_dimension_numbers<[1], [0], [0], [1], [0, 0, 1, 1], [], []>} : vector<17x48xf32>, vector<48x32xf32>, vector<17x32xf32> -> vector<17x32xf32>
    %c0_13 = arith.constant 0 : index
    %c0_14 = arith.constant 0 : index
    %28 = vector.load %arg5[%c0_13, %c0_14] : memref<1x32xf32, #tpu.memory_space<vmem>>, vector<1x32xf32>
    %29 = vector.broadcast %28 : vector<1x32xf32> to vector<17x32xf32>
    %30 = arith.addf %27, %29 : vector<17x32xf32>
    %c0_15 = arith.constant 0 : index
    %c0_16 = arith.constant 0 : index
    %31 = vector.load %arg6[%c0_15, %c0_16] : memref<1x32xf32, #tpu.memory_space<vmem>>, vector<1x32xf32>
    %c0_17 = arith.constant 0 : index
    %c0_18 = arith.constant 0 : index
    %32 = vector.load %arg7[%c0_17, %c0_18] : memref<1x32xf32, #tpu.memory_space<vmem>>, vector<1x32xf32>
    %cst_19 = arith.constant dense<0.000000e+00> : vector<17xf32>
    %33 = vector.multi_reduction <add>, %30, %cst_19 [1] : vector<17x32xf32> to vector<17xf32>
    %34 = vector.shape_cast %33 : vector<17xf32> to vector<17x1xf32>
    %cst_20 = arith.constant 3.200000e+01 : f32
    %35 = vector.broadcast %cst_20 : f32 to vector<17x1xf32>
    %36 = arith.divf %34, %35 : vector<17x1xf32>
    %37 = vector.broadcast %36 : vector<17x1xf32> to vector<17x32xf32>
    %38 = arith.subf %30, %37 : vector<17x32xf32>
    %39 = arith.mulf %38, %38 : vector<17x32xf32>
    %cst_21 = arith.constant dense<0.000000e+00> : vector<17xf32>
    %40 = vector.multi_reduction <add>, %39, %cst_21 [1] : vector<17x32xf32> to vector<17xf32>
    %41 = vector.shape_cast %40 : vector<17xf32> to vector<17x1xf32>
    %cst_22 = arith.constant 3.200000e+01 : f32
    %42 = vector.broadcast %cst_22 : f32 to vector<17x1xf32>
    %43 = arith.divf %41, %42 : vector<17x1xf32>
    %44 = vector.broadcast %36 : vector<17x1xf32> to vector<17x32xf32>
    %45 = arith.subf %30, %44 : vector<17x32xf32>
    %cst_23 = arith.constant 9.99999974E-6 : f32
    %46 = vector.broadcast %cst_23 : f32 to vector<17x1xf32>
    %47 = arith.addf %43, %46 : vector<17x1xf32>
    %48 = math.rsqrt %47 : vector<17x1xf32>
    %49 = vector.broadcast %48 : vector<17x1xf32> to vector<17x32xf32>
    %50 = arith.mulf %45, %49 : vector<17x32xf32>
    %51 = vector.broadcast %31 : vector<1x32xf32> to vector<17x32xf32>
    %52 = arith.mulf %50, %51 : vector<17x32xf32>
    %53 = vector.broadcast %32 : vector<1x32xf32> to vector<17x32xf32>
    %54 = arith.addf %52, %53 : vector<17x32xf32>
    %55 = tpu.iota {dimensions = array<i32: 0>} : vector<17x32xi32>
    %c0_i32 = arith.constant 0 : i32
    %56 = vector.broadcast %c0_i32 : i32 to vector<17x32xi32>
    %57 = arith.cmpi eq, %55, %56 : vector<17x32xi32>
    %c0_24 = arith.constant 0 : index
    %c0_25 = arith.constant 0 : index
    %58 = vector.load %arg8[%c0_24, %c0_25] : memref<1x32xf32, #tpu.memory_space<vmem>>, vector<1x32xf32>
    %59 = vector.shape_cast %58 : vector<1x32xf32> to vector<1x32xf32>
    %60 = vector.broadcast %59 : vector<1x32xf32> to vector<17x32xf32>
    %61 = arith.select %57, %60, %54 : vector<17x32xi1>, vector<17x32xf32>
    %c0_26 = arith.constant 0 : index
    %c0_27 = arith.constant 0 : index
    %62 = vector.load %arg9[%c0_26, %c0_27] : memref<17x32xf32, #tpu.memory_space<vmem>>, vector<17x32xf32>
    %63 = arith.addf %61, %62 : vector<17x32xf32>
    %c0_28 = arith.constant 0 : index
    %c0_29 = arith.constant 0 : index
    %c0_30 = arith.constant 0 : index
    %64 = vector.load %arg10[%c0_28, %c0_29, %c0_30] : memref<2x32x96xf32, #tpu.memory_space<vmem>>, vector<1x32x96xf32>
    %65 = vector.shape_cast %64 : vector<1x32x96xf32> to vector<32x96xf32>
    %cst_31 = arith.constant dense<0.000000e+00> : vector<17x96xf32>
    %66 = tpu.matmul %63, %65, %cst_31 {dimension_numbers = #tpu.dot_dimension_numbers<[1], [0], [0], [1], [0, 0, 1, 1], [], []>} : vector<17x32xf32>, vector<32x96xf32>, vector<17x96xf32> -> vector<17x96xf32>
    %c0_32 = arith.constant 0 : index
    %c0_33 = arith.constant 0 : index
    %c0_34 = arith.constant 0 : index
    %67 = vector.load %arg11[%c0_32, %c0_33, %c0_34] : memref<2x1x96xf32, #tpu.memory_space<vmem>>, vector<1x1x96xf32>
    %68 = vector.shape_cast %67 : vector<1x1x96xf32> to vector<1x96xf32>
    %69 = vector.broadcast %68 : vector<1x96xf32> to vector<17x96xf32>
    %70 = arith.addf %66, %69 : vector<17x96xf32>
    %71 = vector.extract_strided_slice %70 {offsets = [0, 0], sizes = [17, 32], strides = [1, 1]} : vector<17x96xf32> to vector<17x32xf32>
    %72 = vector.extract_strided_slice %70 {offsets = [0, 32], sizes = [17, 32], strides = [1, 1]} : vector<17x96xf32> to vector<17x32xf32>
    %73 = vector.extract_strided_slice %70 {offsets = [0, 64], sizes = [17, 32], strides = [1, 1]} : vector<17x96xf32> to vector<17x32xf32>
    %c0_35 = arith.constant 0 : index
    %c0_36 = arith.constant 0 : index
    %c0_37 = arith.constant 0 : index
    %74 = vector.load %arg12[%c0_35, %c0_36, %c0_37] : memref<2x32x32xf32, #tpu.memory_space<vmem>>, vector<1x32x32xf32>
    %75 = vector.shape_cast %74 : vector<1x32x32xf32> to vector<32x32xf32>
    %cst_38 = arith.constant 0.000000e+00 : f32
    %76 = vector.broadcast %cst_38 : f32 to vector<17x32xf32>
    %77 = vector.extract_strided_slice %71 {offsets = [0, 0], sizes = [17, 8], strides = [1, 1]} : vector<17x32xf32> to vector<17x8xf32>
    %cst_39 = arith.constant 0.353553385 : f32
    %78 = vector.broadcast %cst_39 : f32 to vector<17x8xf32>
    %79 = arith.mulf %77, %78 : vector<17x8xf32>
    %80 = vector.extract_strided_slice %72 {offsets = [0, 0], sizes = [17, 8], strides = [1, 1]} : vector<17x32xf32> to vector<17x8xf32>
    %81 = vector.extract_strided_slice %73 {offsets = [0, 0], sizes = [17, 8], strides = [1, 1]} : vector<17x32xf32> to vector<17x8xf32>
    %cst_40 = arith.constant dense<0.000000e+00> : vector<17x17xf32>
    %82 = tpu.matmul %79, %80, %cst_40 {dimension_numbers = #tpu.dot_dimension_numbers<[1], [1], [0], [0], [0, 0, 1, 0], [], []>} : vector<17x8xf32>, vector<17x8xf32>, vector<17x17xf32> -> vector<17x17xf32>
    %cst_41 = arith.constant dense<0xFF800000> : vector<17xf32>
    %83 = vector.multi_reduction <maximumf>, %82, %cst_41 [1] : vector<17x17xf32> to vector<17xf32>
    %84 = vector.shape_cast %83 : vector<17xf32> to vector<17x1xf32>
    %85 = vector.broadcast %84 : vector<17x1xf32> to vector<17x17xf32>
    %86 = arith.subf %82, %85 : vector<17x17xf32>
    %87 = math.exp %86 : vector<17x17xf32>
    %cst_42 = arith.constant dense<0.000000e+00> : vector<17xf32>
    %88 = vector.multi_reduction <add>, %87, %cst_42 [1] : vector<17x17xf32> to vector<17xf32>
    %89 = vector.shape_cast %88 : vector<17xf32> to vector<17x1xf32>
    %90 = tpu.reciprocal %89 {approx = true} : vector<17x1xf32> -> vector<17x1xf32>
    %91 = vector.broadcast %90 : vector<17x1xf32> to vector<17x17xf32>
    %92 = arith.mulf %87, %91 : vector<17x17xf32>
    %cst_43 = arith.constant dense<0.000000e+00> : vector<17x8xf32>
    %93 = tpu.matmul %92, %81, %cst_43 {dimension_numbers = #tpu.dot_dimension_numbers<[1], [0], [0], [1], [0, 0, 1, 1], [], []>} : vector<17x17xf32>, vector<17x8xf32>, vector<17x8xf32> -> vector<17x8xf32>
    %94 = vector.extract_strided_slice %75 {offsets = [0, 0], sizes = [8, 32], strides = [1, 1]} : vector<32x32xf32> to vector<8x32xf32>
    %cst_44 = arith.constant dense<0.000000e+00> : vector<17x32xf32>
    %95 = tpu.matmul %93, %94, %cst_44 {dimension_numbers = #tpu.dot_dimension_numbers<[1], [0], [0], [1], [0, 0, 1, 1], [], []>} : vector<17x8xf32>, vector<8x32xf32>, vector<17x32xf32> -> vector<17x32xf32>
    %96 = arith.addf %76, %95 : vector<17x32xf32>
    %97 = vector.extract_strided_slice %71 {offsets = [0, 8], sizes = [17, 8], strides = [1, 1]} : vector<17x32xf32> to vector<17x8xf32>
    %cst_45 = arith.constant 0.353553385 : f32
    %98 = vector.broadcast %cst_45 : f32 to vector<17x8xf32>
    %99 = arith.mulf %97, %98 : vector<17x8xf32>
    %100 = vector.extract_strided_slice %72 {offsets = [0, 8], sizes = [17, 8], strides = [1, 1]} : vector<17x32xf32> to vector<17x8xf32>
    %101 = vector.extract_strided_slice %73 {offsets = [0, 8], sizes = [17, 8], strides = [1, 1]} : vector<17x32xf32> to vector<17x8xf32>
    %cst_46 = arith.constant dense<0.000000e+00> : vector<17x17xf32>
    %102 = tpu.matmul %99, %100, %cst_46 {dimension_numbers = #tpu.dot_dimension_numbers<[1], [1], [0], [0], [0, 0, 1, 0], [], []>} : vector<17x8xf32>, vector<17x8xf32>, vector<17x17xf32> -> vector<17x17xf32>
    %cst_47 = arith.constant dense<0xFF800000> : vector<17xf32>
    %103 = vector.multi_reduction <maximumf>, %102, %cst_47 [1] : vector<17x17xf32> to vector<17xf32>
    %104 = vector.shape_cast %103 : vector<17xf32> to vector<17x1xf32>
    %105 = vector.broadcast %104 : vector<17x1xf32> to vector<17x17xf32>
    %106 = arith.subf %102, %105 : vector<17x17xf32>
    %107 = math.exp %106 : vector<17x17xf32>
    %cst_48 = arith.constant dense<0.000000e+00> : vector<17xf32>
    %108 = vector.multi_reduction <add>, %107, %cst_48 [1] : vector<17x17xf32> to vector<17xf32>
    %109 = vector.shape_cast %108 : vector<17xf32> to vector<17x1xf32>
    %110 = tpu.reciprocal %109 {approx = true} : vector<17x1xf32> -> vector<17x1xf32>
    %111 = vector.broadcast %110 : vector<17x1xf32> to vector<17x17xf32>
    %112 = arith.mulf %107, %111 : vector<17x17xf32>
    %cst_49 = arith.constant dense<0.000000e+00> : vector<17x8xf32>
    %113 = tpu.matmul %112, %101, %cst_49 {dimension_numbers = #tpu.dot_dimension_numbers<[1], [0], [0], [1], [0, 0, 1, 1], [], []>} : vector<17x17xf32>, vector<17x8xf32>, vector<17x8xf32> -> vector<17x8xf32>
    %114 = vector.extract_strided_slice %75 {offsets = [8, 0], sizes = [8, 32], strides = [1, 1]} : vector<32x32xf32> to vector<8x32xf32>
    %cst_50 = arith.constant dense<0.000000e+00> : vector<17x32xf32>
    %115 = tpu.matmul %113, %114, %cst_50 {dimension_numbers = #tpu.dot_dimension_numbers<[1], [0], [0], [1], [0, 0, 1, 1], [], []>} : vector<17x8xf32>, vector<8x32xf32>, vector<17x32xf32> -> vector<17x32xf32>
    %116 = arith.addf %96, %115 : vector<17x32xf32>
    %117 = vector.extract_strided_slice %71 {offsets = [0, 16], sizes = [17, 8], strides = [1, 1]} : vector<17x32xf32> to vector<17x8xf32>
    %cst_51 = arith.constant 0.353553385 : f32
    %118 = vector.broadcast %cst_51 : f32 to vector<17x8xf32>
    %119 = arith.mulf %117, %118 : vector<17x8xf32>
    %120 = vector.extract_strided_slice %72 {offsets = [0, 16], sizes = [17, 8], strides = [1, 1]} : vector<17x32xf32> to vector<17x8xf32>
    %121 = vector.extract_strided_slice %73 {offsets = [0, 16], sizes = [17, 8], strides = [1, 1]} : vector<17x32xf32> to vector<17x8xf32>
    %cst_52 = arith.constant dense<0.000000e+00> : vector<17x17xf32>
    %122 = tpu.matmul %119, %120, %cst_52 {dimension_numbers = #tpu.dot_dimension_numbers<[1], [1], [0], [0], [0, 0, 1, 0], [], []>} : vector<17x8xf32>, vector<17x8xf32>, vector<17x17xf32> -> vector<17x17xf32>
    %cst_53 = arith.constant dense<0xFF800000> : vector<17xf32>
    %123 = vector.multi_reduction <maximumf>, %122, %cst_53 [1] : vector<17x17xf32> to vector<17xf32>
    %124 = vector.shape_cast %123 : vector<17xf32> to vector<17x1xf32>
    %125 = vector.broadcast %124 : vector<17x1xf32> to vector<17x17xf32>
    %126 = arith.subf %122, %125 : vector<17x17xf32>
    %127 = math.exp %126 : vector<17x17xf32>
    %cst_54 = arith.constant dense<0.000000e+00> : vector<17xf32>
    %128 = vector.multi_reduction <add>, %127, %cst_54 [1] : vector<17x17xf32> to vector<17xf32>
    %129 = vector.shape_cast %128 : vector<17xf32> to vector<17x1xf32>
    %130 = tpu.reciprocal %129 {approx = true} : vector<17x1xf32> -> vector<17x1xf32>
    %131 = vector.broadcast %130 : vector<17x1xf32> to vector<17x17xf32>
    %132 = arith.mulf %127, %131 : vector<17x17xf32>
    %cst_55 = arith.constant dense<0.000000e+00> : vector<17x8xf32>
    %133 = tpu.matmul %132, %121, %cst_55 {dimension_numbers = #tpu.dot_dimension_numbers<[1], [0], [0], [1], [0, 0, 1, 1], [], []>} : vector<17x17xf32>, vector<17x8xf32>, vector<17x8xf32> -> vector<17x8xf32>
    %134 = vector.extract_strided_slice %75 {offsets = [16, 0], sizes = [8, 32], strides = [1, 1]} : vector<32x32xf32> to vector<8x32xf32>
    %cst_56 = arith.constant dense<0.000000e+00> : vector<17x32xf32>
    %135 = tpu.matmul %133, %134, %cst_56 {dimension_numbers = #tpu.dot_dimension_numbers<[1], [0], [0], [1], [0, 0, 1, 1], [], []>} : vector<17x8xf32>, vector<8x32xf32>, vector<17x32xf32> -> vector<17x32xf32>
    %136 = arith.addf %116, %135 : vector<17x32xf32>
    %137 = vector.extract_strided_slice %71 {offsets = [0, 24], sizes = [17, 8], strides = [1, 1]} : vector<17x32xf32> to vector<17x8xf32>
    %cst_57 = arith.constant 0.353553385 : f32
    %138 = vector.broadcast %cst_57 : f32 to vector<17x8xf32>
    %139 = arith.mulf %137, %138 : vector<17x8xf32>
    %140 = vector.extract_strided_slice %72 {offsets = [0, 24], sizes = [17, 8], strides = [1, 1]} : vector<17x32xf32> to vector<17x8xf32>
    %141 = vector.extract_strided_slice %73 {offsets = [0, 24], sizes = [17, 8], strides = [1, 1]} : vector<17x32xf32> to vector<17x8xf32>
    %cst_58 = arith.constant dense<0.000000e+00> : vector<17x17xf32>
    %142 = tpu.matmul %139, %140, %cst_58 {dimension_numbers = #tpu.dot_dimension_numbers<[1], [1], [0], [0], [0, 0, 1, 0], [], []>} : vector<17x8xf32>, vector<17x8xf32>, vector<17x17xf32> -> vector<17x17xf32>
    %cst_59 = arith.constant dense<0xFF800000> : vector<17xf32>
    %143 = vector.multi_reduction <maximumf>, %142, %cst_59 [1] : vector<17x17xf32> to vector<17xf32>
    %144 = vector.shape_cast %143 : vector<17xf32> to vector<17x1xf32>
    %145 = vector.broadcast %144 : vector<17x1xf32> to vector<17x17xf32>
    %146 = arith.subf %142, %145 : vector<17x17xf32>
    %147 = math.exp %146 : vector<17x17xf32>
    %cst_60 = arith.constant dense<0.000000e+00> : vector<17xf32>
    %148 = vector.multi_reduction <add>, %147, %cst_60 [1] : vector<17x17xf32> to vector<17xf32>
    %149 = vector.shape_cast %148 : vector<17xf32> to vector<17x1xf32>
    %150 = tpu.reciprocal %149 {approx = true} : vector<17x1xf32> -> vector<17x1xf32>
    %151 = vector.broadcast %150 : vector<17x1xf32> to vector<17x17xf32>
    %152 = arith.mulf %147, %151 : vector<17x17xf32>
    %cst_61 = arith.constant dense<0.000000e+00> : vector<17x8xf32>
    %153 = tpu.matmul %152, %141, %cst_61 {dimension_numbers = #tpu.dot_dimension_numbers<[1], [0], [0], [1], [0, 0, 1, 1], [], []>} : vector<17x17xf32>, vector<17x8xf32>, vector<17x8xf32> -> vector<17x8xf32>
    %154 = vector.extract_strided_slice %75 {offsets = [24, 0], sizes = [8, 32], strides = [1, 1]} : vector<32x32xf32> to vector<8x32xf32>
    %cst_62 = arith.constant dense<0.000000e+00> : vector<17x32xf32>
    %155 = tpu.matmul %153, %154, %cst_62 {dimension_numbers = #tpu.dot_dimension_numbers<[1], [0], [0], [1], [0, 0, 1, 1], [], []>} : vector<17x8xf32>, vector<8x32xf32>, vector<17x32xf32> -> vector<17x32xf32>
    %156 = arith.addf %136, %155 : vector<17x32xf32>
    %c0_63 = arith.constant 0 : index
    %c0_64 = arith.constant 0 : index
    %c0_65 = arith.constant 0 : index
    %157 = vector.load %arg13[%c0_63, %c0_64, %c0_65] : memref<2x1x32xf32, #tpu.memory_space<vmem>>, vector<1x1x32xf32>
    %158 = vector.shape_cast %157 : vector<1x1x32xf32> to vector<1x32xf32>
    %159 = vector.broadcast %158 : vector<1x32xf32> to vector<17x32xf32>
    %160 = arith.addf %156, %159 : vector<17x32xf32>
    %161 = arith.addf %63, %160 : vector<17x32xf32>
    %c0_66 = arith.constant 0 : index
    %c0_67 = arith.constant 0 : index
    %c0_68 = arith.constant 0 : index
    %162 = vector.load %arg14[%c0_66, %c0_67, %c0_68] : memref<2x1x32xf32, #tpu.memory_space<vmem>>, vector<1x1x32xf32>
    %163 = vector.shape_cast %162 : vector<1x1x32xf32> to vector<1x32xf32>
    %c0_69 = arith.constant 0 : index
    %c0_70 = arith.constant 0 : index
    %c0_71 = arith.constant 0 : index
    %164 = vector.load %arg15[%c0_69, %c0_70, %c0_71] : memref<2x1x32xf32, #tpu.memory_space<vmem>>, vector<1x1x32xf32>
    %165 = vector.shape_cast %164 : vector<1x1x32xf32> to vector<1x32xf32>
    %cst_72 = arith.constant dense<0.000000e+00> : vector<17xf32>
    %166 = vector.multi_reduction <add>, %161, %cst_72 [1] : vector<17x32xf32> to vector<17xf32>
    %167 = vector.shape_cast %166 : vector<17xf32> to vector<17x1xf32>
    %cst_73 = arith.constant 3.200000e+01 : f32
    %168 = vector.broadcast %cst_73 : f32 to vector<17x1xf32>
    %169 = arith.divf %167, %168 : vector<17x1xf32>
    %170 = vector.broadcast %169 : vector<17x1xf32> to vector<17x32xf32>
    %171 = arith.subf %161, %170 : vector<17x32xf32>
    %172 = arith.mulf %171, %171 : vector<17x32xf32>
    %cst_74 = arith.constant dense<0.000000e+00> : vector<17xf32>
    %173 = vector.multi_reduction <add>, %172, %cst_74 [1] : vector<17x32xf32> to vector<17xf32>
    %174 = vector.shape_cast %173 : vector<17xf32> to vector<17x1xf32>
    %cst_75 = arith.constant 3.200000e+01 : f32
    %175 = vector.broadcast %cst_75 : f32 to vector<17x1xf32>
    %176 = arith.divf %174, %175 : vector<17x1xf32>
    %177 = vector.broadcast %169 : vector<17x1xf32> to vector<17x32xf32>
    %178 = arith.subf %161, %177 : vector<17x32xf32>
    %cst_76 = arith.constant 9.99999974E-6 : f32
    %179 = vector.broadcast %cst_76 : f32 to vector<17x1xf32>
    %180 = arith.addf %176, %179 : vector<17x1xf32>
    %181 = math.rsqrt %180 : vector<17x1xf32>
    %182 = vector.broadcast %181 : vector<17x1xf32> to vector<17x32xf32>
    %183 = arith.mulf %178, %182 : vector<17x32xf32>
    %184 = vector.broadcast %163 : vector<1x32xf32> to vector<17x32xf32>
    %185 = arith.mulf %183, %184 : vector<17x32xf32>
    %186 = vector.broadcast %165 : vector<1x32xf32> to vector<17x32xf32>
    %187 = arith.addf %185, %186 : vector<17x32xf32>
    %c0_77 = arith.constant 0 : index
    %c0_78 = arith.constant 0 : index
    %c0_79 = arith.constant 0 : index
    %188 = vector.load %arg16[%c0_77, %c0_78, %c0_79] : memref<2x32x64xf32, #tpu.memory_space<vmem>>, vector<1x32x64xf32>
    %189 = vector.shape_cast %188 : vector<1x32x64xf32> to vector<32x64xf32>
    %cst_80 = arith.constant dense<0.000000e+00> : vector<17x64xf32>
    %190 = tpu.matmul %187, %189, %cst_80 {dimension_numbers = #tpu.dot_dimension_numbers<[1], [0], [0], [1], [0, 0, 1, 1], [], []>} : vector<17x32xf32>, vector<32x64xf32>, vector<17x64xf32> -> vector<17x64xf32>
    %c0_81 = arith.constant 0 : index
    %c0_82 = arith.constant 0 : index
    %c0_83 = arith.constant 0 : index
    %191 = vector.load %arg17[%c0_81, %c0_82, %c0_83] : memref<2x1x64xf32, #tpu.memory_space<vmem>>, vector<1x1x64xf32>
    %192 = vector.shape_cast %191 : vector<1x1x64xf32> to vector<1x64xf32>
    %193 = vector.broadcast %192 : vector<1x64xf32> to vector<17x64xf32>
    %194 = arith.addf %190, %193 : vector<17x64xf32>
    %cst_84 = arith.constant 5.000000e-01 : f32
    %195 = vector.broadcast %cst_84 : f32 to vector<17x64xf32>
    %196 = arith.mulf %195, %194 : vector<17x64xf32>
    %cst_85 = arith.constant 4.471500e-02 : f32
    %197 = vector.broadcast %cst_85 : f32 to vector<17x64xf32>
    %198 = arith.mulf %197, %194 : vector<17x64xf32>
    %199 = arith.mulf %198, %194 : vector<17x64xf32>
    %200 = arith.mulf %199, %194 : vector<17x64xf32>
    %201 = arith.addf %194, %200 : vector<17x64xf32>
    %cst_86 = arith.constant 0.797884583 : f32
    %202 = vector.broadcast %cst_86 : f32 to vector<17x64xf32>
    %203 = arith.mulf %202, %201 : vector<17x64xf32>
    %204 = math.tanh %203 : vector<17x64xf32>
    %cst_87 = arith.constant 1.000000e+00 : f32
    %205 = vector.broadcast %cst_87 : f32 to vector<17x64xf32>
    %206 = arith.addf %205, %204 : vector<17x64xf32>
    %207 = arith.mulf %196, %206 : vector<17x64xf32>
    %c0_88 = arith.constant 0 : index
    %c0_89 = arith.constant 0 : index
    %c0_90 = arith.constant 0 : index
    %208 = vector.load %arg18[%c0_88, %c0_89, %c0_90] : memref<2x64x32xf32, #tpu.memory_space<vmem>>, vector<1x64x32xf32>
    %209 = vector.shape_cast %208 : vector<1x64x32xf32> to vector<64x32xf32>
    %cst_91 = arith.constant dense<0.000000e+00> : vector<17x32xf32>
    %210 = tpu.matmul %207, %209, %cst_91 {dimension_numbers = #tpu.dot_dimension_numbers<[1], [0], [0], [1], [0, 0, 1, 1], [], []>} : vector<17x64xf32>, vector<64x32xf32>, vector<17x32xf32> -> vector<17x32xf32>
    %c0_92 = arith.constant 0 : index
    %c0_93 = arith.constant 0 : index
    %c0_94 = arith.constant 0 : index
    %211 = vector.load %arg19[%c0_92, %c0_93, %c0_94] : memref<2x1x32xf32, #tpu.memory_space<vmem>>, vector<1x1x32xf32>
    %212 = vector.shape_cast %211 : vector<1x1x32xf32> to vector<1x32xf32>
    %213 = vector.broadcast %212 : vector<1x32xf32> to vector<17x32xf32>
    %214 = arith.addf %210, %213 : vector<17x32xf32>
    %215 = arith.addf %187, %214 : vector<17x32xf32>
    %c0_95 = arith.constant 0 : index
    %c0_96 = arith.constant 0 : index
    %c0_97 = arith.constant 0 : index
    %216 = vector.load %arg20[%c0_95, %c0_96, %c0_97] : memref<2x1x32xf32, #tpu.memory_space<vmem>>, vector<1x1x32xf32>
    %217 = vector.shape_cast %216 : vector<1x1x32xf32> to vector<1x32xf32>
    %c0_98 = arith.constant 0 : index
    %c0_99 = arith.constant 0 : index
    %c0_100 = arith.constant 0 : index
    %218 = vector.load %arg21[%c0_98, %c0_99, %c0_100] : memref<2x1x32xf32, #tpu.memory_space<vmem>>, vector<1x1x32xf32>
    %219 = vector.shape_cast %218 : vector<1x1x32xf32> to vector<1x32xf32>
    %cst_101 = arith.constant dense<0.000000e+00> : vector<17xf32>
    %220 = vector.multi_reduction <add>, %215, %cst_101 [1] : vector<17x32xf32> to vector<17xf32>
    %221 = vector.shape_cast %220 : vector<17xf32> to vector<17x1xf32>
    %cst_102 = arith.constant 3.200000e+01 : f32
    %222 = vector.broadcast %cst_102 : f32 to vector<17x1xf32>
    %223 = arith.divf %221, %222 : vector<17x1xf32>
    %224 = vector.broadcast %223 : vector<17x1xf32> to vector<17x32xf32>
    %225 = arith.subf %215, %224 : vector<17x32xf32>
    %226 = arith.mulf %225, %225 : vector<17x32xf32>
    %cst_103 = arith.constant dense<0.000000e+00> : vector<17xf32>
    %227 = vector.multi_reduction <add>, %226, %cst_103 [1] : vector<17x32xf32> to vector<17xf32>
    %228 = vector.shape_cast %227 : vector<17xf32> to vector<17x1xf32>
    %cst_104 = arith.constant 3.200000e+01 : f32
    %229 = vector.broadcast %cst_104 : f32 to vector<17x1xf32>
    %230 = arith.divf %228, %229 : vector<17x1xf32>
    %231 = vector.broadcast %223 : vector<17x1xf32> to vector<17x32xf32>
    %232 = arith.subf %215, %231 : vector<17x32xf32>
    %cst_105 = arith.constant 9.99999974E-6 : f32
    %233 = vector.broadcast %cst_105 : f32 to vector<17x1xf32>
    %234 = arith.addf %230, %233 : vector<17x1xf32>
    %235 = math.rsqrt %234 : vector<17x1xf32>
    %236 = vector.broadcast %235 : vector<17x1xf32> to vector<17x32xf32>
    %237 = arith.mulf %232, %236 : vector<17x32xf32>
    %238 = vector.broadcast %217 : vector<1x32xf32> to vector<17x32xf32>
    %239 = arith.mulf %237, %238 : vector<17x32xf32>
    %240 = vector.broadcast %219 : vector<1x32xf32> to vector<17x32xf32>
    %241 = arith.addf %239, %240 : vector<17x32xf32>
    %c1 = arith.constant 1 : index
    %c0_106 = arith.constant 0 : index
    %c0_107 = arith.constant 0 : index
    %242 = vector.load %arg10[%c1, %c0_106, %c0_107] : memref<2x32x96xf32, #tpu.memory_space<vmem>>, vector<1x32x96xf32>
    %243 = vector.shape_cast %242 : vector<1x32x96xf32> to vector<32x96xf32>
    %cst_108 = arith.constant dense<0.000000e+00> : vector<17x96xf32>
    %244 = tpu.matmul %241, %243, %cst_108 {dimension_numbers = #tpu.dot_dimension_numbers<[1], [0], [0], [1], [0, 0, 1, 1], [], []>} : vector<17x32xf32>, vector<32x96xf32>, vector<17x96xf32> -> vector<17x96xf32>
    %c1_109 = arith.constant 1 : index
    %c0_110 = arith.constant 0 : index
    %c0_111 = arith.constant 0 : index
    %245 = vector.load %arg11[%c1_109, %c0_110, %c0_111] : memref<2x1x96xf32, #tpu.memory_space<vmem>>, vector<1x1x96xf32>
    %246 = vector.shape_cast %245 : vector<1x1x96xf32> to vector<1x96xf32>
    %247 = vector.broadcast %246 : vector<1x96xf32> to vector<17x96xf32>
    %248 = arith.addf %244, %247 : vector<17x96xf32>
    %249 = vector.extract_strided_slice %248 {offsets = [0, 0], sizes = [17, 32], strides = [1, 1]} : vector<17x96xf32> to vector<17x32xf32>
    %250 = vector.extract_strided_slice %248 {offsets = [0, 32], sizes = [17, 32], strides = [1, 1]} : vector<17x96xf32> to vector<17x32xf32>
    %251 = vector.extract_strided_slice %248 {offsets = [0, 64], sizes = [17, 32], strides = [1, 1]} : vector<17x96xf32> to vector<17x32xf32>
    %c1_112 = arith.constant 1 : index
    %c0_113 = arith.constant 0 : index
    %c0_114 = arith.constant 0 : index
    %252 = vector.load %arg12[%c1_112, %c0_113, %c0_114] : memref<2x32x32xf32, #tpu.memory_space<vmem>>, vector<1x32x32xf32>
    %253 = vector.shape_cast %252 : vector<1x32x32xf32> to vector<32x32xf32>
    %cst_115 = arith.constant 0.000000e+00 : f32
    %254 = vector.broadcast %cst_115 : f32 to vector<17x32xf32>
    %255 = vector.extract_strided_slice %249 {offsets = [0, 0], sizes = [17, 8], strides = [1, 1]} : vector<17x32xf32> to vector<17x8xf32>
    %cst_116 = arith.constant 0.353553385 : f32
    %256 = vector.broadcast %cst_116 : f32 to vector<17x8xf32>
    %257 = arith.mulf %255, %256 : vector<17x8xf32>
    %258 = vector.extract_strided_slice %250 {offsets = [0, 0], sizes = [17, 8], strides = [1, 1]} : vector<17x32xf32> to vector<17x8xf32>
    %259 = vector.extract_strided_slice %251 {offsets = [0, 0], sizes = [17, 8], strides = [1, 1]} : vector<17x32xf32> to vector<17x8xf32>
    %cst_117 = arith.constant dense<0.000000e+00> : vector<17x17xf32>
    %260 = tpu.matmul %257, %258, %cst_117 {dimension_numbers = #tpu.dot_dimension_numbers<[1], [1], [0], [0], [0, 0, 1, 0], [], []>} : vector<17x8xf32>, vector<17x8xf32>, vector<17x17xf32> -> vector<17x17xf32>
    %cst_118 = arith.constant dense<0xFF800000> : vector<17xf32>
    %261 = vector.multi_reduction <maximumf>, %260, %cst_118 [1] : vector<17x17xf32> to vector<17xf32>
    %262 = vector.shape_cast %261 : vector<17xf32> to vector<17x1xf32>
    %263 = vector.broadcast %262 : vector<17x1xf32> to vector<17x17xf32>
    %264 = arith.subf %260, %263 : vector<17x17xf32>
    %265 = math.exp %264 : vector<17x17xf32>
    %cst_119 = arith.constant dense<0.000000e+00> : vector<17xf32>
    %266 = vector.multi_reduction <add>, %265, %cst_119 [1] : vector<17x17xf32> to vector<17xf32>
    %267 = vector.shape_cast %266 : vector<17xf32> to vector<17x1xf32>
    %268 = tpu.reciprocal %267 {approx = true} : vector<17x1xf32> -> vector<17x1xf32>
    %269 = vector.broadcast %268 : vector<17x1xf32> to vector<17x17xf32>
    %270 = arith.mulf %265, %269 : vector<17x17xf32>
    %cst_120 = arith.constant dense<0.000000e+00> : vector<17x8xf32>
    %271 = tpu.matmul %270, %259, %cst_120 {dimension_numbers = #tpu.dot_dimension_numbers<[1], [0], [0], [1], [0, 0, 1, 1], [], []>} : vector<17x17xf32>, vector<17x8xf32>, vector<17x8xf32> -> vector<17x8xf32>
    %272 = vector.extract_strided_slice %253 {offsets = [0, 0], sizes = [8, 32], strides = [1, 1]} : vector<32x32xf32> to vector<8x32xf32>
    %cst_121 = arith.constant dense<0.000000e+00> : vector<17x32xf32>
    %273 = tpu.matmul %271, %272, %cst_121 {dimension_numbers = #tpu.dot_dimension_numbers<[1], [0], [0], [1], [0, 0, 1, 1], [], []>} : vector<17x8xf32>, vector<8x32xf32>, vector<17x32xf32> -> vector<17x32xf32>
    %274 = arith.addf %254, %273 : vector<17x32xf32>
    %275 = vector.extract_strided_slice %249 {offsets = [0, 8], sizes = [17, 8], strides = [1, 1]} : vector<17x32xf32> to vector<17x8xf32>
    %cst_122 = arith.constant 0.353553385 : f32
    %276 = vector.broadcast %cst_122 : f32 to vector<17x8xf32>
    %277 = arith.mulf %275, %276 : vector<17x8xf32>
    %278 = vector.extract_strided_slice %250 {offsets = [0, 8], sizes = [17, 8], strides = [1, 1]} : vector<17x32xf32> to vector<17x8xf32>
    %279 = vector.extract_strided_slice %251 {offsets = [0, 8], sizes = [17, 8], strides = [1, 1]} : vector<17x32xf32> to vector<17x8xf32>
    %cst_123 = arith.constant dense<0.000000e+00> : vector<17x17xf32>
    %280 = tpu.matmul %277, %278, %cst_123 {dimension_numbers = #tpu.dot_dimension_numbers<[1], [1], [0], [0], [0, 0, 1, 0], [], []>} : vector<17x8xf32>, vector<17x8xf32>, vector<17x17xf32> -> vector<17x17xf32>
    %cst_124 = arith.constant dense<0xFF800000> : vector<17xf32>
    %281 = vector.multi_reduction <maximumf>, %280, %cst_124 [1] : vector<17x17xf32> to vector<17xf32>
    %282 = vector.shape_cast %281 : vector<17xf32> to vector<17x1xf32>
    %283 = vector.broadcast %282 : vector<17x1xf32> to vector<17x17xf32>
    %284 = arith.subf %280, %283 : vector<17x17xf32>
    %285 = math.exp %284 : vector<17x17xf32>
    %cst_125 = arith.constant dense<0.000000e+00> : vector<17xf32>
    %286 = vector.multi_reduction <add>, %285, %cst_125 [1] : vector<17x17xf32> to vector<17xf32>
    %287 = vector.shape_cast %286 : vector<17xf32> to vector<17x1xf32>
    %288 = tpu.reciprocal %287 {approx = true} : vector<17x1xf32> -> vector<17x1xf32>
    %289 = vector.broadcast %288 : vector<17x1xf32> to vector<17x17xf32>
    %290 = arith.mulf %285, %289 : vector<17x17xf32>
    %cst_126 = arith.constant dense<0.000000e+00> : vector<17x8xf32>
    %291 = tpu.matmul %290, %279, %cst_126 {dimension_numbers = #tpu.dot_dimension_numbers<[1], [0], [0], [1], [0, 0, 1, 1], [], []>} : vector<17x17xf32>, vector<17x8xf32>, vector<17x8xf32> -> vector<17x8xf32>
    %292 = vector.extract_strided_slice %253 {offsets = [8, 0], sizes = [8, 32], strides = [1, 1]} : vector<32x32xf32> to vector<8x32xf32>
    %cst_127 = arith.constant dense<0.000000e+00> : vector<17x32xf32>
    %293 = tpu.matmul %291, %292, %cst_127 {dimension_numbers = #tpu.dot_dimension_numbers<[1], [0], [0], [1], [0, 0, 1, 1], [], []>} : vector<17x8xf32>, vector<8x32xf32>, vector<17x32xf32> -> vector<17x32xf32>
    %294 = arith.addf %274, %293 : vector<17x32xf32>
    %295 = vector.extract_strided_slice %249 {offsets = [0, 16], sizes = [17, 8], strides = [1, 1]} : vector<17x32xf32> to vector<17x8xf32>
    %cst_128 = arith.constant 0.353553385 : f32
    %296 = vector.broadcast %cst_128 : f32 to vector<17x8xf32>
    %297 = arith.mulf %295, %296 : vector<17x8xf32>
    %298 = vector.extract_strided_slice %250 {offsets = [0, 16], sizes = [17, 8], strides = [1, 1]} : vector<17x32xf32> to vector<17x8xf32>
    %299 = vector.extract_strided_slice %251 {offsets = [0, 16], sizes = [17, 8], strides = [1, 1]} : vector<17x32xf32> to vector<17x8xf32>
    %cst_129 = arith.constant dense<0.000000e+00> : vector<17x17xf32>
    %300 = tpu.matmul %297, %298, %cst_129 {dimension_numbers = #tpu.dot_dimension_numbers<[1], [1], [0], [0], [0, 0, 1, 0], [], []>} : vector<17x8xf32>, vector<17x8xf32>, vector<17x17xf32> -> vector<17x17xf32>
    %cst_130 = arith.constant dense<0xFF800000> : vector<17xf32>
    %301 = vector.multi_reduction <maximumf>, %300, %cst_130 [1] : vector<17x17xf32> to vector<17xf32>
    %302 = vector.shape_cast %301 : vector<17xf32> to vector<17x1xf32>
    %303 = vector.broadcast %302 : vector<17x1xf32> to vector<17x17xf32>
    %304 = arith.subf %300, %303 : vector<17x17xf32>
    %305 = math.exp %304 : vector<17x17xf32>
    %cst_131 = arith.constant dense<0.000000e+00> : vector<17xf32>
    %306 = vector.multi_reduction <add>, %305, %cst_131 [1] : vector<17x17xf32> to vector<17xf32>
    %307 = vector.shape_cast %306 : vector<17xf32> to vector<17x1xf32>
    %308 = tpu.reciprocal %307 {approx = true} : vector<17x1xf32> -> vector<17x1xf32>
    %309 = vector.broadcast %308 : vector<17x1xf32> to vector<17x17xf32>
    %310 = arith.mulf %305, %309 : vector<17x17xf32>
    %cst_132 = arith.constant dense<0.000000e+00> : vector<17x8xf32>
    %311 = tpu.matmul %310, %299, %cst_132 {dimension_numbers = #tpu.dot_dimension_numbers<[1], [0], [0], [1], [0, 0, 1, 1], [], []>} : vector<17x17xf32>, vector<17x8xf32>, vector<17x8xf32> -> vector<17x8xf32>
    %312 = vector.extract_strided_slice %253 {offsets = [16, 0], sizes = [8, 32], strides = [1, 1]} : vector<32x32xf32> to vector<8x32xf32>
    %cst_133 = arith.constant dense<0.000000e+00> : vector<17x32xf32>
    %313 = tpu.matmul %311, %312, %cst_133 {dimension_numbers = #tpu.dot_dimension_numbers<[1], [0], [0], [1], [0, 0, 1, 1], [], []>} : vector<17x8xf32>, vector<8x32xf32>, vector<17x32xf32> -> vector<17x32xf32>
    %314 = arith.addf %294, %313 : vector<17x32xf32>
    %315 = vector.extract_strided_slice %249 {offsets = [0, 24], sizes = [17, 8], strides = [1, 1]} : vector<17x32xf32> to vector<17x8xf32>
    %cst_134 = arith.constant 0.353553385 : f32
    %316 = vector.broadcast %cst_134 : f32 to vector<17x8xf32>
    %317 = arith.mulf %315, %316 : vector<17x8xf32>
    %318 = vector.extract_strided_slice %250 {offsets = [0, 24], sizes = [17, 8], strides = [1, 1]} : vector<17x32xf32> to vector<17x8xf32>
    %319 = vector.extract_strided_slice %251 {offsets = [0, 24], sizes = [17, 8], strides = [1, 1]} : vector<17x32xf32> to vector<17x8xf32>
    %cst_135 = arith.constant dense<0.000000e+00> : vector<17x17xf32>
    %320 = tpu.matmul %317, %318, %cst_135 {dimension_numbers = #tpu.dot_dimension_numbers<[1], [1], [0], [0], [0, 0, 1, 0], [], []>} : vector<17x8xf32>, vector<17x8xf32>, vector<17x17xf32> -> vector<17x17xf32>
    %cst_136 = arith.constant dense<0xFF800000> : vector<17xf32>
    %321 = vector.multi_reduction <maximumf>, %320, %cst_136 [1] : vector<17x17xf32> to vector<17xf32>
    %322 = vector.shape_cast %321 : vector<17xf32> to vector<17x1xf32>
    %323 = vector.broadcast %322 : vector<17x1xf32> to vector<17x17xf32>
    %324 = arith.subf %320, %323 : vector<17x17xf32>
    %325 = math.exp %324 : vector<17x17xf32>
    %cst_137 = arith.constant dense<0.000000e+00> : vector<17xf32>
    %326 = vector.multi_reduction <add>, %325, %cst_137 [1] : vector<17x17xf32> to vector<17xf32>
    %327 = vector.shape_cast %326 : vector<17xf32> to vector<17x1xf32>
    %328 = tpu.reciprocal %327 {approx = true} : vector<17x1xf32> -> vector<17x1xf32>
    %329 = vector.broadcast %328 : vector<17x1xf32> to vector<17x17xf32>
    %330 = arith.mulf %325, %329 : vector<17x17xf32>
    %cst_138 = arith.constant dense<0.000000e+00> : vector<17x8xf32>
    %331 = tpu.matmul %330, %319, %cst_138 {dimension_numbers = #tpu.dot_dimension_numbers<[1], [0], [0], [1], [0, 0, 1, 1], [], []>} : vector<17x17xf32>, vector<17x8xf32>, vector<17x8xf32> -> vector<17x8xf32>
    %332 = vector.extract_strided_slice %253 {offsets = [24, 0], sizes = [8, 32], strides = [1, 1]} : vector<32x32xf32> to vector<8x32xf32>
    %cst_139 = arith.constant dense<0.000000e+00> : vector<17x32xf32>
    %333 = tpu.matmul %331, %332, %cst_139 {dimension_numbers = #tpu.dot_dimension_numbers<[1], [0], [0], [1], [0, 0, 1, 1], [], []>} : vector<17x8xf32>, vector<8x32xf32>, vector<17x32xf32> -> vector<17x32xf32>
    %334 = arith.addf %314, %333 : vector<17x32xf32>
    %c1_140 = arith.constant 1 : index
    %c0_141 = arith.constant 0 : index
    %c0_142 = arith.constant 0 : index
    %335 = vector.load %arg13[%c1_140, %c0_141, %c0_142] : memref<2x1x32xf32, #tpu.memory_space<vmem>>, vector<1x1x32xf32>
    %336 = vector.shape_cast %335 : vector<1x1x32xf32> to vector<1x32xf32>
    %337 = vector.broadcast %336 : vector<1x32xf32> to vector<17x32xf32>
    %338 = arith.addf %334, %337 : vector<17x32xf32>
    %339 = arith.addf %241, %338 : vector<17x32xf32>
    %c1_143 = arith.constant 1 : index
    %c0_144 = arith.constant 0 : index
    %c0_145 = arith.constant 0 : index
    %340 = vector.load %arg14[%c1_143, %c0_144, %c0_145] : memref<2x1x32xf32, #tpu.memory_space<vmem>>, vector<1x1x32xf32>
    %341 = vector.shape_cast %340 : vector<1x1x32xf32> to vector<1x32xf32>
    %c1_146 = arith.constant 1 : index
    %c0_147 = arith.constant 0 : index
    %c0_148 = arith.constant 0 : index
    %342 = vector.load %arg15[%c1_146, %c0_147, %c0_148] : memref<2x1x32xf32, #tpu.memory_space<vmem>>, vector<1x1x32xf32>
    %343 = vector.shape_cast %342 : vector<1x1x32xf32> to vector<1x32xf32>
    %cst_149 = arith.constant dense<0.000000e+00> : vector<17xf32>
    %344 = vector.multi_reduction <add>, %339, %cst_149 [1] : vector<17x32xf32> to vector<17xf32>
    %345 = vector.shape_cast %344 : vector<17xf32> to vector<17x1xf32>
    %cst_150 = arith.constant 3.200000e+01 : f32
    %346 = vector.broadcast %cst_150 : f32 to vector<17x1xf32>
    %347 = arith.divf %345, %346 : vector<17x1xf32>
    %348 = vector.broadcast %347 : vector<17x1xf32> to vector<17x32xf32>
    %349 = arith.subf %339, %348 : vector<17x32xf32>
    %350 = arith.mulf %349, %349 : vector<17x32xf32>
    %cst_151 = arith.constant dense<0.000000e+00> : vector<17xf32>
    %351 = vector.multi_reduction <add>, %350, %cst_151 [1] : vector<17x32xf32> to vector<17xf32>
    %352 = vector.shape_cast %351 : vector<17xf32> to vector<17x1xf32>
    %cst_152 = arith.constant 3.200000e+01 : f32
    %353 = vector.broadcast %cst_152 : f32 to vector<17x1xf32>
    %354 = arith.divf %352, %353 : vector<17x1xf32>
    %355 = vector.broadcast %347 : vector<17x1xf32> to vector<17x32xf32>
    %356 = arith.subf %339, %355 : vector<17x32xf32>
    %cst_153 = arith.constant 9.99999974E-6 : f32
    %357 = vector.broadcast %cst_153 : f32 to vector<17x1xf32>
    %358 = arith.addf %354, %357 : vector<17x1xf32>
    %359 = math.rsqrt %358 : vector<17x1xf32>
    %360 = vector.broadcast %359 : vector<17x1xf32> to vector<17x32xf32>
    %361 = arith.mulf %356, %360 : vector<17x32xf32>
    %362 = vector.broadcast %341 : vector<1x32xf32> to vector<17x32xf32>
    %363 = arith.mulf %361, %362 : vector<17x32xf32>
    %364 = vector.broadcast %343 : vector<1x32xf32> to vector<17x32xf32>
    %365 = arith.addf %363, %364 : vector<17x32xf32>
    %c1_154 = arith.constant 1 : index
    %c0_155 = arith.constant 0 : index
    %c0_156 = arith.constant 0 : index
    %366 = vector.load %arg16[%c1_154, %c0_155, %c0_156] : memref<2x32x64xf32, #tpu.memory_space<vmem>>, vector<1x32x64xf32>
    %367 = vector.shape_cast %366 : vector<1x32x64xf32> to vector<32x64xf32>
    %cst_157 = arith.constant dense<0.000000e+00> : vector<17x64xf32>
    %368 = tpu.matmul %365, %367, %cst_157 {dimension_numbers = #tpu.dot_dimension_numbers<[1], [0], [0], [1], [0, 0, 1, 1], [], []>} : vector<17x32xf32>, vector<32x64xf32>, vector<17x64xf32> -> vector<17x64xf32>
    %c1_158 = arith.constant 1 : index
    %c0_159 = arith.constant 0 : index
    %c0_160 = arith.constant 0 : index
    %369 = vector.load %arg17[%c1_158, %c0_159, %c0_160] : memref<2x1x64xf32, #tpu.memory_space<vmem>>, vector<1x1x64xf32>
    %370 = vector.shape_cast %369 : vector<1x1x64xf32> to vector<1x64xf32>
    %371 = vector.broadcast %370 : vector<1x64xf32> to vector<17x64xf32>
    %372 = arith.addf %368, %371 : vector<17x64xf32>
    %cst_161 = arith.constant 5.000000e-01 : f32
    %373 = vector.broadcast %cst_161 : f32 to vector<17x64xf32>
    %374 = arith.mulf %373, %372 : vector<17x64xf32>
    %cst_162 = arith.constant 4.471500e-02 : f32
    %375 = vector.broadcast %cst_162 : f32 to vector<17x64xf32>
    %376 = arith.mulf %375, %372 : vector<17x64xf32>
    %377 = arith.mulf %376, %372 : vector<17x64xf32>
    %378 = arith.mulf %377, %372 : vector<17x64xf32>
    %379 = arith.addf %372, %378 : vector<17x64xf32>
    %cst_163 = arith.constant 0.797884583 : f32
    %380 = vector.broadcast %cst_163 : f32 to vector<17x64xf32>
    %381 = arith.mulf %380, %379 : vector<17x64xf32>
    %382 = math.tanh %381 : vector<17x64xf32>
    %cst_164 = arith.constant 1.000000e+00 : f32
    %383 = vector.broadcast %cst_164 : f32 to vector<17x64xf32>
    %384 = arith.addf %383, %382 : vector<17x64xf32>
    %385 = arith.mulf %374, %384 : vector<17x64xf32>
    %c1_165 = arith.constant 1 : index
    %c0_166 = arith.constant 0 : index
    %c0_167 = arith.constant 0 : index
    %386 = vector.load %arg18[%c1_165, %c0_166, %c0_167] : memref<2x64x32xf32, #tpu.memory_space<vmem>>, vector<1x64x32xf32>
    %387 = vector.shape_cast %386 : vector<1x64x32xf32> to vector<64x32xf32>
    %cst_168 = arith.constant dense<0.000000e+00> : vector<17x32xf32>
    %388 = tpu.matmul %385, %387, %cst_168 {dimension_numbers = #tpu.dot_dimension_numbers<[1], [0], [0], [1], [0, 0, 1, 1], [], []>} : vector<17x64xf32>, vector<64x32xf32>, vector<17x32xf32> -> vector<17x32xf32>
    %c1_169 = arith.constant 1 : index
    %c0_170 = arith.constant 0 : index
    %c0_171 = arith.constant 0 : index
    %389 = vector.load %arg19[%c1_169, %c0_170, %c0_171] : memref<2x1x32xf32, #tpu.memory_space<vmem>>, vector<1x1x32xf32>
    %390 = vector.shape_cast %389 : vector<1x1x32xf32> to vector<1x32xf32>
    %391 = vector.broadcast %390 : vector<1x32xf32> to vector<17x32xf32>
    %392 = arith.addf %388, %391 : vector<17x32xf32>
    %393 = arith.addf %365, %392 : vector<17x32xf32>
    %c1_172 = arith.constant 1 : index
    %c0_173 = arith.constant 0 : index
    %c0_174 = arith.constant 0 : index
    %394 = vector.load %arg20[%c1_172, %c0_173, %c0_174] : memref<2x1x32xf32, #tpu.memory_space<vmem>>, vector<1x1x32xf32>
    %395 = vector.shape_cast %394 : vector<1x1x32xf32> to vector<1x32xf32>
    %c1_175 = arith.constant 1 : index
    %c0_176 = arith.constant 0 : index
    %c0_177 = arith.constant 0 : index
    %396 = vector.load %arg21[%c1_175, %c0_176, %c0_177] : memref<2x1x32xf32, #tpu.memory_space<vmem>>, vector<1x1x32xf32>
    %397 = vector.shape_cast %396 : vector<1x1x32xf32> to vector<1x32xf32>
    %cst_178 = arith.constant dense<0.000000e+00> : vector<17xf32>
    %398 = vector.multi_reduction <add>, %393, %cst_178 [1] : vector<17x32xf32> to vector<17xf32>
    %399 = vector.shape_cast %398 : vector<17xf32> to vector<17x1xf32>
    %cst_179 = arith.constant 3.200000e+01 : f32
    %400 = vector.broadcast %cst_179 : f32 to vector<17x1xf32>
    %401 = arith.divf %399, %400 : vector<17x1xf32>
    %402 = vector.broadcast %401 : vector<17x1xf32> to vector<17x32xf32>
    %403 = arith.subf %393, %402 : vector<17x32xf32>
    %404 = arith.mulf %403, %403 : vector<17x32xf32>
    %cst_180 = arith.constant dense<0.000000e+00> : vector<17xf32>
    %405 = vector.multi_reduction <add>, %404, %cst_180 [1] : vector<17x32xf32> to vector<17xf32>
    %406 = vector.shape_cast %405 : vector<17xf32> to vector<17x1xf32>
    %cst_181 = arith.constant 3.200000e+01 : f32
    %407 = vector.broadcast %cst_181 : f32 to vector<17x1xf32>
    %408 = arith.divf %406, %407 : vector<17x1xf32>
    %409 = vector.broadcast %401 : vector<17x1xf32> to vector<17x32xf32>
    %410 = arith.subf %393, %409 : vector<17x32xf32>
    %cst_182 = arith.constant 9.99999974E-6 : f32
    %411 = vector.broadcast %cst_182 : f32 to vector<17x1xf32>
    %412 = arith.addf %408, %411 : vector<17x1xf32>
    %413 = math.rsqrt %412 : vector<17x1xf32>
    %414 = vector.broadcast %413 : vector<17x1xf32> to vector<17x32xf32>
    %415 = arith.mulf %410, %414 : vector<17x32xf32>
    %416 = vector.broadcast %395 : vector<1x32xf32> to vector<17x32xf32>
    %417 = arith.mulf %415, %416 : vector<17x32xf32>
    %418 = vector.broadcast %397 : vector<1x32xf32> to vector<17x32xf32>
    %419 = arith.addf %417, %418 : vector<17x32xf32>
    %420 = vector.extract_strided_slice %419 {offsets = [0, 0], sizes = [1, 32], strides = [1, 1]} : vector<17x32xf32> to vector<1x32xf32>
    %c0_183 = arith.constant 0 : index
    %c0_184 = arith.constant 0 : index
    %421 = vector.load %arg22[%c0_183, %c0_184] : memref<1x32xf32, #tpu.memory_space<vmem>>, vector<1x32xf32>
    %c0_185 = arith.constant 0 : index
    %c0_186 = arith.constant 0 : index
    %422 = vector.load %arg23[%c0_185, %c0_186] : memref<1x32xf32, #tpu.memory_space<vmem>>, vector<1x32xf32>
    %cst_187 = arith.constant dense<0.000000e+00> : vector<1xf32>
    %423 = vector.multi_reduction <add>, %420, %cst_187 [1] : vector<1x32xf32> to vector<1xf32>
    %424 = vector.shape_cast %423 : vector<1xf32> to vector<1x1xf32>
    %cst_188 = arith.constant 3.200000e+01 : f32
    %425 = vector.broadcast %cst_188 : f32 to vector<1x1xf32>
    %426 = arith.divf %424, %425 : vector<1x1xf32>
    %427 = vector.broadcast %426 : vector<1x1xf32> to vector<1x32xf32>
    %428 = arith.subf %420, %427 : vector<1x32xf32>
    %429 = arith.mulf %428, %428 : vector<1x32xf32>
    %cst_189 = arith.constant dense<0.000000e+00> : vector<1xf32>
    %430 = vector.multi_reduction <add>, %429, %cst_189 [1] : vector<1x32xf32> to vector<1xf32>
    %431 = vector.shape_cast %430 : vector<1xf32> to vector<1x1xf32>
    %cst_190 = arith.constant 3.200000e+01 : f32
    %432 = vector.broadcast %cst_190 : f32 to vector<1x1xf32>
    %433 = arith.divf %431, %432 : vector<1x1xf32>
    %434 = vector.broadcast %426 : vector<1x1xf32> to vector<1x32xf32>
    %435 = arith.subf %420, %434 : vector<1x32xf32>
    %cst_191 = arith.constant 9.99999974E-6 : f32
    %436 = vector.broadcast %cst_191 : f32 to vector<1x1xf32>
    %437 = arith.addf %433, %436 : vector<1x1xf32>
    %438 = math.rsqrt %437 : vector<1x1xf32>
    %439 = vector.broadcast %438 : vector<1x1xf32> to vector<1x32xf32>
    %440 = arith.mulf %435, %439 : vector<1x32xf32>
    %441 = arith.mulf %440, %421 : vector<1x32xf32>
    %442 = arith.addf %441, %422 : vector<1x32xf32>
    %c0_192 = arith.constant 0 : index
    %c0_193 = arith.constant 0 : index
    %443 = vector.load %arg24[%c0_192, %c0_193] : memref<32x10xf32, #tpu.memory_space<vmem>>, vector<32x10xf32>
    %cst_194 = arith.constant dense<0.000000e+00> : vector<1x10xf32>
    %444 = tpu.matmul %442, %443, %cst_194 {dimension_numbers = #tpu.dot_dimension_numbers<[1], [0], [0], [1], [0, 0, 1, 1], [], []>} : vector<1x32xf32>, vector<32x10xf32>, vector<1x10xf32> -> vector<1x10xf32>
    %c0_195 = arith.constant 0 : index
    %c0_196 = arith.constant 0 : index
    %445 = vector.load %arg25[%c0_195, %c0_196] : memref<1x10xf32, #tpu.memory_space<vmem>>, vector<1x10xf32>
    %446 = arith.addf %444, %445 : vector<1x10xf32>
    %c0_197 = arith.constant 0 : index
    %c0_198 = arith.constant 0 : index
    %c0_199 = arith.constant 0 : index
    %447 = vector.load %arg26[%c0_197, %c0_198, %c0_199] : memref<1x1x10xf32, #tpu.memory_space<vmem>>, vector<1x1x10xf32>
    %448 = vector.shape_cast %447 : vector<1x1x10xf32> to vector<1x10xf32>
    %449 = vector.shape_cast %446 : vector<1x10xf32> to vector<1x1x10xf32>
    tpu.vector_store %arg26[%c0_197, %c0_198, %c0_199], %449 {strides = array<i32>} : memref<1x1x10xf32, #tpu.memory_space<vmem>>, vector<1x1x10xf32>,
    return
  }
  func.func @transform_0(%arg0: i32) -> (i32, i32, i32) {
    %c0_i32 = arith.constant 0 : i32
    %c0_i32_0 = arith.constant 0 : i32
    %c0_i32_1 = arith.constant 0 : i32
    return %arg0, %c0_i32, %c0_i32_0 : i32, i32, i32
  }
  func.func @transform_1(%arg0: i32) -> (i32, i32) {
    %c0_i32 = arith.constant 0 : i32
    %c0_i32_0 = arith.constant 0 : i32
    %c0_i32_1 = arith.constant 0 : i32
    return %c0_i32, %c0_i32_0 : i32, i32
  }
  func.func @transform_2(%arg0: i32) -> (i32, i32) {
    %c0_i32 = arith.constant 0 : i32
    %c0_i32_0 = arith.constant 0 : i32
    %c0_i32_1 = arith.constant 0 : i32
    return %c0_i32, %c0_i32_0 : i32, i32
  }
  func.func @transform_3(%arg0: i32) -> (i32, i32) {
    %c0_i32 = arith.constant 0 : i32
    %c0_i32_0 = arith.constant 0 : i32
    %c0_i32_1 = arith.constant 0 : i32
    return %c0_i32, %c0_i32_0 : i32, i32
  }
  func.func @transform_4(%arg0: i32) -> (i32, i32) {
    %c0_i32 = arith.constant 0 : i32
    %c0_i32_0 = arith.constant 0 : i32
    %c0_i32_1 = arith.constant 0 : i32
    return %c0_i32, %c0_i32_0 : i32, i32
  }
  func.func @transform_5(%arg0: i32) -> (i32, i32) {
    %c0_i32 = arith.constant 0 : i32
    %c0_i32_0 = arith.constant 0 : i32
    %c0_i32_1 = arith.constant 0 : i32
    return %c0_i32, %c0_i32_0 : i32, i32
  }
  func.func @transform_6(%arg0: i32) -> (i32, i32) {
    %c0_i32 = arith.constant 0 : i32
    %c0_i32_0 = arith.constant 0 : i32
    %c0_i32_1 = arith.constant 0 : i32
    return %c0_i32, %c0_i32_0 : i32, i32
  }
  func.func @transform_7(%arg0: i32) -> (i32, i32) {
    %c0_i32 = arith.constant 0 : i32
    %c0_i32_0 = arith.constant 0 : i32
    %c0_i32_1 = arith.constant 0 : i32
    return %c0_i32, %c0_i32_0 : i32, i32
  }
  func.func @transform_8(%arg0: i32) -> (i32, i32) {
    %c0_i32 = arith.constant 0 : i32
    %c0_i32_0 = arith.constant 0 : i32
    %c0_i32_1 = arith.constant 0 : i32
    return %c0_i32, %c0_i32_0 : i32, i32
  }
  func.func @transform_9(%arg0: i32) -> (i32, i32, i32) {
    %c0_i32 = arith.constant 0 : i32
    %c0_i32_0 = arith.constant 0 : i32
    %c0_i32_1 = arith.constant 0 : i32
    %c0_i32_2 = arith.constant 0 : i32
    return %c0_i32, %c0_i32_0, %c0_i32_1 : i32, i32, i32
  }
  func.func @transform_10(%arg0: i32) -> (i32, i32, i32) {
    %c0_i32 = arith.constant 0 : i32
    %c0_i32_0 = arith.constant 0 : i32
    %c0_i32_1 = arith.constant 0 : i32
    %c0_i32_2 = arith.constant 0 : i32
    return %c0_i32, %c0_i32_0, %c0_i32_1 : i32, i32, i32
  }
  func.func @transform_11(%arg0: i32) -> (i32, i32, i32) {
    %c0_i32 = arith.constant 0 : i32
    %c0_i32_0 = arith.constant 0 : i32
    %c0_i32_1 = arith.constant 0 : i32
    %c0_i32_2 = arith.constant 0 : i32
    return %c0_i32, %c0_i32_0, %c0_i32_1 : i32, i32, i32
  }
  func.func @transform_12(%arg0: i32) -> (i32, i32, i32) {
    %c0_i32 = arith.constant 0 : i32
    %c0_i32_0 = arith.constant 0 : i32
    %c0_i32_1 = arith.constant 0 : i32
    %c0_i32_2 = arith.constant 0 : i32
    return %c0_i32, %c0_i32_0, %c0_i32_1 : i32, i32, i32
  }
  func.func @transform_13(%arg0: i32) -> (i32, i32, i32) {
    %c0_i32 = arith.constant 0 : i32
    %c0_i32_0 = arith.constant 0 : i32
    %c0_i32_1 = arith.constant 0 : i32
    %c0_i32_2 = arith.constant 0 : i32
    return %c0_i32, %c0_i32_0, %c0_i32_1 : i32, i32, i32
  }
  func.func @transform_14(%arg0: i32) -> (i32, i32, i32) {
    %c0_i32 = arith.constant 0 : i32
    %c0_i32_0 = arith.constant 0 : i32
    %c0_i32_1 = arith.constant 0 : i32
    %c0_i32_2 = arith.constant 0 : i32
    return %c0_i32, %c0_i32_0, %c0_i32_1 : i32, i32, i32
  }
  func.func @transform_15(%arg0: i32) -> (i32, i32, i32) {
    %c0_i32 = arith.constant 0 : i32
    %c0_i32_0 = arith.constant 0 : i32
    %c0_i32_1 = arith.constant 0 : i32
    %c0_i32_2 = arith.constant 0 : i32
    return %c0_i32, %c0_i32_0, %c0_i32_1 : i32, i32, i32
  }
  func.func @transform_16(%arg0: i32) -> (i32, i32, i32) {
    %c0_i32 = arith.constant 0 : i32
    %c0_i32_0 = arith.constant 0 : i32
    %c0_i32_1 = arith.constant 0 : i32
    %c0_i32_2 = arith.constant 0 : i32
    return %c0_i32, %c0_i32_0, %c0_i32_1 : i32, i32, i32
  }
  func.func @transform_17(%arg0: i32) -> (i32, i32, i32) {
    %c0_i32 = arith.constant 0 : i32
    %c0_i32_0 = arith.constant 0 : i32
    %c0_i32_1 = arith.constant 0 : i32
    %c0_i32_2 = arith.constant 0 : i32
    return %c0_i32, %c0_i32_0, %c0_i32_1 : i32, i32, i32
  }
  func.func @transform_18(%arg0: i32) -> (i32, i32, i32) {
    %c0_i32 = arith.constant 0 : i32
    %c0_i32_0 = arith.constant 0 : i32
    %c0_i32_1 = arith.constant 0 : i32
    %c0_i32_2 = arith.constant 0 : i32
    return %c0_i32, %c0_i32_0, %c0_i32_1 : i32, i32, i32
  }
  func.func @transform_19(%arg0: i32) -> (i32, i32, i32) {
    %c0_i32 = arith.constant 0 : i32
    %c0_i32_0 = arith.constant 0 : i32
    %c0_i32_1 = arith.constant 0 : i32
    %c0_i32_2 = arith.constant 0 : i32
    return %c0_i32, %c0_i32_0, %c0_i32_1 : i32, i32, i32
  }
  func.func @transform_20(%arg0: i32) -> (i32, i32, i32) {
    %c0_i32 = arith.constant 0 : i32
    %c0_i32_0 = arith.constant 0 : i32
    %c0_i32_1 = arith.constant 0 : i32
    %c0_i32_2 = arith.constant 0 : i32
    return %c0_i32, %c0_i32_0, %c0_i32_1 : i32, i32, i32
  }
  func.func @transform_21(%arg0: i32) -> (i32, i32) {
    %c0_i32 = arith.constant 0 : i32
    %c0_i32_0 = arith.constant 0 : i32
    %c0_i32_1 = arith.constant 0 : i32
    return %c0_i32, %c0_i32_0 : i32, i32
  }
  func.func @transform_22(%arg0: i32) -> (i32, i32) {
    %c0_i32 = arith.constant 0 : i32
    %c0_i32_0 = arith.constant 0 : i32
    %c0_i32_1 = arith.constant 0 : i32
    return %c0_i32, %c0_i32_0 : i32, i32
  }
  func.func @transform_23(%arg0: i32) -> (i32, i32) {
    %c0_i32 = arith.constant 0 : i32
    %c0_i32_0 = arith.constant 0 : i32
    %c0_i32_1 = arith.constant 0 : i32
    return %c0_i32, %c0_i32_0 : i32, i32
  }
  func.func @transform_24(%arg0: i32) -> (i32, i32) {
    %c0_i32 = arith.constant 0 : i32
    %c0_i32_0 = arith.constant 0 : i32
    %c0_i32_1 = arith.constant 0 : i32
    return %c0_i32, %c0_i32_0 : i32, i32
  }
  func.func @transform_25(%arg0: i32) -> (i32, i32, i32) {
    %c0_i32 = arith.constant 0 : i32
    %c0_i32_0 = arith.constant 0 : i32
    %c0_i32_1 = arith.constant 0 : i32
    return %arg0, %c0_i32, %c0_i32_0 : i32, i32, i32
  }
}

</mosaic_0001>

<bundles_post_ra>
// kernel: tpu_custom_call.1
= control target key start
LH: loop header
LB: loop body
LE: loop exit
PB: predicated region body
PF: predicated region fallthrough
CT: control target
= control target key end

     0   :  { %s7185_s0 = inlined_call_operand.vmem [shape: f32[2,17,48], index: 0, kind: input, shape index: {}]   ;;  %s7186_s1 = inlined_call_operand.vmem [shape: f32[1,48], index: 1, kind: input, shape index: {}]   ;;  %s7187_s2 = inlined_call_operand.vmem [shape: f32[1,48], index: 2, kind: input, shape index: {}]   ;;  %s7188_s3 = inlined_call_operand.vmem [shape: f32[48,32], index: 3, kind: input, shape index: {}]   ;;  %s7189_s4 = inlined_call_operand.vmem [shape: f32[1,32], index: 4, kind: input, shape index: {}]   ;;  %s7190_s5 = inlined_call_operand.vmem [shape: f32[1,32], index: 5, kind: input, shape index: {}]   ;;  %s7191_s6 = inlined_call_operand.vmem [shape: f32[1,32], index: 6, kind: input, shape index: {}]   ;;  %s7192_s7 = inlined_call_operand.vmem [shape: f32[1,32], index: 7, kind: input, shape index: {}]   ;;  %s7193_s8 = inlined_call_operand.vmem [shape: f32[17,32], index: 8, kind: input, shape index: {}]   ;;  %s7194_s9 = inlined_call_operand.vmem [shape: f32[2,32,96], index: 9, kind: input, shape index: {}]   ;;  %s7195_s10 = inlined_call_operand.vmem [shape: f32[2,1,96], index: 10, kind: input, shape index: {}]   ;;  %s7196_s11 = inlined_call_operand.vmem [shape: f32[2,32,32], index: 11, kind: input, shape index: {}]   ;;  %s7197_s12 = inlined_call_operand.vmem [shape: f32[2,1,32], index: 12, kind: input, shape index: {}]   ;;  %s7198_s13 = inlined_call_operand.vmem [shape: f32[2,1,32], index: 13, kind: input, shape index: {}]   ;;  %s7199_s14 = inlined_call_operand.vmem [shape: f32[2,1,32], index: 14, kind: input, shape index: {}]   ;;  %s7200_s15 = inlined_call_operand.vmem [shape: f32[2,32,64], index: 15, kind: input, shape index: {}]   ;;  %s7201_s16 = inlined_call_operand.vmem [shape: f32[2,1,64], index: 16, kind: input, shape index: {}]   ;;  %s7202_s17 = inlined_call_operand.vmem [shape: f32[2,64,32], index: 17, kind: input, shape index: {}]   ;;  %s7203_s18 = inlined_call_operand.vmem [shape: f32[2,1,32], index: 18, kind: input, shape index: {}]   ;;  %s7204_s19 = inlined_call_operand.vmem [shape: f32[2,1,32], index: 19, kind: input, shape index: {}]   ;;  %s7205_s20 = inlined_call_operand.vmem [shape: f32[2,1,32], index: 20, kind: input, shape index: {}]   ;;  %s7206_s21 = inlined_call_operand.vmem [shape: f32[1,32], index: 21, kind: input, shape index: {}]   ;;  %s7207_s22 = inlined_call_operand.vmem [shape: f32[1,32], index: 22, kind: input, shape index: {}]   ;;  %s7208_s23 = inlined_call_operand.vmem [shape: f32[32,10], index: 23, kind: input, shape index: {}]   ;;  %s7209_s24 = inlined_call_operand.vmem [shape: f32[1,10], index: 24, kind: input, shape index: {}]   ;;  %s7210_s25 = inlined_call_operand.hbm [shape: f32[2,1,10], index: 25, kind: output, shape index: {}]  }
   0x1   :  { %7239 = sst [smem:[#allocation11_spill]] %s7185_s0 }
   0x2   :  { %7240 = sst [smem:[#allocation12_spill]] %s7186_s1 }
   0x3   :  { %7241 = sst [smem:[#allocation13_spill]] %s7187_s2 }
   0x4   :  { %7242 = sst [smem:[#allocation14_spill]] %s7188_s3 }
   0x5   :  { %7243 = sst [smem:[#allocation15_spill]] %s7189_s4 }
   0x6   :  { %7244 = sst [smem:[#allocation16_spill]] %s7190_s5 }
   0x7   :  { %7245 = sst [smem:[#allocation17_spill]] %s7191_s6 }
   0x8   :  { %7246 = sst [smem:[#allocation18_spill]] %s7192_s7 }
   0x9   :  { %7247 = sst [smem:[#allocation19_spill]] %s7193_s8 }
   0xa   :  { %7248 = sst [smem:[#allocation20_spill]] %s7194_s9 }
   0xb   :  { %7249 = sst [smem:[#allocation21_spill]] %s7210_s25 }
   0xc   :  { %30 = vsyncpa [#allocation3], 0 }
   0xd   :  { %32 = vsyncpa [#allocation3 + $0x1], 0  ;;  %s6176_s29 = smov 0   ;;  %s6178_s2 = smov 0  }
   0xe   :  { %s6180_s6 = smov 0   ;;  %s6182_s30 = smov 0  }
   0xf LB: > { %7250 = sst [smem:[#allocation5_spill]] %s6017_s29  ;;  %s6197_s7 = sadd.s32 4294967295, %s6029_s30   ;;  %s6029_s30 = sphi %s6182_s30, %s7282_s30   ;;  %s6025_s6 = sphi %s6180_s6, %s7284_s6   ;;  %s6021_s2 = sphi %s6178_s2, %s7286_s2   ;;  %s6017_s29 = sphi %s6176_s29, %s7285_s29  }
  0x10   : > { %7251 = sst [smem:[#allocation6_spill]] %s6025_s6  ;;  %s4718_s3 = sadd.s32 4294967294, %s6029_s30  }
  0x11   : > { %7252 = sst [smem:[#allocation7_spill]] %s6029_s30  ;;  %s6201_s26 = sadd.s32 1, %s6029_s30  }
  0x12   : > { %7253 = sst [smem:[#allocation8_spill]] %s6201_s26  ;;  %s575_s1 = sadd.s32 1, %s6025_s6 }
  0x13   : > { %s572_s8 = ssub.s32 %s6029_s30, %s6201_s26  ;;  %p585_p0 = scmp.ne.s32.totalorder %s6025_s6, %s6021_s2 }
  0x14   : > { %p573_p1 = scmp.eq.s32.totalorder %s572_s8, 0  ;;  %p586_p2 = scmp.eq.s32.totalorder %s6197_s7, 1 }
  0x15   : > { %p591_p3 = scmp.ne.s32.totalorder %s6021_s2, %s6017_s29  ;;  %p592_p4 = scmp.eq.s32.totalorder %s4718_s3, 1 }
  0x16   : > { %s6212_s27 = scalar_select %p573_p1, %s6025_s6, %s575_s1  }
  0x17   : > { %p6214_p5 = por %p586_p2, %p585_p0  ;;  %p6218_p6 = por %p592_p4, %p591_p3 }
  0x18   : > { %7254 = sst [smem:[#allocation9_spill]] %s6212_s27  ;;  %p4721_p7 = scmp.ge.s32.totalorder %s6029_s30, 1 }
  0x19   : > { %s7256_s28 = scalar_select %p6218_p6, 1, 0 }
  0x1a   : > { %p690_p8 = scmp.lt.s32.totalorder %s6029_s30, 3 }
  0x1b   : > { %7257 = sst [smem:[#allocation10_spill]] %s7256_s28 }
  0x1c   : > { %p691_p9 = pnand %p4721_p7, %p690_p8 }
  0x1d   : > { %p757_p10 = scmp.lt.s32.totalorder (!%p691_p9), %s6197_s7, 1  ;;  %vm767_vm0 = vcmask (!%p691_p9), 392192   ;;  %vm774_vm1 = vcmask (!%p691_p9), 385024   ;;  %s7258_s1 = sld [smem:[#allocation11_spill]] (!%p691_p9)  ;;  %v6031_v26 = vmov (!%p691_p9), 0.0|0.0   ;;  %vm6032_vm2 = vmmov (!%p691_p9), 0  }
  0x1e   : > { %694 = sbr.rel (%p691_p9) target bundleno = 8839 (0x2287), region = 120  ;;  %s7259_s0 = sld [smem:[#allocation14_spill]] (!%p691_p9)  ;;  %5572 = vmatprep.subr.bf16.mxu0 (!%p691_p9), %v6031_v26  ;;  %v6033_v27 = vmov (!%p691_p9), 0.0   ;;  %5581 = vmatprep.subr.bf16.mxu1 (!%p691_p9), %v6031_v26  ;;  %vm931_vm3 = vcmask (!%p691_p9), 261120   ;;  %vm938_vm4 = vcmask (!%p691_p9), 253952   ;;  %vm1130_vm6 = vcmask (!%p691_p9), 64512  }
  0x1f   : > { %5106 = vmatprep.mubr.msk.f32.mxu0 (!%p691_p9), %vm6032_vm2, %v6033_v27  ;;  %5123 = vmatprep.mubr.msk.f32.mxu1 (!%p691_p9), %vm6032_vm2, %v6033_v27  ;;  %s7265_s6 = sld [smem:[#allocation17_spill]] (!%p691_p9)  ;;  %s7266_s28 = sld [smem:[#allocation18_spill]] (!%p691_p9)  ;;  %vm6366_vm7 = vmpackc.low (!%p691_p9), %vm1130_vm6, %vm1130_vm6  ;;  %vm1226_vm8 = vcmask (!%p691_p9), 138240   ;;  %vm1233_vm9 = vcmask (!%p691_p9), 131072   ;;  %vm1278_vm10 = vcmask (!%p691_p9), 1040384   ;;  %vm2645_vm11 = vcmask (!%p691_p9), 523264  }
  0x20   : > { %s7267_s25 = sld [smem:[#allocation19_spill]] (!%p691_p9)  ;;  %s6034_s27 = smov (!%p691_p9), 96   ;;  %vm4648_vm12 = vcmask (!%p691_p9), 73728  }
  0x21   : > { %s7236_s26 = smov (!%p691_p9), 64   ;;  %s7230_s3 = smov (!%p691_p9), 112  }
  0x22   : > { %s7228_s29 = smov (!%p691_p9), 48   ;;  %s7224_s30 = smov (!%p691_p9), 72  }
  0x24   : > { %v827_v21 = vld [vmem:[%s7259_s0] sm:$0xff] (!%p691_p9)  ;;  %v828_v22 = vld [vmem:[%s7259_s0 + $0x8] sm:$0xff] (!%p691_p9)  ;;  %v829_v24 = vld [vmem:[%s7259_s0 + $0x10] sm:$0xff] (!%p691_p9) }
  0x25   : > { %s758_s9 = scalar_select %p757_p10, %s6197_s7, 1  ;;  %v5573_v23 = vpack.c.bf16 %v828_v22, %v827_v21  ;;  %v830_v25 = vld [vmem:[%s7259_s0 + $0x18] sm:$0xff]  ;;  %v831_v29 = vld [vmem:[%s7259_s0 + $0x20] sm:$0xff]  ;;  %v832_v30 = vld [vmem:[%s7259_s0 + $0x28] sm:$0xff] }
  0x26   : > { %v5576_v28 = vpack.c.bf16 %v830_v25, %v829_v24  ;;  %v5579_v31 = vpack.c.bf16 %v832_v30, %v831_v29  ;;  %s7232_s0 = smov 80  }
  0x27   : > { %s5691_s5 = smul.u32 24, %s758_s9  ;;  %5574 = vmatpush3.bf16.msra.mxu0 %v5573_v23  ;;  %s7261_s9 = sld [smem:[#allocation13_spill]] }
  0x28   : > { %5575 = vmatprep.subr.bf16.mxu0 %v6031_v26 }
  0x29   : > { %s761_s8 = scalar_lea.vmem %s7258_s1, %s5691_s5  ;;  %s7260_s1 = sld [smem:[#allocation12_spill]] }
  0x2a   : > { %v762_v0 = vld [vmem:[%s761_s8] sm:$0xff]  ;;  %v764_v1 = vld [vmem:[%s761_s8 + $0x10] sm:$0x1]  ;;  %v763_v2 = vld [vmem:[%s761_s8 + $0x8] sm:$0xff]  ;;  %s7262_s5 = sld [smem:[#allocation15_spill]]  ;;  %s7263_s8 = sld [smem:[#allocation20_spill]] }
  0x2b   : > { %v768_v3 = vsel %vm767_vm0, %v762_v0, 0.0  ;;  %v775_v4 = vsel %vm774_vm1, %v764_v1, 0.0  ;;  %v771_v5 = vsel %vm767_vm0, %v763_v2, 0.0  ;;  %5577 = vmatpush3.bf16.msra.mxu0 %v5576_v28 }
  0x2c   : > { %769 = vadd.xlane.f32.xlu0 %v768_v3  ;;  %776 = vadd.xlane.f32.xlu1 %v775_v4 }
  0x2d   : > { %5578 = vmatprep.subr.bf16.mxu0 %v6031_v26  ;;  %v4724_v44 = vld [vmem:[%s7261_s9] ss:$0 sm:$0xff]  ;;  %s6035_s9 = smov 120  }
  0x2f   : > { %5580 = vmatpush3.bf16.msra.mxu0 %v5579_v31  ;;  %v4723_v42 = vld [vmem:[%s7260_s1] ss:$0 sm:$0xff]  ;;  %s7264_s1 = sld [smem:[#allocation16_spill]] }
  0x30   : > { %772 = vadd.xlane.f32.xlu0 %v771_v5  ;;  %5591 = vmatprep.subr.bf16.mxu0 %v6031_v26  ;;  %v4725_v55 = vld [vmem:[%s7262_s5] ss:$0 sm:$0xff]  ;;  %v1016_v21 = vld [vmem:[%s7263_s8 + $0x10] sm:$0xff]  ;;  %v1017_v23 = vld [vmem:[%s7263_s8 + $0x18] sm:$0xff]  ;;  %s7234_s5 = smov 56  }
  0x31   : > { %v5585_v24 = vpack.c.bf16 %v1017_v23, %v1016_v21 }
  0xb9   : > { %v770_v6 = vpop.xlane.xlu0 %769  ;;  %v777_v7 = vpop.xlane.xlu1 %776 }
  0xba   : > { %v779_v8 = vmul.f32 0.020833334, %v770_v6  ;;  %v781_v9 = vmul.f32 0.020833334, %v777_v7 }
  0xbc   : > { %v782_v10 = vsub.f32 %v762_v0, %v779_v8  ;;  %v784_v11 = vsub.f32 %v764_v1, %v781_v9 }
  0xbd   : > { %v773_v12 = vpop.xlane.xlu0 %772 }
  0xbe   : > { %v780_v13 = vmul.f32 0.020833334, %v773_v12  ;;  %v785_v14 = vmul.f32 %v782_v10, %v782_v10  ;;  %v787_v15 = vmul.f32 %v784_v11, %v784_v11 }
  0xc0   : > { %v783_v16 = vsub.f32 %v763_v2, %v780_v13  ;;  %v788_v17 = vsel %vm767_vm0, %v785_v14, 0.0  ;;  %v794_v18 = vsel %vm774_vm1, %v787_v15, 0.0 }
  0xc1   : > { %789 = vadd.xlane.f32.xlu1 %v788_v17 }
  0xc2   : > { %v786_v19 = vmul.f32 %v783_v16, %v783_v16 }
  0xc4   : > { %v791_v20 = vsel %vm767_vm0, %v786_v19, 0.0  ;;  %v1014_v19 = vld [vmem:[%s7263_s8] sm:$0xff] }
  0xc5   : > { %795 = vadd.xlane.f32.xlu1 %v794_v18  ;;  %792 = vadd.xlane.f32.xlu0 %v791_v20  ;;  %v1015_v20 = vld [vmem:[%s7263_s8 + $0x8] sm:$0xff] }
  0xc6   : > { %v5582_v22 = vpack.c.bf16 %v1015_v20, %v1014_v19 }
  0xc8   : > { %5583 = vmatpush3.bf16.msra.mxu1 %v5582_v22 }
  0xc9   : > { %5584 = vmatprep.subr.bf16.mxu1 %v6031_v26 }
  0xcc   : > { %5586 = vmatpush3.bf16.msra.mxu1 %v5585_v24 }
  0xcd   : > { %5587 = vmatprep.subr.bf16.mxu1 %v6031_v26 }
 0x14e   : > { %v790_v32 = vpop.xlane.xlu1 %789 }
 0x14f   : > { %v797_v33 = vmul.f32 0.020833334, %v790_v32 }
 0x151   : > { %v800_v34 = vadd.f32 1e-05, %v797_v33 }
 0x152   : > { %v796_v35 = vpop.xlane.xlu1 %795  ;;  %v793_v36 = vpop.xlane.xlu0 %792 }
 0x153   : > { %5825 = vrsqrt.f32 %v800_v34  ;;  %v799_v37 = vmul.f32 0.020833334, %v796_v35  ;;  %v798_v38 = vmul.f32 0.020833334, %v793_v36  ;;  %v991_v35 = vlaneseq }
 0x155   : > { %v802_v39 = vadd.f32 1e-05, %v799_v37  ;;  %v801_v40 = vadd.f32 1e-05, %v798_v38  ;;  %v4729_v38 = vld [vmem:[%s7264_s1] ss:$0 sm:$0xff] }
 0x157   : > { %5827 = vrsqrt.f32 %v802_v39  ;;  %v992_v39 = vshrl.u32 %v991_v35, 7 }
 0x158   : > { %5829 = vrsqrt.f32 %v801_v40 }
 0x159   : > { %vm995_vm5 = vcmp.eq.s32.totalorder %v992_v39, 0 }
 0x15d   : > { %v5826_v41 = vpop.eup %5825 }
 0x15e   : > { %v806_v43 = vmul.f32 %v5826_v41, %v782_v10  ;;  %v4730_v41 = vld [vmem:[%s7265_s6] ss:$0 sm:$0xff]  ;;  %s6036_s6 = smov 88  }
 0x160   : > { %v815_v45 = vmul.f32 %v4723_v42, %v806_v43  ;;  %v4731_v43 = vld [vmem:[%s7266_s28] ss:$0 sm:$0xff]  ;;  %s7222_s28 = smov 104  }
 0x161   : > { %v5828_v46 = vpop.eup %5827 }
 0x162   : > { %v5830_v47 = vpop.eup %5829  ;;  %v824_v48 = vadd.f32 %v4724_v44, %v815_v45  ;;  %v808_v50 = vmul.f32 %v5828_v46, %v784_v11  ;;  %v1008_v46 = vld [vmem:[%s7267_s25] sm:$0xff] }
 0x163   : > { %v807_v49 = vmul.f32 %v5830_v47, %v783_v16 }
 0x164   : > { %5107 = vmatmul.mubr.msk.f32.vlgmr.msra.gmra.mrb[0].mxu0 %vm767_vm0, %v824_v48  ;;  %v817_v53 = vmul.f32 %v4723_v42, %v808_v50 }
 0x165   : > { %5109 = vmatprep.mubr.msk.f32.mxu0 %vm6032_vm2, %v6033_v27  ;;  %v816_v51 = vmul.f32 %v4723_v42, %v807_v49 }
 0x166   : > { %v826_v54 = vadd.f32 %v4724_v44, %v817_v53 }
 0x167   : > { %v825_v52 = vadd.f32 %v4724_v44, %v816_v51 }
 0x169   : > { %5110 = vmatmul.mubr.msk.f32.gmra.mrb[2].mxu0 %vm767_vm0, %v825_v52  ;;  %v1009_v52 = vld [vmem:[%s7267_s25 + $0x8] sm:$0xff] }
 0x16a   : > { %5112 = vmatprep.mubr.msk.f32.mxu0 %vm6032_vm2, %v6033_v27 }
 0x16d   : > { %5113 = vmatmul.mubr.msk.f32.gmra.mrb[4].mxu0 %vm767_vm0, %v826_v54 }
 0x16e   : > { %5153 = vmatprep.mubr.msk.f32.mxu0 %vm6032_vm2, %v6033_v27 }
 0x237   : > { %v915_v56 = vpop.f32.mrb[0].mxu0 }
 0x238   : > { %v916_v57 = vadd.f32 %v4725_v55, %v915_v56  ;;  %v5108_v58 = vpop.f32.mrb[1].mxu0 }
 0x23a   : > { %v932_v59 = vsel %vm931_vm3, %v916_v57, 0.0 }
 0x23b   : > { %933 = vadd.xlane.f32.xlu0 %v932_v59 }
 0x23c   : > { %v920_v60 = vpop.f32.mrb[2].mxu0 }
 0x23d   : > { %v921_v61 = vadd.f32 %v4725_v55, %v920_v60  ;;  %v5111_v62 = vpop.f32.mrb[3].mxu0 }
 0x23e   : > { %v4732_v62 = vld [vmem:[%s7195_s10] ss:$0 sm:$0xff] }
 0x23f   : > { %v935_v63 = vsel %vm931_vm3, %v921_v61, 0.0 }
 0x240   : > { %936 = vadd.xlane.f32.xlu1 %v935_v63  ;;  %v925_v0 = vpop.f32.mrb[4].mxu0 }
 0x241   : > { %v926_v1 = vadd.f32 %v4725_v55, %v925_v0  ;;  %v5114_v2 = vpop.f32.mrb[5].mxu0 }
 0x243   : > { %v939_v3 = vsel %vm938_vm4, %v926_v1, 0.0 }
 0x244   : > { %940 = vadd.xlane.f32.xlu0 %v939_v3 }
 0x2c8   : > { %v934_v4 = vpop.xlane.xlu0 %933 }
 0x2c9   : > { %v943_v5 = vmul.f32 0.03125, %v934_v4 }
 0x2cb   : > { %v946_v6 = vsub.f32 %v916_v57, %v943_v5  ;;  %v1010_v57 = vld [vmem:[%s7267_s25 + $0x10] sm:$0x1] }
 0x2cd   : > { %v937_v7 = vpop.xlane.xlu1 %936  ;;  %v949_v8 = vmul.f32 %v946_v6, %v946_v6 }
 0x2ce   : > { %v944_v9 = vmul.f32 0.03125, %v937_v7 }
 0x2cf   : > { %v952_v10 = vsel %vm931_vm3, %v949_v8, 0.0 }
 0x2d0   : > { %v947_v11 = vsub.f32 %v921_v61, %v944_v9  ;;  %953 = vadd.xlane.f32.xlu1 %v952_v10 }
 0x2d1   : > { %v941_v12 = vpop.xlane.xlu0 %940 }
 0x2d2   : > { %v945_v13 = vmul.f32 0.03125, %v941_v12  ;;  %v950_v14 = vmul.f32 %v947_v11, %v947_v11 }
 0x2d4   : > { %v948_v15 = vsub.f32 %v926_v1, %v945_v13  ;;  %v955_v16 = vsel %vm931_vm3, %v950_v14, 0.0  ;;  %v4812_v14 = vld [vmem:[%s7196_s11 + $0x30] sm:$0xff] }
 0x2d5   : > { %956 = vadd.xlane.f32.xlu0 %v955_v16 }
 0x2d6   : > { %v951_v17 = vmul.f32 %v948_v15, %v948_v15 }
 0x2d8   : > { %v958_v18 = vsel %vm938_vm4, %v951_v17, 0.0 }
 0x2d9   : > { %959 = vadd.xlane.f32.xlu1 %v958_v18 }
 0x35d   : > { %v954_v25 = vpop.xlane.xlu1 %953 }
 0x35e   : > { %v961_v28 = vmul.f32 0.03125, %v954_v25 }
 0x360   : > { %v964_v29 = vadd.f32 1e-05, %v961_v28 }
 0x362   : > { %5831 = vrsqrt.f32 %v964_v29  ;;  %v957_v30 = vpop.xlane.xlu0 %956 }
 0x363   : > { %v962_v31 = vmul.f32 0.03125, %v957_v30 }
 0x365   : > { %v965_v32 = vadd.f32 1e-05, %v962_v31 }
 0x366   : > { %v960_v33 = vpop.xlane.xlu1 %959 }
 0x367   : > { %5833 = vrsqrt.f32 %v965_v32  ;;  %v963_v34 = vmul.f32 0.03125, %v960_v33 }
 0x369   : > { %v966_v36 = vadd.f32 1e-05, %v963_v34 }
 0x36b   : > { %5835 = vrsqrt.f32 %v966_v36 }
 0x36c   : > { %v5832_v37 = vpop.eup %5831 }
 0x36d   : > { %v970_v40 = vmul.f32 %v5832_v37, %v946_v6 }
 0x36f   : > { %v979_v42 = vmul.f32 %v4729_v38, %v970_v40 }
 0x371   : > { %v5834_v44 = vpop.eup %5833  ;;  %v988_v45 = vadd.f32 %v4730_v41, %v979_v42 }
 0x372   : > { %v971_v47 = vmul.f32 %v5834_v44, %v947_v11 }
 0x373   : > { %v1005_v48 = vsel %vm995_vm5, %v4731_v43, %v988_v45 }
 0x374   : > { %v6312_v49 = vadd.f32 %v1008_v46, %v1005_v48  ;;  %v980_v50 = vmul.f32 %v4729_v38, %v971_v47 }
 0x375   : > { %v5836_v51 = vpop.eup %5835 }
 0x376   : > { %5124 = vmatmul.mubr.msk.f32.vlgmr.msra.gmra.mrb[0].mxu1 %vm931_vm3, %v6312_v49  ;;  %v989_v53 = vadd.f32 %v4730_v41, %v980_v50  ;;  %v972_v54 = vmul.f32 %v5836_v51, %v948_v15 }
 0x377   : > { %5126 = vmatprep.mubr.msk.f32.mxu1 %vm6032_vm2, %v6033_v27 }
 0x378   : > { %v6321_v55 = vadd.f32 %v1009_v52, %v989_v53  ;;  %v981_v56 = vmul.f32 %v4729_v38, %v972_v54 }
 0x37a   : > { %5127 = vmatmul.mubr.msk.f32.gmra.mrb[2].mxu1 %vm931_vm3, %v6321_v55  ;;  %v990_v58 = vadd.f32 %v4730_v41, %v981_v56 }
 0x37b   : > { %5129 = vmatprep.mubr.msk.f32.mxu1 %vm6032_vm2, %v6033_v27 }
 0x37c   : > { %v6330_v59 = vadd.f32 %v1010_v57, %v990_v58 }
 0x37e   : > { %5130 = vmatmul.mubr.msk.f32.gmra.mrb[4].mxu1 %vm931_vm3, %v6330_v59 }
 0x37f   : > { %5138 = vmatprep.mubr.msk.f32.mxu1 %vm6032_vm2, %v6033_v27 }
 0x449   : > { %v1100_v60 = vpop.f32.mrb[0].mxu1 }
 0x44a   : > { %v5125_v61 = vpop.f32.mrb[1].mxu1  ;;  %v1101_v0 = vadd.f32 %v4732_v62, %v1100_v60 }
 0x44c   : > { %v6347_v7 = vmul.f32 0.35355338, %v1101_v0 }
 0x44d   : > { %v1105_v63 = vpop.f32.mrb[2].mxu1 }
 0x44e   : > { %v1106_v1 = vadd.f32 %v4732_v62, %v1105_v63  ;;  %v5128_v2 = vpop.f32.mrb[3].mxu1 }
 0x450   : > { %v6339_v3 = vpack.i.bf16 %v1106_v1, %v1101_v0  ;;  %v6360_v9 = vmul.f32 0.35355338, %v1106_v1 }
 0x451   : > { %v1110_v4 = vpop.f32.mrb[4].mxu1 }
 0x452   : > { %v6341_v5 = vadd.f32 %v4732_v62, %v1110_v4  ;;  %5746 = vrot.lane.b32.xlu0 %v6339_v3, %s6034_s27  ;;  %v5131_v6 = vpop.f32.mrb[5].mxu1 }
 0x454   : > { %1128 = vrot.lane.b32.xlu1 %v6341_v5, %s6034_s27  ;;  %v6354_v8 = vmul.f32 0.35355338, %v6341_v5 }
 0x456   : > { %1361 = vrot.lane.b32.xlu0 %v6347_v7, %s6035_s9 }
 0x458   : > { %5751 = vrot.lane.b32.xlu1 %v6339_v3, %s6036_s6 }
 0x45a   : > { %1365 = vrot.lane.b32.xlu0 %v6354_v8, %s6035_s9 }
 0x45c   : > { %1371 = vrot.lane.b32.xlu1 %v6341_v5, %s6036_s6 }
 0x460   : > { %1363 = vrot.lane.b32.xlu1 %v6360_v9, %s6035_s9 }
 0x4c4   : > { %v5747_v10 = vpop.permute.xlu0 %5746 }
 0x4c5   : > { %v5749_v11 = vunpack.i.h.bf16 %v5747_v10  ;;  %v5748_v12 = vunpack.i.l.bf16 %v5747_v10 }
 0x4c6   : > { %v1129_v13 = vpop.permute.xlu1 %1128 }
 0x4c7   : > { %v5588_v15 = vpack.c.bf16 %v5749_v11, %v5748_v12 }
 0x4c8   : > { %v1362_v21 = vpop.permute.xlu0 %1361 }
 0x4c9   : > { %5590 = vmatpush3.bf16.xpose.msk.msra.mxu1 %vm6366_vm7, %v5588_v15 }
 0x4ca   : > { %5136 = vmatprep.subr.mxu1 %v6033_v27  ;;  %v5752_v16 = vpop.permute.xlu1 %5751 }
 0x4cb   : > { %v5754_v17 = vunpack.i.h.bf16 %v5752_v16  ;;  %v5753_v18 = vunpack.i.l.bf16 %v5752_v16 }
 0x4cc   : > { %v1366_v23 = vpop.permute.xlu0 %1365 }
 0x4cd   : > { %v5595_v19 = vpack.c.bf16 %v5754_v17, %v5753_v18 }
 0x4ce   : > { %v1372_v20 = vpop.permute.xlu1 %1371 }
 0x4d1   : > { %5137 = vmatpush3.xpose.msk.msra.mxu1 %vm1130_vm6, %v1129_v13 }
 0x4d2   : > { %5594 = vmatprep.subr.bf16.mxu1 %v6031_v26  ;;  %v1364_v22 = vpop.permute.xlu1 %1363 }
 0x4d4   : > { %5139 = vmatmul.mubr.msk.f32.vlgmr.msra.gmra.mrb[6].mxu1 %vm1130_vm6, %v6347_v7 }
 0x4d5   : > { %5597 = vmatpush3.bf16.xpose.msk.msra.mxu1 %vm6366_vm7, %v5595_v19  ;;  %5141 = vmatprep.mubr.msk.f32.mxu1 %vm6032_vm2, %v6033_v27 }
 0x4d6   : > { %5166 = vmatprep.subr.mxu1 %v6033_v27 }
 0x4d8   : > { %5142 = vmatmul.mubr.msk.f32.gmra.mrb[8].mxu1 %vm1130_vm6, %v6360_v9 }
 0x4d9   : > { %5144 = vmatprep.mubr.msk.f32.mxu1 %vm6032_vm2, %v6033_v27 }
 0x4dc   : > { %5145 = vmatmul.mubr.msk.f32.gmra.mrb[10].mxu1 %vm1130_vm6, %v6354_v8 }
 0x4dd   : > { %5167 = vmatpush3.xpose.msk.msra.mxu1 %vm1130_vm6, %v1372_v20  ;;  %5168 = vmatprep.mubr.msk.f32.mxu1 %vm6032_vm2, %v6033_v27 }
 0x4de   : > { %5192 = vmatprep.subr.mxu1 %v6033_v27 }
 0x4e0   : > { %5169 = vmatmul.mubr.msk.f32.vlgmr.msra.gmra.mrb[12].mxu1 %vm1130_vm6, %v1362_v21 }
 0x4e1   : > { %5171 = vmatprep.mubr.msk.f32.mxu1 %vm6032_vm2, %v6033_v27 }
 0x4e4   : > { %5172 = vmatmul.mubr.msk.f32.gmra.mrb[14].mxu1 %vm1130_vm6, %v1364_v22 }
 0x4e5   : > { %5174 = vmatprep.mubr.msk.f32.mxu1 %vm6032_vm2, %v6033_v27 }
 0x4e8   : > { %5175 = vmatmul.mubr.msk.f32.gmra.mrb[16].mxu1 %vm1130_vm6, %v1366_v23 }
 0x4e9   : > { %5194 = vmatprep.mubr.msk.f32.mxu1 %vm6032_vm2, %v6033_v27 }
 0x5a7   : > { %v1212_v24 = vpop.f32.mrb[6].mxu1 }
 0x5a8   : > { %v5140_v25 = vpop.f32.mrb[7].mxu1  ;;  %v1227_v28 = vsel %vm1226_vm8, %v1212_v24, -inf }
 0x5a9   : > { %1228 = vmax.xlane.f32.xlu1 %v1227_v28 }
 0x5ab   : > { %v1217_v29 = vpop.f32.mrb[8].mxu1 }
 0x5ac   : > { %v5143_v30 = vpop.f32.mrb[9].mxu1  ;;  %v1230_v31 = vsel %vm1226_vm8, %v1217_v29, -inf }
 0x5ad   : > { %1231 = vmax.xlane.f32.xlu0 %v1230_v31 }
 0x5af   : > { %v1222_v32 = vpop.f32.mrb[10].mxu1 }
 0x5b0   : > { %v5146_v33 = vpop.f32.mrb[11].mxu1  ;;  %v1234_v34 = vsel %vm1233_vm9, %v1222_v32, -inf }
 0x5b1   : > { %1235 = vmax.xlane.f32.xlu0 %v1234_v34 }
 0x5b3   : > { %v1451_v35 = vpop.f32.mrb[12].mxu1 }
 0x5b4   : > { %v5170_v36 = vpop.f32.mrb[13].mxu1  ;;  %v1465_v37 = vsel %vm1226_vm8, %v1451_v35, -inf }
 0x5b5   : > { %1466 = vmax.xlane.f32.xlu0 %v1465_v37 }
 0x5b7   : > { %v1456_v38 = vpop.f32.mrb[14].mxu1 }
 0x5b8   : > { %v5173_v39 = vpop.f32.mrb[15].mxu1  ;;  %v1468_v40 = vsel %vm1226_vm8, %v1456_v38, -inf }
 0x5b9   : > { %1469 = vmax.xlane.f32.xlu1 %v1468_v40 }
 0x5bb   : > { %v1461_v41 = vpop.f32.mrb[16].mxu1 }
 0x5bc   : > { %v5176_v42 = vpop.f32.mrb[17].mxu1  ;;  %v1471_v43 = vsel %vm1233_vm9, %v1461_v41, -inf }
 0x5bd   : > { %1472 = vmax.xlane.f32.xlu0 %v1471_v43 }
 0x5ca   : > { %1265 = vrot.lane.b32.xlu1 %v6341_v5, %s7236_s26 }
 0x5d3   : > { %5756 = vrot.lane.b32.xlu0 %v6339_v3, %s7236_s26 }
 0x636   : > { %v1229_v44 = vpop.xlane.xlu1 %1228 }
 0x637   : > { %v1237_v45 = vsub.f32 %v1212_v24, %v1229_v44 }
 0x639   : > { %v1240_v46 = vmul.f32 1.442695, %v1237_v45 }
 0x63a   : > { %v1232_v47 = vpop.xlane.xlu0 %1231 }
 0x63b   : > { %5837 = vpow2.f32 %v1240_v46  ;;  %v1238_v48 = vsub.f32 %v1217_v29, %v1232_v47 }
 0x63d   : > { %v1242_v50 = vmul.f32 1.442695, %v1238_v48 }
 0x63e   : > { %v1236_v51 = vpop.xlane.xlu0 %1235 }
 0x63f   : > { %5839 = vpow2.f32 %v1242_v50  ;;  %v1239_v52 = vsub.f32 %v1222_v32, %v1236_v51  ;;  %v1114_v50 = vld [vmem:[%s7196_s11] sm:$0xff]  ;;  %v1115_v51 = vld [vmem:[%s7196_s11 + $0x8] sm:$0xff] }
 0x640   : > { %5193 = vmatpush3.msra.mxu1 %v1115_v51 }
 0x641   : > { %v1244_v53 = vmul.f32 1.442695, %v1239_v52  ;;  %5601 = vmatprep.subr.bf16.mxu1 %v6031_v26 }
 0x642   : > { %v1467_v54 = vpop.xlane.xlu0 %1466 }
 0x643   : > { %5841 = vpow2.f32 %v1244_v53  ;;  %v1474_v56 = vsub.f32 %v1451_v35, %v1467_v54 }
 0x645   : > { %v5838_v57 = vpop.eup %5837  ;;  %v1477_v58 = vmul.f32 1.442695, %v1474_v56 }
 0x646   : > { %v1470_v60 = vpop.xlane.xlu1 %1469  ;;  %v1246_v61 = vsel %vm1226_vm8, %v5838_v57, 0.0 }
 0x647   : > { %5843 = vpow2.f32 %v1477_v58  ;;  %v1475_v62 = vsub.f32 %v1456_v38, %v1470_v60  ;;  %1247 = vadd.xlane.f32.xlu1 %v1246_v61 }
 0x649   : > { %v5840_v63 = vpop.eup %5839  ;;  %v1479_v0 = vmul.f32 1.442695, %v1475_v62 }
 0x64a   : > { %v1473_v1 = vpop.xlane.xlu0 %1472  ;;  %v1249_v2 = vsel %vm1226_vm8, %v5840_v63, 0.0  ;;  %v1266_v20 = vpop.permute.xlu1 %1265 }
 0x64b   : > { %5845 = vpow2.f32 %v1479_v0  ;;  %v1476_v4 = vsub.f32 %v1461_v41, %v1473_v1  ;;  %1250 = vadd.xlane.f32.xlu0 %v1249_v2 }
 0x64d   : > { %v5842_v6 = vpop.eup %5841  ;;  %v1481_v10 = vmul.f32 1.442695, %v1476_v4 }
 0x64e   : > { %v5757_v11 = vpop.permute.xlu0 %5756  ;;  %v1252_v12 = vsel %vm1233_vm9, %v5842_v6, 0.0 }
 0x64f   : > { %5847 = vpow2.f32 %v1481_v10  ;;  %v5759_v13 = vunpack.i.h.bf16 %v5757_v11  ;;  %v5758_v15 = vunpack.i.l.bf16 %v5757_v11  ;;  %1253 = vadd.xlane.f32.xlu1 %v1252_v12 }
 0x651   : > { %v5844_v16 = vpop.eup %5843  ;;  %v5592_v17 = vpack.c.bf16 %v5759_v13, %v5758_v15 }
 0x652   : > { %v1483_v18 = vsel %vm1226_vm8, %v5844_v16, 0.0 }
 0x653   : > { %1484 = vadd.xlane.f32.xlu0 %v1483_v18  ;;  %5593 = vmatpush3.bf16.msra.mxu0 %v5592_v17 }
 0x654   : > { %5151 = vmatprep.subr.mxu0 %v6033_v27 }
 0x655   : > { %v5846_v19 = vpop.eup %5845 }
 0x656   : > { %v1486_v21 = vsel %vm1226_vm8, %v5846_v19, 0.0 }
 0x657   : > { %1487 = vadd.xlane.f32.xlu1 %v1486_v21  ;;  %5152 = vmatpush3.msk.msra.mxu0 %vm1278_vm10, %v1266_v20 }
 0x658   : > { %5598 = vmatprep.subr.bf16.mxu0 %v6031_v26 }
 0x659   : > { %v5848_v22 = vpop.eup %5847 }
 0x65a   : > { %v1489_v23 = vsel %vm1233_vm9, %v5848_v22, 0.0 }
 0x65b   : > { %1490 = vadd.xlane.f32.xlu1 %v1489_v23 }
 0x669   : > { %1502 = vrot.lane.b32.xlu0 %v6341_v5, %s7234_s5 }
 0x66c   : > { %5761 = vrot.lane.b32.xlu1 %v6339_v3, %s7234_s5 }
 0x66d   : > { %1785 = vrot.lane.b32.xlu0 %v6341_v5, %s7232_s0 }
 0x670   : > { %5766 = vrot.lane.b32.xlu1 %v6339_v3, %s7232_s0 }
 0x671   : > { %1777 = vrot.lane.b32.xlu0 %v6360_v9, %s7230_s3 }
 0x674   : > { %1775 = vrot.lane.b32.xlu1 %v6347_v7, %s7230_s3 }
 0x678   : > { %1779 = vrot.lane.b32.xlu1 %v6354_v8, %s7230_s3  ;;  %s7274_s3 = smov 48  }
 0x6d4   : > { %v1248_v24 = vpop.xlane.xlu1 %1247 }
 0x6d5   : > { %5849 = vrcp.f32 %v1248_v24 }
 0x6d8   : > { %v1251_v25 = vpop.xlane.xlu0 %1250 }
 0x6d9   : > { %5851 = vrcp.f32 %v1251_v25 }
 0x6dc   : > { %v1254_v28 = vpop.xlane.xlu1 %1253 }
 0x6dd   : > { %5853 = vrcp.f32 %v1254_v28 }
 0x6df   : > { %v5850_v29 = vpop.eup %5849 }
 0x6e0   : > { %v1258_v30 = vmul.f32 %v5850_v29, %v5838_v57  ;;  %v1485_v32 = vpop.xlane.xlu0 %1484 }
 0x6e1   : > { %5855 = vrcp.f32 %v1485_v32 }
 0x6e2   : > { %5154 = vmatmul.mubr.msk.f32.vlgmr.msra.gmra.mrb[6].mxu0 %vm1226_vm8, %v1258_v30 }
 0x6e3   : > { %v5852_v31 = vpop.eup %5851  ;;  %5156 = vmatprep.mubr.msk.f32.mxu0 %vm6032_vm2, %v6033_v27 }
 0x6e4   : > { %v1488_v33 = vpop.xlane.xlu1 %1487  ;;  %v1259_v34 = vmul.f32 %v5852_v31, %v5840_v63  ;;  %v1503_v44 = vpop.permute.xlu0 %1502 }
 0x6e5   : > { %5857 = vrcp.f32 %v1488_v33 }
 0x6e6   : > { %5157 = vmatmul.mubr.msk.f32.gmra.mrb[8].mxu0 %vm1226_vm8, %v1259_v34 }
 0x6e7   : > { %v5854_v35 = vpop.eup %5853  ;;  %5159 = vmatprep.mubr.msk.f32.mxu0 %vm6032_vm2, %v6033_v27 }
 0x6e8   : > { %v1491_v36 = vpop.xlane.xlu1 %1490  ;;  %v1260_v37 = vmul.f32 %v5854_v35, %v5842_v6  ;;  %v1786_v10 = vpop.permute.xlu0 %1785 }
 0x6e9   : > { %5859 = vrcp.f32 %v1491_v36 }
 0x6ea   : > { %5160 = vmatmul.mubr.msk.f32.gmra.mrb[10].mxu0 %vm1226_vm8, %v1260_v37 }
 0x6eb   : > { %5183 = vmatprep.mubr.msk.f32.mxu0 %vm6032_vm2, %v6033_v27  ;;  %v5856_v42 = vpop.eup %5855 }
 0x6ec   : > { %v5762_v38 = vpop.permute.xlu1 %5761  ;;  %v1495_v43 = vmul.f32 %v5856_v42, %v5844_v16  ;;  %v1778_v13 = vpop.permute.xlu0 %1777 }
 0x6ed   : > { %v5764_v39 = vunpack.i.h.bf16 %v5762_v38  ;;  %v5763_v40 = vunpack.i.l.bf16 %v5762_v38 }
 0x6ef   : > { %v5599_v41 = vpack.c.bf16 %v5764_v39, %v5763_v40  ;;  %v5858_v45 = vpop.eup %5857 }
 0x6f0   : > { %v1496_v46 = vmul.f32 %v5858_v45, %v5846_v19  ;;  %v5767_v60 = vpop.permute.xlu1 %5766 }
 0x6f1   : > { %5600 = vmatpush3.bf16.msra.mxu0 %v5599_v41  ;;  %v5769_v61 = vunpack.i.h.bf16 %v5767_v60  ;;  %v5768_v62 = vunpack.i.l.bf16 %v5767_v60 }
 0x6f2   : > { %5181 = vmatprep.subr.mxu0 %v6033_v27 }
 0x6f3   : > { %v5860_v47 = vpop.eup %5859  ;;  %v5602_v63 = vpack.c.bf16 %v5769_v61, %v5768_v62 }
 0x6f4   : > { %v1497_v48 = vmul.f32 %v5860_v47, %v5848_v22  ;;  %v1776_v12 = vpop.permute.xlu1 %1775 }
 0x6f5   : > { %5182 = vmatpush3.msk.msra.mxu0 %vm1278_vm10, %v1503_v44 }
 0x6f6   : > { %5184 = vmatmul.mubr.msk.f32.vlgmr.msra.gmra.mrb[12].mxu0 %vm1226_vm8, %v1495_v43  ;;  %5203 = vmatprep.subr.mxu0 %v6033_v27 }
 0x6f7   : > { %5186 = vmatprep.mubr.msk.f32.mxu0 %vm6032_vm2, %v6033_v27  ;;  %5204 = vmatpush3.msra.mxu0 %v1114_v50 }
 0x6f8   : > { %5605 = vmatprep.subr.bf16.mxu0 %v6031_v26  ;;  %v1780_v15 = vpop.permute.xlu1 %1779 }
 0x6fa   : > { %5187 = vmatmul.mubr.msk.f32.gmra.mrb[14].mxu0 %vm1226_vm8, %v1496_v46 }
 0x6fb   : > { %5189 = vmatprep.mubr.msk.f32.mxu0 %vm6032_vm2, %v6033_v27 }
 0x6fe   : > { %5190 = vmatmul.mubr.msk.f32.gmra.mrb[16].mxu0 %vm1226_vm8, %v1497_v48 }
 0x6ff   : > { %5205 = vmatprep.mubr.msk.f32.mxu0 %vm6032_vm2, %v6033_v27 }
 0x7b5   : > { %v1347_v52 = vpop.f32.mrb[6].mxu0 }
 0x7b6   : > { %v5155_v53 = vpop.f32.mrb[7].mxu0  ;;  %5206 = vmatmul.mubr.msk.f32.vlgmr.msra.gmra.mrb[18].mxu0 %vm1130_vm6, %v1347_v52 }
 0x7b7   : > { %5208 = vmatprep.mubr.msk.f32.mxu0 %vm6032_vm2, %v6033_v27 }
 0x7b9   : > { %v1352_v54 = vpop.f32.mrb[8].mxu0 }
 0x7ba   : > { %v5158_v56 = vpop.f32.mrb[9].mxu0  ;;  %5209 = vmatmul.mubr.msk.f32.gmra.mrb[20].mxu0 %vm1130_vm6, %v1352_v54 }
 0x7bb   : > { %5211 = vmatprep.mubr.msk.f32.mxu0 %vm6032_vm2, %v6033_v27 }
 0x7bd   : > { %v1357_v57 = vpop.f32.mrb[10].mxu0 }
 0x7be   : > { %v5161_v58 = vpop.f32.mrb[11].mxu0  ;;  %5212 = vmatmul.mubr.msk.f32.gmra.mrb[22].mxu0 %vm1130_vm6, %v1357_v57 }
 0x7bf   : > { %5235 = vmatprep.mubr.msk.f32.mxu0 %vm6032_vm2, %v6033_v27 }
 0x7c9   : > { %v1583_v0 = vpop.f32.mrb[12].mxu0 }
 0x7ca   : > { %v5185_v1 = vpop.f32.mrb[13].mxu0  ;;  %5195 = vmatmul.mubr.msk.f32.vlgmr.msra.gmra.mrb[18].mxu1 %vm1130_vm6, %v1583_v0 }
 0x7cb   : > { %5604 = vmatpush3.bf16.xpose.msk.msra.mxu1 %vm6366_vm7, %v5602_v63  ;;  %5197 = vmatprep.mubr.msk.f32.mxu1 %vm6032_vm2, %v6033_v27 }
 0x7cc   : > { %5218 = vmatprep.subr.mxu1 %v6033_v27 }
 0x7cd   : > { %v1588_v2 = vpop.f32.mrb[14].mxu0 }
 0x7ce   : > { %v5188_v4 = vpop.f32.mrb[15].mxu0  ;;  %5198 = vmatmul.mubr.msk.f32.gmra.mrb[20].mxu1 %vm1130_vm6, %v1588_v2 }
 0x7cf   : > { %5200 = vmatprep.mubr.msk.f32.mxu1 %vm6032_vm2, %v6033_v27 }
 0x7d1   : > { %v1593_v6 = vpop.f32.mrb[16].mxu0 }
 0x7d2   : > { %v5191_v11 = vpop.f32.mrb[17].mxu0  ;;  %5201 = vmatmul.mubr.msk.f32.gmra.mrb[22].mxu1 %vm1130_vm6, %v1593_v6 }
 0x7d3   : > { %5219 = vmatpush3.xpose.msk.msra.mxu1 %vm1130_vm6, %v1786_v10  ;;  %5220 = vmatprep.mubr.msk.f32.mxu1 %vm6032_vm2, %v6033_v27 }
 0x7d4   : > { %5244 = vmatprep.subr.mxu1 %v6033_v27 }
 0x7d6   : > { %5221 = vmatmul.mubr.msk.f32.vlgmr.msra.gmra.mrb[24].mxu1 %vm1130_vm6, %v1776_v12 }
 0x7d7   : > { %5223 = vmatprep.mubr.msk.f32.mxu1 %vm6032_vm2, %v6033_v27 }
 0x7da   : > { %5224 = vmatmul.mubr.msk.f32.gmra.mrb[26].mxu1 %vm1130_vm6, %v1778_v13 }
 0x7db   : > { %5226 = vmatprep.mubr.msk.f32.mxu1 %vm6032_vm2, %v6033_v27 }
 0x7de   : > { %5227 = vmatmul.mubr.msk.f32.gmra.mrb[28].mxu1 %vm1130_vm6, %v1780_v15 }
 0x7df   : > { %5246 = vmatprep.mubr.msk.f32.mxu1 %vm6032_vm2, %v6033_v27 }
 0x889   : > { %v1761_v16 = vpop.f32.mrb[18].mxu0 }
 0x88a   : > { %v5207_v17 = vpop.f32.mrb[19].mxu0 }
 0x88d   : > { %v1766_v18 = vpop.f32.mrb[20].mxu0 }
 0x88e   : > { %v5210_v19 = vpop.f32.mrb[21].mxu0 }
 0x891   : > { %v1771_v20 = vpop.f32.mrb[22].mxu0 }
 0x892   : > { %v5213_v21 = vpop.f32.mrb[23].mxu0 }
 0x893   : > { %v1116_v21 = vld [vmem:[%s7196_s11 + $0x10] sm:$0xff] }
 0x894   : > { %5245 = vmatpush3.msra.mxu1 %v1116_v21 }
 0x895   : > { %5612 = vmatprep.subr.bf16.mxu1 %v6031_v26 }
 0x89d   : > { %v1672_v22 = vpop.f32.mrb[18].mxu1 }
 0x89e   : > { %v6495_v23 = vadd.f32 %v1761_v16, %v1672_v22  ;;  %v5196_v24 = vpop.f32.mrb[19].mxu1 }
 0x8a1   : > { %v1677_v25 = vpop.f32.mrb[20].mxu1 }
 0x8a2   : > { %v6497_v28 = vadd.f32 %v1766_v18, %v1677_v25  ;;  %v5199_v29 = vpop.f32.mrb[21].mxu1 }
 0x8a5   : > { %v1682_v30 = vpop.f32.mrb[22].mxu1 }
 0x8a6   : > { %v6499_v31 = vadd.f32 %v1771_v20, %v1682_v30  ;;  %v5202_v32 = vpop.f32.mrb[23].mxu1 }
 0x8a9   : > { %v1865_v33 = vpop.f32.mrb[24].mxu1 }
 0x8aa   : > { %v5222_v34 = vpop.f32.mrb[25].mxu1  ;;  %v1879_v35 = vsel %vm1226_vm8, %v1865_v33, -inf }
 0x8ab   : > { %1880 = vmax.xlane.f32.xlu0 %v1879_v35 }
 0x8ad   : > { %v1870_v36 = vpop.f32.mrb[26].mxu1 }
 0x8ae   : > { %v5225_v37 = vpop.f32.mrb[27].mxu1  ;;  %v1882_v38 = vsel %vm1226_vm8, %v1870_v36, -inf }
 0x8af   : > { %1883 = vmax.xlane.f32.xlu1 %v1882_v38 }
 0x8b1   : > { %v1875_v39 = vpop.f32.mrb[28].mxu1 }
 0x8b2   : > { %v5228_v40 = vpop.f32.mrb[29].mxu1  ;;  %v1885_v41 = vsel %vm1233_vm9, %v1875_v39, -inf }
 0x8b3   : > { %1886 = vmax.xlane.f32.xlu0 %v1885_v41 }
 0x8c0   : > { %1916 = vrot.lane.b32.xlu1 %v6341_v5, %s7228_s29 }
 0x8c4   : > { %5776 = vrot.lane.b32.xlu1 %v6339_v3, %s7224_s30 }
 0x8c8   : > { %2113 = vrot.lane.b32.xlu1 %v6341_v5, %s7224_s30  ;;  %s7273_s30 = smov 112  }
 0x938   : > { %v1881_v42 = vpop.xlane.xlu0 %1880 }
 0x939   : > { %v1888_v43 = vsub.f32 %v1865_v33, %v1881_v42 }
 0x93b   : > { %v1891_v44 = vmul.f32 1.442695, %v1888_v43 }
 0x93c   : > { %v1884_v45 = vpop.xlane.xlu1 %1883 }
 0x93d   : > { %5861 = vpow2.f32 %v1891_v44  ;;  %v1889_v46 = vsub.f32 %v1870_v36, %v1884_v45 }
 0x93f   : > { %v1893_v47 = vmul.f32 1.442695, %v1889_v46 }
 0x940   : > { %v1887_v48 = vpop.xlane.xlu0 %1886  ;;  %v1917_v60 = vpop.permute.xlu1 %1916 }
 0x941   : > { %5863 = vpow2.f32 %v1893_v47  ;;  %v1890_v50 = vsub.f32 %v1875_v39, %v1887_v48 }
 0x943   : > { %v1895_v51 = vmul.f32 1.442695, %v1890_v50 }
 0x944   : > { %v5777_v61 = vpop.permute.xlu1 %5776 }
 0x945   : > { %5865 = vpow2.f32 %v1895_v51  ;;  %v5778_v12 = vunpack.i.l.bf16 %v5777_v61 }
 0x947   : > { %v5862_v52 = vpop.eup %5861 }
 0x948   : > { %v1897_v53 = vsel %vm1226_vm8, %v5862_v52, 0.0  ;;  %v2114_v63 = vpop.permute.xlu1 %2113 }
 0x949   : > { %1898 = vadd.xlane.f32.xlu0 %v1897_v53 }
 0x94b   : > { %v5864_v54 = vpop.eup %5863 }
 0x94c   : > { %v1900_v56 = vsel %vm1226_vm8, %v5864_v54, 0.0 }
 0x94d   : > { %1901 = vadd.xlane.f32.xlu0 %v1900_v56 }
 0x94f   : > { %v5866_v57 = vpop.eup %5865 }
 0x950   : > { %v1903_v58 = vsel %vm1233_vm9, %v5866_v57, 0.0 }
 0x951   : > { %1904 = vadd.xlane.f32.xlu1 %v1903_v58 }
 0x962   : > { %2105 = vrot.lane.b32.xlu1 %v6360_v9, %s7222_s28 }
 0x963   : > { %5771 = vrot.lane.b32.xlu0 %v6339_v3, %s7228_s29  ;;  %s7275_s29 = smov 72  }
 0x967   : > { %2103 = vrot.lane.b32.xlu0 %v6347_v7, %s7222_s28 }
 0x96b   : > { %2107 = vrot.lane.b32.xlu0 %v6354_v8, %s7222_s28  ;;  %v5779_v8 = vunpack.i.h.bf16 %v5777_v61  ;;  %s7226_s28 = smov 40  }
 0x96d   : > { %v5609_v16 = vpack.c.bf16 %v5779_v8, %v5778_v12 }
 0x9d6   : > { %v1899_v62 = vpop.xlane.xlu0 %1898 }
 0x9d7   : > { %5867 = vrcp.f32 %v1899_v62 }
 0x9da   : > { %v1902_v0 = vpop.xlane.xlu0 %1901 }
 0x9db   : > { %5869 = vrcp.f32 %v1902_v0  ;;  %v1117_v0 = vld [vmem:[%s7196_s11 + $0x18] sm:$0xff] }
 0x9de   : > { %v1905_v1 = vpop.xlane.xlu1 %1904  ;;  %v5772_v2 = vpop.permute.xlu0 %5771 }
 0x9df   : > { %v5774_v4 = vunpack.i.h.bf16 %v5772_v2  ;;  %v5773_v9 = vunpack.i.l.bf16 %v5772_v2  ;;  %5871 = vrcp.f32 %v1905_v1 }
 0x9e1   : > { %v5606_v6 = vpack.c.bf16 %v5774_v4, %v5773_v9  ;;  %v5868_v10 = vpop.eup %5867 }
 0x9e2   : > { %v1909_v7 = vmul.f32 %v5868_v10, %v5862_v52  ;;  %v2104_v18 = vpop.permute.xlu0 %2103  ;;  %v2106_v19 = vpop.permute.xlu1 %2105 }
 0x9e3   : > { %5607 = vmatpush3.bf16.msra.mxu0 %v5606_v6 }
 0x9e4   : > { %5233 = vmatprep.subr.mxu0 %v6033_v27 }
 0x9e5   : > { %v5870_v11 = vpop.eup %5869 }
 0x9e6   : > { %v1910_v13 = vmul.f32 %v5870_v11, %v5864_v54  ;;  %v2108_v20 = vpop.permute.xlu0 %2107 }
 0x9e7   : > { %5234 = vmatpush3.msk.msra.mxu0 %vm1278_vm10, %v1917_v60 }
 0x9e8   : > { %5236 = vmatmul.mubr.msk.f32.vlgmr.msra.gmra.mrb[24].mxu0 %vm1226_vm8, %v1909_v7  ;;  %5608 = vmatprep.subr.bf16.mxu0 %v6031_v26 }
 0x9e9   : > { %5238 = vmatprep.mubr.msk.f32.mxu0 %vm6032_vm2, %v6033_v27  ;;  %v5872_v15 = vpop.eup %5871 }
 0x9ea   : > { %v1911_v17 = vmul.f32 %v5872_v15, %v5866_v57 }
 0x9ec   : > { %5239 = vmatmul.mubr.msk.f32.gmra.mrb[26].mxu0 %vm1226_vm8, %v1910_v13 }
 0x9ed   : > { %5241 = vmatprep.mubr.msk.f32.mxu0 %vm6032_vm2, %v6033_v27 }
 0x9ee   : > { %5611 = vmatpush3.bf16.xpose.msk.msra.mxu0 %vm6366_vm7, %v5609_v16 }
 0x9ef   : > { %5259 = vmatprep.subr.mxu0 %v6033_v27 }
 0x9f0   : > { %5242 = vmatmul.mubr.msk.f32.gmra.mrb[28].mxu0 %vm1226_vm8, %v1911_v17 }
 0x9f1   : > { %5261 = vmatprep.mubr.msk.f32.mxu0 %vm6032_vm2, %v6033_v27 }
 0x9f6   : > { %5260 = vmatpush3.xpose.msk.msra.mxu0 %vm1130_vm6, %v2114_v63 }
 0x9f7   : > { %5285 = vmatprep.subr.mxu0 %v6033_v27 }
 0x9f9   : > { %5262 = vmatmul.mubr.msk.f32.vlgmr.msra.gmra.mrb[30].mxu0 %vm1130_vm6, %v2104_v18 }
 0x9fa   : > { %5264 = vmatprep.mubr.msk.f32.mxu0 %vm6032_vm2, %v6033_v27  ;;  %5286 = vmatpush3.msra.mxu0 %v1117_v0  ;;  %v2504_v0 = vld [vmem:[%s7200_s15 + $0x8] sm:$0xff] }
 0x9fb   : > { %5621 = vmatprep.subr.bf16.mxu0 %v6031_v26 }
 0x9fd   : > { %5265 = vmatmul.mubr.msk.f32.gmra.mrb[32].mxu0 %vm1130_vm6, %v2106_v19 }
 0x9fe   : > { %5267 = vmatprep.mubr.msk.f32.mxu0 %vm6032_vm2, %v6033_v27 }
 0xa01   : > { %5268 = vmatmul.mubr.msk.f32.gmra.mrb[34].mxu0 %vm1130_vm6, %v2108_v20 }
 0xa02   : > { %5287 = vmatprep.mubr.msk.f32.mxu0 %vm6032_vm2, %v6033_v27 }
 0xabb   : > { %v1997_v22 = vpop.f32.mrb[24].mxu0 }
 0xabc   : > { %v5237_v24 = vpop.f32.mrb[25].mxu0  ;;  %5247 = vmatmul.mubr.msk.f32.vlgmr.msra.gmra.mrb[30].mxu1 %vm1130_vm6, %v1997_v22 }
 0xabd   : > { %5249 = vmatprep.mubr.msk.f32.mxu1 %vm6032_vm2, %v6033_v27 }
 0xabf   : > { %v2002_v25 = vpop.f32.mrb[26].mxu0 }
 0xac0   : > { %v5240_v29 = vpop.f32.mrb[27].mxu0  ;;  %5250 = vmatmul.mubr.msk.f32.gmra.mrb[32].mxu1 %vm1130_vm6, %v2002_v25 }
 0xac1   : > { %5252 = vmatprep.mubr.msk.f32.mxu1 %vm6032_vm2, %v6033_v27  ;;  %v4788_v29 = vld [vmem:[%s7197_s12] ss:$0 sm:$0xff] }
 0xac3   : > { %v2007_v30 = vpop.f32.mrb[28].mxu0 }
 0xac4   : > { %v5243_v32 = vpop.f32.mrb[29].mxu0  ;;  %5253 = vmatmul.mubr.msk.f32.gmra.mrb[34].mxu1 %vm1130_vm6, %v2007_v30 }
 0xac5   : > { %5276 = vmatprep.mubr.msk.f32.mxu1 %vm6032_vm2, %v6033_v27 }
 0xacc   : > { %v2193_v33 = vpop.f32.mrb[30].mxu0 }
 0xacd   : > { %v5263_v34 = vpop.f32.mrb[31].mxu0  ;;  %v2207_v35 = vsel %vm1226_vm8, %v2193_v33, -inf }
 0xace   : > { %2208 = vmax.xlane.f32.xlu1 %v2207_v35 }
 0xad0   : > { %v2198_v36 = vpop.f32.mrb[32].mxu0 }
 0xad1   : > { %v5266_v37 = vpop.f32.mrb[33].mxu0  ;;  %v2210_v38 = vsel %vm1226_vm8, %v2198_v36, -inf }
 0xad2   : > { %2211 = vmax.xlane.f32.xlu0 %v2210_v38 }
 0xad4   : > { %v2203_v39 = vpop.f32.mrb[34].mxu0 }
 0xad5   : > { %v5269_v40 = vpop.f32.mrb[35].mxu0  ;;  %v2213_v41 = vsel %vm1233_vm9, %v2203_v39, -inf }
 0xad6   : > { %2214 = vmax.xlane.f32.xlu0 %v2213_v41 }
 0xb5b   : > { %v2209_v42 = vpop.xlane.xlu1 %2208 }
 0xb5c   : > { %v2216_v43 = vsub.f32 %v2193_v33, %v2209_v42 }
 0xb5e   : > { %v2219_v44 = vmul.f32 1.442695, %v2216_v43 }
 0xb5f   : > { %v2212_v45 = vpop.xlane.xlu0 %2211 }
 0xb60   : > { %5873 = vpow2.f32 %v2219_v44  ;;  %v2217_v46 = vsub.f32 %v2198_v36, %v2212_v45 }
 0xb62   : > { %v2221_v47 = vmul.f32 1.442695, %v2217_v46 }
 0xb63   : > { %v2215_v48 = vpop.xlane.xlu0 %2214 }
 0xb64   : > { %5875 = vpow2.f32 %v2221_v47  ;;  %v2218_v50 = vsub.f32 %v2203_v39, %v2215_v48 }
 0xb66   : > { %v2223_v51 = vmul.f32 1.442695, %v2218_v50 }
 0xb68   : > { %5877 = vpow2.f32 %v2223_v51 }
 0xb6a   : > { %v5874_v52 = vpop.eup %5873 }
 0xb6b   : > { %v2225_v53 = vsel %vm1226_vm8, %v5874_v52, 0.0 }
 0xb6c   : > { %2226 = vadd.xlane.f32.xlu0 %v2225_v53 }
 0xb6e   : > { %v5876_v54 = vpop.eup %5875 }
 0xb6f   : > { %v2228_v56 = vsel %vm1226_vm8, %v5876_v54, 0.0 }
 0xb70   : > { %2229 = vadd.xlane.f32.xlu1 %v2228_v56 }
 0xb72   : > { %v5878_v57 = vpop.eup %5877 }
 0xb73   : > { %v2231_v58 = vsel %vm1233_vm9, %v5878_v57, 0.0 }
 0xb74   : > { %2232 = vadd.xlane.f32.xlu0 %v2231_v58 }
 0xb81   : > { %5781 = vrot.lane.b32.xlu1 %v6339_v3, %s7226_s28 }
 0xb8a   : > { %2244 = vrot.lane.b32.xlu0 %v6341_v5, %s7226_s28  ;;  %s7276_s28 = smov 104  }
 0xb8f   : > { %v2086_v60 = vpop.f32.mrb[30].mxu1 }
 0xb90   : > { %v2100_v61 = vadd.f32 %v2086_v60, %v6495_v23  ;;  %v5248_v62 = vpop.f32.mrb[31].mxu1 }
 0xb93   : > { %v2091_v63 = vpop.f32.mrb[32].mxu1 }
 0xb94   : > { %v2101_v1 = vadd.f32 %v2091_v63, %v6497_v28  ;;  %v5251_v2 = vpop.f32.mrb[33].mxu1  ;;  %v2503_v63 = vld [vmem:[%s7200_s15] sm:$0xff] }
 0xb95   : > { %v2505_v2 = vld [vmem:[%s7200_s15 + $0x10] sm:$0xff] }
 0xb97   : > { %v2096_v4 = vpop.f32.mrb[34].mxu1 }
 0xb98   : > { %v2102_v3 = vadd.f32 %v2096_v4, %v6499_v31  ;;  %v5254_v9 = vpop.f32.mrb[35].mxu1  ;;  %v2506_v4 = vld [vmem:[%s7200_s15 + $0x18] sm:$0xff] }
 0xbf9   : > { %v2227_v5 = vpop.xlane.xlu0 %2226 }
 0xbfa   : > { %5879 = vrcp.f32 %v2227_v5 }
 0xbfd   : > { %v2230_v6 = vpop.xlane.xlu1 %2229 }
 0xbfe   : > { %5881 = vrcp.f32 %v2230_v6 }
 0xc01   : > { %v5782_v23 = vpop.permute.xlu1 %5781  ;;  %v2233_v10 = vpop.xlane.xlu0 %2232 }
 0xc02   : > { %v5784_v7 = vunpack.i.h.bf16 %v5782_v23  ;;  %v5783_v11 = vunpack.i.l.bf16 %v5782_v23  ;;  %5883 = vrcp.f32 %v2233_v10 }
 0xc04   : > { %v5613_v8 = vpack.c.bf16 %v5784_v7, %v5783_v11  ;;  %v5880_v12 = vpop.eup %5879 }
 0xc05   : > { %v2237_v28 = vmul.f32 %v5880_v12, %v5874_v52  ;;  %v2245_v13 = vpop.permute.xlu0 %2244 }
 0xc06   : > { %5614 = vmatpush3.bf16.msra.mxu1 %v5613_v8 }
 0xc07   : > { %5274 = vmatprep.subr.mxu1 %v6033_v27 }
 0xc08   : > { %v5882_v15 = vpop.eup %5881 }
 0xc09   : > { %v2238_v31 = vmul.f32 %v5882_v15, %v5876_v54 }
 0xc0a   : > { %5275 = vmatpush3.msk.msra.mxu1 %vm1278_vm10, %v2245_v13  ;;  %v4789_v13 = vld [vmem:[%s7198_s13] ss:$0 sm:$0xff] }
 0xc0b   : > { %5277 = vmatmul.mubr.msk.f32.vlgmr.msra.gmra.mrb[36].mxu1 %vm1226_vm8, %v2237_v28  ;;  %5615 = vmatprep.subr.bf16.mxu1 %v6031_v26 }
 0xc0c   : > { %5279 = vmatprep.mubr.msk.f32.mxu1 %vm6032_vm2, %v6033_v27  ;;  %v5884_v16 = vpop.eup %5883 }
 0xc0d   : > { %v2239_v17 = vmul.f32 %v5884_v16, %v5878_v57 }
 0xc0f   : > { %5280 = vmatmul.mubr.msk.f32.gmra.mrb[38].mxu1 %vm1226_vm8, %v2238_v31  ;;  %v4790_v31 = vld [vmem:[%s7199_s14] ss:$0 sm:$0xff] }
 0xc10   : > { %5282 = vmatprep.mubr.msk.f32.mxu1 %vm6032_vm2, %v6033_v27 }
 0xc13   : > { %5283 = vmatmul.mubr.msk.f32.gmra.mrb[40].mxu1 %vm1226_vm8, %v2239_v17 }
 0xc14   : > { %5304 = vmatprep.mubr.msk.f32.mxu1 %vm6032_vm2, %v6033_v27 }
 0xcde   : > { %v2325_v18 = vpop.f32.mrb[36].mxu1 }
 0xcdf   : > { %v5278_v19 = vpop.f32.mrb[37].mxu1  ;;  %5288 = vmatmul.mubr.msk.f32.vlgmr.msra.gmra.mrb[36].mxu0 %vm1130_vm6, %v2325_v18 }
 0xce0   : > { %5290 = vmatprep.mubr.msk.f32.mxu0 %vm6032_vm2, %v6033_v27 }
 0xce2   : > { %v2330_v20 = vpop.f32.mrb[38].mxu1 }
 0xce3   : > { %v5281_v21 = vpop.f32.mrb[39].mxu1  ;;  %5291 = vmatmul.mubr.msk.f32.gmra.mrb[38].mxu0 %vm1130_vm6, %v2330_v20 }
 0xce4   : > { %5293 = vmatprep.mubr.msk.f32.mxu0 %vm6032_vm2, %v6033_v27 }
 0xce6   : > { %v2335_v22 = vpop.f32.mrb[40].mxu1 }
 0xce7   : > { %v5284_v24 = vpop.f32.mrb[41].mxu1  ;;  %5294 = vmatmul.mubr.msk.f32.gmra.mrb[40].mxu0 %vm1130_vm6, %v2335_v22 }
 0xce8   : > { %5329 = vmatprep.mubr.msk.f32.mxu0 %vm6032_vm2, %v6033_v27 }
 0xdb2   : > { %v2414_v25 = vpop.f32.mrb[36].mxu0 }
 0xdb3   : > { %v2428_v30 = vadd.f32 %v2414_v25, %v2100_v61  ;;  %v5289_v32 = vpop.f32.mrb[37].mxu0 }
 0xdb4   : > { %v2631_v32 = vld [vmem:[%s7202_s17 + $0x8] sm:$0xff] }
 0xdb5   : > { %v2438_v33 = vadd.f32 %v4788_v29, %v2428_v30  ;;  %v2630_v30 = vld [vmem:[%s7202_s17] sm:$0xff] }
 0xdb6   : > { %v2419_v34 = vpop.f32.mrb[38].mxu0 }
 0xdb7   : > { %v2429_v35 = vadd.f32 %v2419_v34, %v2101_v1  ;;  %v5292_v36 = vpop.f32.mrb[39].mxu0  ;;  %v2441_v37 = vadd.f32 %v2438_v33, %v6312_v49  ;;  %v5616_v1 = vpack.c.bf16 %v2504_v0, %v2503_v63  ;;  %v5622_v33 = vpack.c.bf16 %v2631_v32, %v2630_v30  ;;  %v2632_v34 = vld [vmem:[%s7202_s17 + $0x10] sm:$0xff] }
 0xdb9   : > { %v2439_v38 = vadd.f32 %v4788_v29, %v2429_v35  ;;  %v2446_v39 = vsel %vm931_vm3, %v2441_v37, 0.0  ;;  %5617 = vmatpush3.bf16.msra.mxu1 %v5616_v1  ;;  %5623 = vmatpush3.bf16.msra.mxu0 %v5622_v33  ;;  %v2633_v35 = vld [vmem:[%s7202_s17 + $0x18] sm:$0xff] }
 0xdba   : > { %2447 = vadd.xlane.f32.xlu1 %v2446_v39  ;;  %v2424_v40 = vpop.f32.mrb[40].mxu0  ;;  %5618 = vmatprep.subr.bf16.mxu1 %v6031_v26  ;;  %v5625_v36 = vpack.c.bf16 %v2633_v35, %v2632_v34 }
 0xdbb   : > { %v2430_v41 = vadd.f32 %v2424_v40, %v2102_v3  ;;  %v5295_v42 = vpop.f32.mrb[41].mxu0  ;;  %v2442_v43 = vadd.f32 %v2439_v38, %v6321_v55  ;;  %v5619_v3 = vpack.c.bf16 %v2506_v4, %v2505_v2  ;;  %5624 = vmatprep.subr.bf16.mxu0 %v6031_v26  ;;  %v2635_v38 = vld [vmem:[%s7202_s17 + $0x28] sm:$0xff]  ;;  %v2636_v40 = vld [vmem:[%s7202_s17 + $0x30] sm:$0xff] }
 0xdbd   : > { %v2440_v44 = vadd.f32 %v4788_v29, %v2430_v41  ;;  %v2449_v45 = vsel %vm931_vm3, %v2442_v43, 0.0  ;;  %5620 = vmatpush3.bf16.msra.mxu1 %v5619_v3  ;;  %5626 = vmatpush3.bf16.msra.mxu0 %v5625_v36  ;;  %v2637_v41 = vld [vmem:[%s7202_s17 + $0x38] sm:$0xff] }
 0xdbe   : > { %2450 = vadd.xlane.f32.xlu0 %v2449_v45  ;;  %5633 = vmatprep.subr.bf16.mxu1 %v6031_v26  ;;  %v5631_v42 = vpack.c.bf16 %v2637_v41, %v2636_v40 }
 0xdbf   : > { %v2443_v46 = vadd.f32 %v2440_v44, %v6330_v59  ;;  %5627 = vmatprep.subr.bf16.mxu0 %v6031_v26 }
 0xdc1   : > { %v2452_v47 = vsel %vm938_vm4, %v2443_v46, 0.0 }
 0xdc2   : > { %2453 = vadd.xlane.f32.xlu1 %v2452_v47 }
 0xe47   : > { %v2448_v48 = vpop.xlane.xlu1 %2447 }
 0xe48   : > { %v2455_v49 = vmul.f32 0.03125, %v2448_v48 }
 0xe4a   : > { %v2458_v50 = vsub.f32 %v2441_v37, %v2455_v49  ;;  %v2634_v37 = vld [vmem:[%s7202_s17 + $0x20] sm:$0xff] }
 0xe4b   : > { %v2451_v51 = vpop.xlane.xlu0 %2450  ;;  %v5628_v39 = vpack.c.bf16 %v2635_v38, %v2634_v37 }
 0xe4c   : > { %v2456_v52 = vmul.f32 0.03125, %v2451_v51  ;;  %v2461_v53 = vmul.f32 %v2458_v50, %v2458_v50 }
 0xe4d   : > { %5629 = vmatpush3.bf16.msra.mxu0 %v5628_v39 }
 0xe4e   : > { %v2459_v54 = vsub.f32 %v2442_v43, %v2456_v52  ;;  %v2464_v56 = vsel %vm931_vm3, %v2461_v53, 0.0  ;;  %5630 = vmatprep.subr.bf16.mxu0 %v6031_v26  ;;  %v4791_v43 = vld [vmem:[%s7201_s16] ss:$0 sm:$0xff] }
 0xe4f   : > { %2465 = vadd.xlane.f32.xlu0 %v2464_v56  ;;  %v2454_v55 = vpop.xlane.xlu1 %2453 }
 0xe50   : > { %v2457_v57 = vmul.f32 0.03125, %v2454_v55  ;;  %v2462_v58 = vmul.f32 %v2459_v54, %v2459_v54 }
 0xe51   : > { %5632 = vmatpush3.bf16.msra.mxu0 %v5631_v42 }
 0xe52   : > { %v2460_v60 = vsub.f32 %v2443_v46, %v2457_v57  ;;  %v2467_v61 = vsel %vm931_vm3, %v2462_v58, 0.0  ;;  %5639 = vmatprep.subr.bf16.mxu0 %v6031_v26 }
 0xe53   : > { %2468 = vadd.xlane.f32.xlu1 %v2467_v61 }
 0xe54   : > { %v2463_v59 = vmul.f32 %v2460_v60, %v2460_v60 }
 0xe56   : > { %v2470_v62 = vsel %vm938_vm4, %v2463_v59, 0.0 }
 0xe57   : > { %2471 = vadd.xlane.f32.xlu0 %v2470_v62 }
 0xedc   : > { %v2466_v9 = vpop.xlane.xlu0 %2465 }
 0xedd   : > { %v2473_v5 = vmul.f32 0.03125, %v2466_v9 }
 0xedf   : > { %v2476_v6 = vadd.f32 1e-05, %v2473_v5 }
 0xee0   : > { %v2469_v23 = vpop.xlane.xlu1 %2468 }
 0xee1   : > { %5885 = vrsqrt.f32 %v2476_v6  ;;  %v2474_v10 = vmul.f32 0.03125, %v2469_v23 }
 0xee3   : > { %v2477_v7 = vadd.f32 1e-05, %v2474_v10 }
 0xee4   : > { %v2472_v11 = vpop.xlane.xlu0 %2471 }
 0xee5   : > { %5887 = vrsqrt.f32 %v2477_v7  ;;  %v2475_v8 = vmul.f32 0.03125, %v2472_v11 }
 0xee7   : > { %v2478_v12 = vadd.f32 1e-05, %v2475_v8 }
 0xee9   : > { %5889 = vrsqrt.f32 %v2478_v12 }
 0xeeb   : > { %v5886_v28 = vpop.eup %5885 }
 0xeec   : > { %v2482_v15 = vmul.f32 %v5886_v28, %v2458_v50 }
 0xeee   : > { %v2491_v16 = vmul.f32 %v4789_v13, %v2482_v15  ;;  %v4795_v15 = vld [vmem:[%s7203_s18] ss:$0 sm:$0xff] }
 0xeef   : > { %v5888_v17 = vpop.eup %5887 }
 0xef0   : > { %v6630_v18 = vadd.f32 %v4790_v31, %v2491_v16  ;;  %v2483_v19 = vmul.f32 %v5888_v17, %v2459_v54 }
 0xef2   : > { %5305 = vmatmul.mubr.msk.f32.vlgmr.msra.gmra.mrb[42].mxu1 %vm931_vm3, %v6630_v18  ;;  %v2492_v20 = vmul.f32 %v4789_v13, %v2483_v19 }
 0xef3   : > { %v5890_v21 = vpop.eup %5889  ;;  %5307 = vmatprep.mubr.msk.f32.mxu1 %vm6032_vm2, %v6033_v27 }
 0xef4   : > { %v6636_v22 = vadd.f32 %v4790_v31, %v2492_v20  ;;  %v2484_v24 = vmul.f32 %v5890_v21, %v2460_v60 }
 0xef6   : > { %5308 = vmatmul.mubr.msk.f32.gmra.mrb[44].mxu1 %vm931_vm3, %v6636_v22  ;;  %v2493_v25 = vmul.f32 %v4789_v13, %v2484_v24 }
 0xef7   : > { %5310 = vmatprep.mubr.msk.f32.mxu1 %vm6032_vm2, %v6033_v27 }
 0xef8   : > { %v6642_v29 = vadd.f32 %v4790_v31, %v2493_v25 }
 0xefa   : > { %5311 = vmatmul.mubr.msk.f32.gmra.mrb[46].mxu1 %vm931_vm3, %v6642_v29 }
 0xefb   : > { %5346 = vmatprep.mubr.msk.f32.mxu1 %vm6032_vm2, %v6033_v27 }
 0xfc5   : > { %v2589_v44 = vpop.f32.mrb[42].mxu1 }
 0xfc6   : > { %v2590_v45 = vadd.f32 %v4791_v43, %v2589_v44  ;;  %v5306_v46 = vpop.f32.mrb[43].mxu1 }
 0xfc8   : > { %v2606_v47 = vmul.f32 0.044715, %v2590_v45  ;;  %v2603_v9 = vmul.f32 0.5, %v2590_v45 }
 0xfc9   : > { %v2594_v48 = vpop.f32.mrb[44].mxu1 }
 0xfca   : > { %v2609_v49 = vmul.f32 %v2606_v47, %v2590_v45  ;;  %v2595_v50 = vadd.f32 %v4791_v43, %v2594_v48  ;;  %v5309_v51 = vpop.f32.mrb[45].mxu1 }
 0xfcb   : > { %v4802_v51 = vld [vmem:[%s7263_s8 + $0x28] sm:$0xff] }
 0xfcc   : > { %v2612_v52 = vmul.f32 %v2609_v49, %v2590_v45  ;;  %v2607_v53 = vmul.f32 0.044715, %v2595_v50  ;;  %v2604_v10 = vmul.f32 0.5, %v2595_v50 }
 0xfcd   : > { %v2599_v54 = vpop.f32.mrb[46].mxu1 }
 0xfce   : > { %v2615_v56 = vadd.f32 %v2612_v52, %v2590_v45  ;;  %v2610_v55 = vmul.f32 %v2607_v53, %v2595_v50  ;;  %v2600_v57 = vadd.f32 %v4791_v43, %v2599_v54  ;;  %v5312_v58 = vpop.f32.mrb[47].mxu1  ;;  %v4803_v53 = vld [vmem:[%s7263_s8 + $0x30] sm:$0xff]  ;;  %v4804_v54 = vld [vmem:[%s7263_s8 + $0x38] sm:$0xff] }
 0xfd0   : > { %v2618_v60 = vmul.f32 0.7978846, %v2615_v56  ;;  %v2613_v61 = vmul.f32 %v2610_v55, %v2595_v50  ;;  %v2608_v59 = vmul.f32 0.044715, %v2600_v57  ;;  %v2605_v12 = vmul.f32 0.5, %v2600_v57 }
 0xfd1   : > { %v5637_v56 = vpack.c.bf16 %v4804_v54, %v4803_v53 }
 0xfd2   : > { %5891 = vtanh.f32 %v2618_v60  ;;  %v2616_v62 = vadd.f32 %v2613_v61, %v2595_v50  ;;  %v2611_v63 = vmul.f32 %v2608_v59, %v2600_v57  ;;  %v4801_v50 = vld [vmem:[%s7263_s8 + $0x20] sm:$0xff] }
 0xfd3   : > { %v5634_v52 = vpack.c.bf16 %v4802_v51, %v4801_v50 }
 0xfd4   : > { %v2614_v0 = vmul.f32 %v2611_v63, %v2600_v57  ;;  %v2619_v1 = vmul.f32 0.7978846, %v2616_v62 }
 0xfd5   : > { %5635 = vmatpush3.bf16.msra.mxu1 %v5634_v52 }
 0xfd6   : > { %v2617_v2 = vadd.f32 %v2614_v0, %v2600_v57  ;;  %5893 = vtanh.f32 %v2619_v1  ;;  %5636 = vmatprep.subr.bf16.mxu1 %v6031_v26 }
 0xfd8   : > { %v2620_v4 = vmul.f32 0.7978846, %v2617_v2  ;;  %v4799_v2 = vld [vmem:[%s7204_s19] ss:$0 sm:$0xff] }
 0xfd9   : > { %5638 = vmatpush3.bf16.msra.mxu1 %v5637_v56 }
 0xfda   : > { %5895 = vtanh.f32 %v2620_v4  ;;  %5643 = vmatprep.subr.bf16.mxu1 %v6031_v26 }
 0xfdc   : > { %v5892_v3 = vpop.eup %5891 }
 0xfdd   : > { %v2624_v5 = vadd.f32 1.0, %v5892_v3  ;;  %v4800_v3 = vld [vmem:[%s7205_s20] ss:$0 sm:$0xff] }
 0xfdf   : > { %v2627_v6 = vmul.f32 %v2624_v5, %v2603_v9 }
 0xfe0   : > { %v5894_v23 = vpop.eup %5893 }
 0xfe1   : > { %5330 = vmatmul.mubr.msk.f32.vlgmr.msra.gmra.mrb[42].mxu0 %vm2645_vm11, %v2627_v6  ;;  %v2625_v7 = vadd.f32 1.0, %v5894_v23 }
 0xfe2   : > { %5332 = vmatprep.mubr.msk.f32.mxu0 %vm6032_vm2, %v6033_v27 }
 0xfe3   : > { %v2628_v11 = vmul.f32 %v2625_v7, %v2604_v10 }
 0xfe4   : > { %v5896_v8 = vpop.eup %5895 }
 0xfe5   : > { %5333 = vmatmul.mubr.msk.f32.gmra.mrb[44].mxu0 %vm2645_vm11, %v2628_v11  ;;  %v2626_v28 = vadd.f32 1.0, %v5896_v8 }
 0xfe6   : > { %5335 = vmatprep.mubr.msk.f32.mxu0 %vm6032_vm2, %v6033_v27 }
 0xfe7   : > { %v2629_v13 = vmul.f32 %v2626_v28, %v2605_v12 }
 0xfe9   : > { %5336 = vmatmul.mubr.msk.f32.gmra.mrb[46].mxu0 %vm2645_vm11, %v2629_v13 }
 0xfea   : > { %5361 = vmatprep.mubr.msk.f32.mxu0 %vm6032_vm2, %v6033_v27 }
0x10b4   : > { %v2721_v31 = vpop.f32.mrb[42].mxu0 }
0x10b5   : > { %v2722_v16 = vadd.f32 %v4795_v15, %v2721_v31  ;;  %v5331_v17 = vpop.f32.mrb[43].mxu0  ;;  %v4806_v31 = vld [vmem:[%s7195_s10 + $0x1] ss:$0 sm:$0xff] }
0x10b7   : > { %v2735_v19 = vadd.f32 %v2722_v16, %v6630_v18 }
0x10b8   : > { %v2726_v20 = vpop.f32.mrb[44].mxu0 }
0x10b9   : > { %v2727_v21 = vadd.f32 %v4795_v15, %v2726_v20  ;;  %v5334_v24 = vpop.f32.mrb[45].mxu0  ;;  %v2740_v25 = vsel %vm931_vm3, %v2735_v19, 0.0 }
0x10ba   : > { %2741 = vadd.xlane.f32.xlu1 %v2740_v25 }
0x10bb   : > { %v2736_v30 = vadd.f32 %v2727_v21, %v6636_v22 }
0x10bc   : > { %v2731_v32 = vpop.f32.mrb[46].mxu0 }
0x10bd   : > { %v2732_v33 = vadd.f32 %v4795_v15, %v2731_v32  ;;  %v5337_v34 = vpop.f32.mrb[47].mxu0  ;;  %v2743_v35 = vsel %vm931_vm3, %v2736_v30, 0.0 }
0x10be   : > { %2744 = vadd.xlane.f32.xlu0 %v2743_v35 }
0x10bf   : > { %v2737_v36 = vadd.f32 %v2732_v33, %v6642_v29 }
0x10c1   : > { %v2746_v37 = vsel %vm938_vm4, %v2737_v36, 0.0 }
0x10c2   : > { %2747 = vadd.xlane.f32.xlu1 %v2746_v37 }
0x1147   : > { %v2742_v18 = vpop.xlane.xlu1 %2741 }
0x1148   : > { %v2749_v38 = vmul.f32 0.03125, %v2742_v18 }
0x114a   : > { %v2752_v39 = vsub.f32 %v2735_v19, %v2749_v38 }
0x114b   : > { %v2745_v40 = vpop.xlane.xlu0 %2744 }
0x114c   : > { %v2750_v41 = vmul.f32 0.03125, %v2745_v40  ;;  %v2755_v42 = vmul.f32 %v2752_v39, %v2752_v39 }
0x114e   : > { %v2753_v43 = vsub.f32 %v2736_v30, %v2750_v41  ;;  %v2758_v22 = vsel %vm931_vm3, %v2755_v42, 0.0 }
0x114f   : > { %2759 = vadd.xlane.f32.xlu0 %v2758_v22  ;;  %v2748_v44 = vpop.xlane.xlu1 %2747 }
0x1150   : > { %v2751_v45 = vmul.f32 0.03125, %v2748_v44  ;;  %v2756_v46 = vmul.f32 %v2753_v43, %v2753_v43 }
0x1152   : > { %v2754_v47 = vsub.f32 %v2737_v36, %v2751_v45  ;;  %v2761_v48 = vsel %vm931_vm3, %v2756_v46, 0.0 }
0x1153   : > { %2762 = vadd.xlane.f32.xlu1 %v2761_v48 }
0x1154   : > { %v2757_v29 = vmul.f32 %v2754_v47, %v2754_v47 }
0x1156   : > { %v2764_v49 = vsel %vm938_vm4, %v2757_v29, 0.0 }
0x1157   : > { %2765 = vadd.xlane.f32.xlu0 %v2764_v49 }
0x11dc   : > { %v2760_v55 = vpop.xlane.xlu0 %2759 }
0x11dd   : > { %v2767_v57 = vmul.f32 0.03125, %v2760_v55 }
0x11df   : > { %v2770_v58 = vadd.f32 1e-05, %v2767_v57 }
0x11e0   : > { %v2763_v60 = vpop.xlane.xlu1 %2762 }
0x11e1   : > { %5897 = vrsqrt.f32 %v2770_v58  ;;  %v2768_v61 = vmul.f32 0.03125, %v2763_v60 }
0x11e3   : > { %v2771_v59 = vadd.f32 1e-05, %v2768_v61 }
0x11e4   : > { %v2766_v62 = vpop.xlane.xlu0 %2765 }
0x11e5   : > { %5899 = vrsqrt.f32 %v2771_v59  ;;  %v2769_v63 = vmul.f32 0.03125, %v2766_v62 }
0x11e7   : > { %v2772_v0 = vadd.f32 1e-05, %v2769_v63 }
0x11e9   : > { %5901 = vrsqrt.f32 %v2772_v0 }
0x11eb   : > { %v5898_v1 = vpop.eup %5897 }
0x11ec   : > { %v2776_v4 = vmul.f32 %v5898_v1, %v2752_v39 }
0x11ee   : > { %v2785_v9 = vmul.f32 %v4799_v2, %v2776_v4 }
0x11ef   : > { %v5900_v5 = vpop.eup %5899 }
0x11f0   : > { %v6720_v6 = vadd.f32 %v4800_v3, %v2785_v9  ;;  %v2777_v23 = vmul.f32 %v5900_v5, %v2753_v43 }
0x11f2   : > { %5347 = vmatmul.mubr.msk.f32.vlgmr.msra.gmra.mrb[48].mxu1 %vm931_vm3, %v6720_v6  ;;  %v2786_v10 = vmul.f32 %v4799_v2, %v2777_v23 }
0x11f3   : > { %v5902_v7 = vpop.eup %5901  ;;  %5349 = vmatprep.mubr.msk.f32.mxu1 %vm6032_vm2, %v6033_v27 }
0x11f4   : > { %v6726_v11 = vadd.f32 %v4800_v3, %v2786_v10  ;;  %v2778_v8 = vmul.f32 %v5902_v7, %v2754_v47 }
0x11f6   : > { %5350 = vmatmul.mubr.msk.f32.gmra.mrb[50].mxu1 %vm931_vm3, %v6726_v11  ;;  %v2787_v12 = vmul.f32 %v4799_v2, %v2778_v8 }
0x11f7   : > { %5352 = vmatprep.mubr.msk.f32.mxu1 %vm6032_vm2, %v6033_v27 }
0x11f8   : > { %v6732_v28 = vadd.f32 %v4800_v3, %v2787_v12 }
0x11fa   : > { %5353 = vmatmul.mubr.msk.f32.gmra.mrb[52].mxu1 %vm931_vm3, %v6732_v28 }
0x11fb   : > { %5376 = vmatprep.mubr.msk.f32.mxu1 %vm6032_vm2, %v6033_v27 }
0x12c5   : > { %v2885_v13 = vpop.f32.mrb[48].mxu1 }
0x12c6   : > { %v5348_v15 = vpop.f32.mrb[49].mxu1  ;;  %v2886_v17 = vadd.f32 %v4806_v31, %v2885_v13 }
0x12c8   : > { %v6757_v33 = vmul.f32 0.35355338, %v2886_v17 }
0x12c9   : > { %v2890_v16 = vpop.f32.mrb[50].mxu1 }
0x12ca   : > { %v2891_v19 = vadd.f32 %v4806_v31, %v2890_v16  ;;  %v5351_v20 = vpop.f32.mrb[51].mxu1 }
0x12cc   : > { %v6741_v21 = vpack.i.bf16 %v2891_v19, %v2886_v17  ;;  %v6751_v32 = vmul.f32 0.35355338, %v2891_v19 }
0x12cd   : > { %v2895_v24 = vpop.f32.mrb[52].mxu1 }
0x12ce   : > { %v6743_v25 = vadd.f32 %v4806_v31, %v2895_v24  ;;  %5786 = vrot.lane.b32.xlu1 %v6741_v21, %s6034_s27  ;;  %v5354_v30 = vpop.f32.mrb[53].mxu1 }
0x12d0   : > { %2914 = vrot.lane.b32.xlu0 %v6743_v25, %s6034_s27  ;;  %v6762_v34 = vmul.f32 0.35355338, %v6743_v25  ;;  %s7270_s27 = smov 64  }
0x12d2   : > { %5791 = vrot.lane.b32.xlu1 %v6741_v21, %s6036_s6 }
0x12d4   : > { %3145 = vrot.lane.b32.xlu0 %v6751_v32, %s6035_s9 }
0x12d6   : > { %3153 = vrot.lane.b32.xlu1 %v6743_v25, %s6036_s6  ;;  %s7272_s6 = smov 80  }
0x12da   : > { %3143 = vrot.lane.b32.xlu1 %v6757_v33, %s6035_s9 }
0x12de   : > { %3147 = vrot.lane.b32.xlu1 %v6762_v34, %s6035_s9  ;;  %s7271_s9 = smov 56  }
0x1340   : > { %v5787_v35 = vpop.permute.xlu1 %5786 }
0x1341   : > { %v5789_v36 = vunpack.i.h.bf16 %v5787_v35  ;;  %v5788_v37 = vunpack.i.l.bf16 %v5787_v35 }
0x1342   : > { %v2915_v41 = vpop.permute.xlu0 %2914 }
0x1343   : > { %v5640_v18 = vpack.c.bf16 %v5789_v36, %v5788_v37 }
0x1344   : > { %v5792_v38 = vpop.permute.xlu1 %5791 }
0x1345   : > { %5642 = vmatpush3.bf16.xpose.msk.msra.mxu0 %vm6366_vm7, %v5640_v18  ;;  %v5794_v39 = vunpack.i.h.bf16 %v5792_v38  ;;  %v5793_v40 = vunpack.i.l.bf16 %v5792_v38 }
0x1346   : > { %5359 = vmatprep.subr.mxu0 %v6033_v27  ;;  %v3146_v44 = vpop.permute.xlu0 %3145 }
0x1347   : > { %v5647_v42 = vpack.c.bf16 %v5794_v39, %v5793_v40 }
0x1348   : > { %v3154_v43 = vpop.permute.xlu1 %3153 }
0x134c   : > { %v3144_v22 = vpop.permute.xlu1 %3143 }
0x134d   : > { %5360 = vmatpush3.xpose.msk.msra.mxu0 %vm1130_vm6, %v2915_v41 }
0x134e   : > { %5646 = vmatprep.subr.bf16.mxu0 %v6031_v26 }
0x1350   : > { %5362 = vmatmul.mubr.msk.f32.vlgmr.msra.gmra.mrb[48].mxu0 %vm1130_vm6, %v6757_v33  ;;  %v3148_v45 = vpop.permute.xlu1 %3147 }
0x1351   : > { %5649 = vmatpush3.bf16.xpose.msk.msra.mxu0 %vm6366_vm7, %v5647_v42  ;;  %5364 = vmatprep.mubr.msk.f32.mxu0 %vm6032_vm2, %v6033_v27 }
0x1352   : > { %5389 = vmatprep.subr.mxu0 %v6033_v27 }
0x1354   : > { %5365 = vmatmul.mubr.msk.f32.gmra.mrb[50].mxu0 %vm1130_vm6, %v6751_v32 }
0x1355   : > { %5367 = vmatprep.mubr.msk.f32.mxu0 %vm6032_vm2, %v6033_v27 }
0x1358   : > { %5368 = vmatmul.mubr.msk.f32.gmra.mrb[52].mxu0 %vm1130_vm6, %v6762_v34 }
0x1359   : > { %5390 = vmatpush3.xpose.msk.msra.mxu0 %vm1130_vm6, %v3154_v43  ;;  %5391 = vmatprep.mubr.msk.f32.mxu0 %vm6032_vm2, %v6033_v27 }
0x135a   : > { %5415 = vmatprep.subr.mxu0 %v6033_v27 }
0x135c   : > { %5392 = vmatmul.mubr.msk.f32.vlgmr.msra.gmra.mrb[54].mxu0 %vm1130_vm6, %v3144_v22 }
0x135d   : > { %5394 = vmatprep.mubr.msk.f32.mxu0 %vm6032_vm2, %v6033_v27 }
0x1360   : > { %5395 = vmatmul.mubr.msk.f32.gmra.mrb[56].mxu0 %vm1130_vm6, %v3146_v44 }
0x1361   : > { %5397 = vmatprep.mubr.msk.f32.mxu0 %vm6032_vm2, %v6033_v27 }
0x1364   : > { %5398 = vmatmul.mubr.msk.f32.gmra.mrb[58].mxu0 %vm1130_vm6, %v3148_v45 }
0x1365   : > { %5417 = vmatprep.mubr.msk.f32.mxu0 %vm6032_vm2, %v6033_v27 }
0x1423   : > { %v2997_v46 = vpop.f32.mrb[48].mxu0 }
0x1424   : > { %v5363_v47 = vpop.f32.mrb[49].mxu0  ;;  %v3011_v48 = vsel %vm1226_vm8, %v2997_v46, -inf }
0x1425   : > { %3012 = vmax.xlane.f32.xlu0 %v3011_v48 }
0x1427   : > { %v3002_v29 = vpop.f32.mrb[50].mxu0 }
0x1428   : > { %v5366_v49 = vpop.f32.mrb[51].mxu0  ;;  %v3014_v50 = vsel %vm1226_vm8, %v3002_v29, -inf }
0x1429   : > { %3015 = vmax.xlane.f32.xlu1 %v3014_v50 }
0x142b   : > { %v3007_v51 = vpop.f32.mrb[52].mxu0 }
0x142c   : > { %v5369_v52 = vpop.f32.mrb[53].mxu0  ;;  %v3017_v53 = vsel %vm1233_vm9, %v3007_v51, -inf }
0x142d   : > { %3018 = vmax.xlane.f32.xlu0 %v3017_v53 }
0x142f   : > { %v3233_v54 = vpop.f32.mrb[54].mxu0 }
0x1430   : > { %v5393_v56 = vpop.f32.mrb[55].mxu0  ;;  %v3247_v55 = vsel %vm1226_vm8, %v3233_v54, -inf }
0x1431   : > { %3248 = vmax.xlane.f32.xlu0 %v3247_v55 }
0x1433   : > { %v3238_v57 = vpop.f32.mrb[56].mxu0 }
0x1434   : > { %v5396_v58 = vpop.f32.mrb[57].mxu0  ;;  %v3250_v60 = vsel %vm1226_vm8, %v3238_v57, -inf }
0x1435   : > { %3251 = vmax.xlane.f32.xlu0 %v3250_v60 }
0x1437   : > { %v3243_v61 = vpop.f32.mrb[58].mxu0 }
0x1438   : > { %v5399_v59 = vpop.f32.mrb[59].mxu0  ;;  %v3253_v62 = vsel %vm1233_vm9, %v3243_v61, -inf }
0x1439   : > { %3254 = vmax.xlane.f32.xlu1 %v3253_v62 }
0x144a   : > { %5796 = vrot.lane.b32.xlu1 %v6741_v21, %s7270_s27 }
0x14b2   : > { %v3013_v63 = vpop.xlane.xlu0 %3012 }
0x14b3   : > { %v3020_v0 = vsub.f32 %v2997_v46, %v3013_v63 }
0x14b5   : > { %v3023_v1 = vmul.f32 1.442695, %v3020_v0 }
0x14b6   : > { %v3016_v2 = vpop.xlane.xlu1 %3015 }
0x14b7   : > { %5903 = vpow2.f32 %v3023_v1  ;;  %v3021_v4 = vsub.f32 %v3002_v29, %v3016_v2 }
0x14b9   : > { %v3025_v3 = vmul.f32 1.442695, %v3021_v4 }
0x14ba   : > { %v3019_v9 = vpop.xlane.xlu0 %3018 }
0x14bb   : > { %5905 = vpow2.f32 %v3025_v3  ;;  %v3022_v5 = vsub.f32 %v3007_v51, %v3019_v9  ;;  %v4810_v3 = vld [vmem:[%s7196_s11 + $0x20] sm:$0xff]  ;;  %v4811_v9 = vld [vmem:[%s7196_s11 + $0x28] sm:$0xff] }
0x14bc   : > { %5416 = vmatpush3.msra.mxu0 %v4811_v9 }
0x14bd   : > { %v3027_v23 = vmul.f32 1.442695, %v3022_v5  ;;  %5653 = vmatprep.subr.bf16.mxu0 %v6031_v26 }
0x14be   : > { %v3249_v10 = vpop.xlane.xlu0 %3248 }
0x14bf   : > { %5907 = vpow2.f32 %v3027_v23  ;;  %v3256_v7 = vsub.f32 %v3233_v54, %v3249_v10 }
0x14c1   : > { %v5904_v8 = vpop.eup %5903  ;;  %v3259_v12 = vmul.f32 1.442695, %v3256_v7 }
0x14c2   : > { %v3252_v13 = vpop.xlane.xlu0 %3251  ;;  %v3029_v15 = vsel %vm1226_vm8, %v5904_v8, 0.0 }
0x14c3   : > { %5909 = vpow2.f32 %v3259_v12  ;;  %v3257_v31 = vsub.f32 %v3238_v57, %v3252_v13  ;;  %3030 = vadd.xlane.f32.xlu0 %v3029_v15 }
0x14c5   : > { %v5906_v16 = vpop.eup %5905  ;;  %v3261_v17 = vmul.f32 1.442695, %v3257_v31 }
0x14c6   : > { %v3255_v19 = vpop.xlane.xlu1 %3254  ;;  %v3032_v20 = vsel %vm1226_vm8, %v5906_v16, 0.0 }
0x14c7   : > { %5911 = vpow2.f32 %v3261_v17  ;;  %v3258_v24 = vsub.f32 %v3243_v61, %v3255_v19  ;;  %3033 = vadd.xlane.f32.xlu1 %v3032_v20 }
0x14c9   : > { %v5908_v30 = vpop.eup %5907  ;;  %v3263_v35 = vmul.f32 1.442695, %v3258_v24 }
0x14ca   : > { %v5797_v36 = vpop.permute.xlu1 %5796  ;;  %v3035_v37 = vsel %vm1233_vm9, %v5908_v30, 0.0 }
0x14cb   : > { %5913 = vpow2.f32 %v3263_v35  ;;  %v5799_v18 = vunpack.i.h.bf16 %v5797_v36  ;;  %v5798_v38 = vunpack.i.l.bf16 %v5797_v36  ;;  %3036 = vadd.xlane.f32.xlu0 %v3035_v37 }
0x14cd   : > { %v5910_v39 = vpop.eup %5909  ;;  %v5644_v40 = vpack.c.bf16 %v5799_v18, %v5798_v38 }
0x14ce   : > { %v3265_v41 = vsel %vm1226_vm8, %v5910_v39, 0.0 }
0x14cf   : > { %3266 = vadd.xlane.f32.xlu1 %v3265_v41  ;;  %5645 = vmatpush3.bf16.msra.mxu1 %v5644_v40 }
0x14d0   : > { %5374 = vmatprep.subr.mxu1 %v6033_v27 }
0x14d1   : > { %v5912_v42 = vpop.eup %5911 }
0x14d2   : > { %v3268_v43 = vsel %vm1226_vm8, %v5912_v42, 0.0 }
0x14d3   : > { %3269 = vadd.xlane.f32.xlu0 %v3268_v43 }
0x14d5   : > { %v5914_v22 = vpop.eup %5913 }
0x14d6   : > { %v3271_v44 = vsel %vm1233_vm9, %v5914_v22, 0.0 }
0x14d7   : > { %3272 = vadd.xlane.f32.xlu0 %v3271_v44 }
0x14e0   : > { %5801 = vrot.lane.b32.xlu1 %v6741_v21, %s7271_s9 }
0x14e4   : > { %3284 = vrot.lane.b32.xlu1 %v6743_v25, %s7271_s9 }
0x14e8   : > { %5806 = vrot.lane.b32.xlu1 %v6741_v21, %s7272_s6 }
0x14ec   : > { %3567 = vrot.lane.b32.xlu1 %v6743_v25, %s7272_s6  ;;  %s7277_s6 = smov 40  }
0x14ed   : > { %3048 = vrot.lane.b32.xlu0 %v6743_v25, %s7270_s27  ;;  %s755_s27 = sand.u32 1, %s6021_s2  }
0x14ee   : > { %s756_s1 = scalar_lea.vmem [#allocation2], %s755_s27 }
0x14ef   : > { %s4663_s0 = sshll.u32 %s756_s1, 4  ;;  %s7145_s0 = int_to_ptr.vmem [resolvable:$true] %s4663_s0 }
0x14f0   : > { %3559 = vrot.lane.b32.xlu1 %v6751_v32, %s7273_s30  ;;  %s5967_s9 = scalar_lea.vmem %s7145_s0, 16 }
0x14f1   : > { %3557 = vrot.lane.b32.xlu0 %v6757_v33, %s7273_s30  ;;  %p5968_p11 = scmp.ne.s32.totalorder %s7145_s0, %s5967_s9 }
0x14f3   : > { %p5969_p12 = pnand %p5968_p11, %p6214_p5 }
0x14f5   : > { %3561 = vrot.lane.b32.xlu0 %v6762_v34, %s7273_s30  ;;  %s4899_s30 = sshll.u32 %s6197_s7, 4  ;;  %p5970_p13 = pneg %p5969_p12 }
0x14f6   : > { %s6045_s7 = smov [#allocation2]  }
0x1550   : > { %v3031_v45 = vpop.xlane.xlu0 %3030 }
0x1551   : > { %5915 = vrcp.f32 %v3031_v45 }
0x1554   : > { %v3034_v46 = vpop.xlane.xlu1 %3033 }
0x1555   : > { %5917 = vrcp.f32 %v3034_v46 }
0x1558   : > { %v3037_v47 = vpop.xlane.xlu0 %3036 }
0x1559   : > { %5919 = vrcp.f32 %v3037_v47 }
0x155b   : > { %v5916_v51 = vpop.eup %5915 }
0x155c   : > { %v3267_v48 = vpop.xlane.xlu1 %3266  ;;  %v3041_v54 = vmul.f32 %v5916_v51, %v5904_v8 }
0x155d   : > { %5921 = vrcp.f32 %v3267_v48 }
0x155f   : > { %v5918_v55 = vpop.eup %5917 }
0x1560   : > { %v3270_v29 = vpop.xlane.xlu0 %3269  ;;  %v5802_v49 = vpop.permute.xlu1 %5801  ;;  %v3042_v58 = vmul.f32 %v5918_v55, %v5906_v16 }
0x1561   : > { %v5804_v52 = vunpack.i.h.bf16 %v5802_v49  ;;  %v5803_v53 = vunpack.i.l.bf16 %v5802_v49  ;;  %5923 = vrcp.f32 %v3270_v29 }
0x1563   : > { %v5651_v57 = vpack.c.bf16 %v5804_v52, %v5803_v53  ;;  %v5920_v60 = vpop.eup %5919 }
0x1564   : > { %v3273_v50 = vpop.xlane.xlu0 %3272  ;;  %v3285_v61 = vpop.permute.xlu1 %3284  ;;  %v3043_v59 = vmul.f32 %v5920_v60, %v5908_v30 }
0x1565   : > { %5925 = vrcp.f32 %v3273_v50 }
0x1567   : > { %v5922_v62 = vpop.eup %5921 }
0x1568   : > { %v3049_v56 = vpop.permute.xlu0 %3048  ;;  %v3277_v63 = vmul.f32 %v5922_v62, %v5910_v39  ;;  %v5807_v7 = vpop.permute.xlu1 %5806 }
0x1569   : > { %5375 = vmatpush3.msk.msra.mxu1 %vm1278_vm10, %v3049_v56  ;;  %v5809_v12 = vunpack.i.h.bf16 %v5807_v7  ;;  %v5808_v13 = vunpack.i.l.bf16 %v5807_v7 }
0x156a   : > { %5377 = vmatmul.mubr.msk.f32.vlgmr.msra.gmra.mrb[54].mxu1 %vm1226_vm8, %v3041_v54  ;;  %5650 = vmatprep.subr.bf16.mxu1 %v6031_v26 }
0x156b   : > { %5652 = vmatpush3.bf16.msra.mxu1 %v5651_v57  ;;  %5379 = vmatprep.mubr.msk.f32.mxu1 %vm6032_vm2, %v6033_v27  ;;  %v5924_v0 = vpop.eup %5923  ;;  %v5654_v16 = vpack.c.bf16 %v5809_v12, %v5808_v13 }
0x156c   : > { %5404 = vmatprep.subr.mxu1 %v6033_v27  ;;  %v3278_v1 = vmul.f32 %v5924_v0, %v5912_v42  ;;  %v3568_v35 = vpop.permute.xlu1 %3567  ;;  %v3558_v37 = vpop.permute.xlu0 %3557 }
0x156e   : > { %5380 = vmatmul.mubr.msk.f32.gmra.mrb[56].mxu1 %vm1226_vm8, %v3042_v58 }
0x156f   : > { %5405 = vmatpush3.msk.msra.mxu1 %vm1278_vm10, %v3285_v61  ;;  %5382 = vmatprep.mubr.msk.f32.mxu1 %vm6032_vm2, %v6033_v27  ;;  %v5926_v2 = vpop.eup %5925 }
0x1570   : > { %5426 = vmatprep.subr.mxu1 %v6033_v27  ;;  %v3279_v4 = vmul.f32 %v5926_v2, %v5914_v22  ;;  %v3560_v18 = vpop.permute.xlu1 %3559  ;;  %v3562_v38 = vpop.permute.xlu0 %3561 }
0x1572   : > { %5383 = vmatmul.mubr.msk.f32.gmra.mrb[58].mxu1 %vm1226_vm8, %v3043_v59 }
0x1573   : > { %5406 = vmatprep.mubr.msk.f32.mxu1 %vm6032_vm2, %v6033_v27 }
0x1576   : > { %5407 = vmatmul.mubr.msk.f32.vlgmr.msra.gmra.mrb[60].mxu1 %vm1226_vm8, %v3277_v63 }
0x1577   : > { %5409 = vmatprep.mubr.msk.f32.mxu1 %vm6032_vm2, %v6033_v27  ;;  %5427 = vmatpush3.msra.mxu1 %v4810_v3 }
0x1578   : > { %5657 = vmatprep.subr.bf16.mxu1 %v6031_v26 }
0x157a   : > { %5410 = vmatmul.mubr.msk.f32.gmra.mrb[62].mxu1 %vm1226_vm8, %v3278_v1 }
0x157b   : > { %5412 = vmatprep.mubr.msk.f32.mxu1 %vm6032_vm2, %v6033_v27 }
0x157e   : > { %5413 = vmatmul.mubr.msk.f32.gmra.mrb[64].mxu1 %vm1226_vm8, %v3279_v4 }
0x157f   : > { %5428 = vmatprep.mubr.msk.f32.mxu1 %vm6032_vm2, %v6033_v27 }
0x163d   : > { %v3129_v5 = vpop.f32.mrb[54].mxu1 }
0x163e   : > { %v5378_v23 = vpop.f32.mrb[55].mxu1  ;;  %5429 = vmatmul.mubr.msk.f32.vlgmr.msra.gmra.mrb[66].mxu1 %vm1130_vm6, %v3129_v5 }
0x163f   : > { %5431 = vmatprep.mubr.msk.f32.mxu1 %vm6032_vm2, %v6033_v27 }
0x1641   : > { %v3134_v10 = vpop.f32.mrb[56].mxu1 }
0x1642   : > { %v5381_v8 = vpop.f32.mrb[57].mxu1  ;;  %5432 = vmatmul.mubr.msk.f32.gmra.mrb[68].mxu1 %vm1130_vm6, %v3134_v10 }
0x1643   : > { %5434 = vmatprep.mubr.msk.f32.mxu1 %vm6032_vm2, %v6033_v27 }
0x1645   : > { %v3139_v15 = vpop.f32.mrb[58].mxu1 }
0x1646   : > { %v5384_v31 = vpop.f32.mrb[59].mxu1  ;;  %5435 = vmatmul.mubr.msk.f32.gmra.mrb[70].mxu1 %vm1130_vm6, %v3139_v15 }
0x1647   : > { %5458 = vmatprep.mubr.msk.f32.mxu1 %vm6032_vm2, %v6033_v27 }
0x1649   : > { %v3365_v17 = vpop.f32.mrb[60].mxu1 }
0x164a   : > { %v5408_v19 = vpop.f32.mrb[61].mxu1  ;;  %5418 = vmatmul.mubr.msk.f32.vlgmr.msra.gmra.mrb[60].mxu0 %vm1130_vm6, %v3365_v17 }
0x164b   : > { %5656 = vmatpush3.bf16.xpose.msk.msra.mxu0 %vm6366_vm7, %v5654_v16  ;;  %5420 = vmatprep.mubr.msk.f32.mxu0 %vm6032_vm2, %v6033_v27 }
0x164c   : > { %5441 = vmatprep.subr.mxu0 %v6033_v27 }
0x164d   : > { %v3370_v20 = vpop.f32.mrb[62].mxu1 }
0x164e   : > { %v5411_v24 = vpop.f32.mrb[63].mxu1  ;;  %5421 = vmatmul.mubr.msk.f32.gmra.mrb[62].mxu0 %vm1130_vm6, %v3370_v20 }
0x164f   : > { %5423 = vmatprep.mubr.msk.f32.mxu0 %vm6032_vm2, %v6033_v27 }
0x1651   : > { %v3375_v30 = vpop.f32.mrb[64].mxu1 }
0x1652   : > { %v5414_v36 = vpop.f32.mrb[65].mxu1  ;;  %5424 = vmatmul.mubr.msk.f32.gmra.mrb[64].mxu0 %vm1130_vm6, %v3375_v30 }
0x1653   : > { %5442 = vmatpush3.xpose.msk.msra.mxu0 %vm1130_vm6, %v3568_v35  ;;  %5443 = vmatprep.mubr.msk.f32.mxu0 %vm6032_vm2, %v6033_v27 }
0x1654   : > { %5467 = vmatprep.subr.mxu0 %v6033_v27 }
0x1656   : > { %5444 = vmatmul.mubr.msk.f32.vlgmr.msra.gmra.mrb[66].mxu0 %vm1130_vm6, %v3558_v37 }
0x1657   : > { %5446 = vmatprep.mubr.msk.f32.mxu0 %vm6032_vm2, %v6033_v27  ;;  %5468 = vmatpush3.msra.mxu0 %v4812_v14 }
0x1658   : > { %5664 = vmatprep.subr.bf16.mxu0 %v6031_v26 }
0x165a   : > { %5447 = vmatmul.mubr.msk.f32.gmra.mrb[68].mxu0 %vm1130_vm6, %v3560_v18 }
0x165b   : > { %5449 = vmatprep.mubr.msk.f32.mxu0 %vm6032_vm2, %v6033_v27 }
0x165e   : > { %5450 = vmatmul.mubr.msk.f32.gmra.mrb[70].mxu0 %vm1130_vm6, %v3562_v38 }
0x165f   : > { %5469 = vmatprep.mubr.msk.f32.mxu0 %vm6032_vm2, %v6033_v27 }
0x1711   : > { %v3543_v39 = vpop.f32.mrb[66].mxu1 }
0x1712   : > { %v5430_v40 = vpop.f32.mrb[67].mxu1 }
0x1715   : > { %v3548_v41 = vpop.f32.mrb[68].mxu1 }
0x1716   : > { %v5433_v42 = vpop.f32.mrb[69].mxu1 }
0x1719   : > { %v3553_v43 = vpop.f32.mrb[70].mxu1 }
0x171a   : > { %v5436_v22 = vpop.f32.mrb[71].mxu1 }
0x171d   : > { %v3454_v44 = vpop.f32.mrb[60].mxu0 }
0x171e   : > { %v6891_v45 = vadd.f32 %v3543_v39, %v3454_v44  ;;  %v5419_v46 = vpop.f32.mrb[61].mxu0 }
0x1721   : > { %v3459_v47 = vpop.f32.mrb[62].mxu0 }
0x1722   : > { %v6893_v48 = vadd.f32 %v3548_v41, %v3459_v47  ;;  %v5422_v29 = vpop.f32.mrb[63].mxu0 }
0x1725   : > { %v3464_v49 = vpop.f32.mrb[64].mxu0 }
0x1726   : > { %v6895_v50 = vadd.f32 %v3553_v43, %v3464_v49  ;;  %v5425_v51 = vpop.f32.mrb[65].mxu0 }
0x1729   : > { %v3647_v52 = vpop.f32.mrb[66].mxu0 }
0x172a   : > { %v5445_v53 = vpop.f32.mrb[67].mxu0  ;;  %v3661_v54 = vsel %vm1226_vm8, %v3647_v52, -inf }
0x172b   : > { %3662 = vmax.xlane.f32.xlu1 %v3661_v54 }
0x172d   : > { %v3652_v56 = vpop.f32.mrb[68].mxu0 }
0x172e   : > { %v5448_v55 = vpop.f32.mrb[69].mxu0  ;;  %v3664_v57 = vsel %vm1226_vm8, %v3652_v56, -inf }
0x172f   : > { %3665 = vmax.xlane.f32.xlu0 %v3664_v57 }
0x1731   : > { %v3657_v58 = vpop.f32.mrb[70].mxu0 }
0x1732   : > { %v5451_v60 = vpop.f32.mrb[71].mxu0  ;;  %v3667_v61 = vsel %vm1233_vm9, %v3657_v58, -inf }
0x1733   : > { %3668 = vmax.xlane.f32.xlu0 %v3667_v61 }
0x173c   : > { %5811 = vrot.lane.b32.xlu1 %v6741_v21, %s7274_s3 }
0x17b8   : > { %v3663_v59 = vpop.xlane.xlu1 %3662 }
0x17b9   : > { %v3670_v62 = vsub.f32 %v3647_v52, %v3663_v59 }
0x17bb   : > { %v3673_v63 = vmul.f32 1.442695, %v3670_v62 }
0x17bc   : > { %v5812_v0 = vpop.permute.xlu1 %5811  ;;  %v3666_v1 = vpop.xlane.xlu0 %3665 }
0x17bd   : > { %5927 = vpow2.f32 %v3673_v63  ;;  %v5814_v2 = vunpack.i.h.bf16 %v5812_v0  ;;  %v5813_v4 = vunpack.i.l.bf16 %v5812_v0  ;;  %v3671_v3 = vsub.f32 %v3652_v56, %v3666_v1 }
0x17bf   : > { %v5658_v9 = vpack.c.bf16 %v5814_v2, %v5813_v4  ;;  %v3675_v5 = vmul.f32 1.442695, %v3671_v3 }
0x17c0   : > { %v3669_v23 = vpop.xlane.xlu0 %3668 }
0x17c1   : > { %5929 = vpow2.f32 %v3675_v5  ;;  %v3672_v10 = vsub.f32 %v3657_v58, %v3669_v23  ;;  %5659 = vmatpush3.bf16.msra.mxu1 %v5658_v9 }
0x17c2   : > { %5456 = vmatprep.subr.mxu1 %v6033_v27 }
0x17c3   : > { %v3677_v7 = vmul.f32 1.442695, %v3672_v10 }
0x17c5   : > { %5931 = vpow2.f32 %v3677_v7 }
0x17c7   : > { %v5928_v8 = vpop.eup %5927 }
0x17c8   : > { %v3679_v12 = vsel %vm1226_vm8, %v5928_v8, 0.0 }
0x17c9   : > { %3680 = vadd.xlane.f32.xlu0 %v3679_v12 }
0x17cb   : > { %v5930_v13 = vpop.eup %5929 }
0x17cc   : > { %v3682_v15 = vsel %vm1226_vm8, %v5930_v13, 0.0 }
0x17cd   : > { %3683 = vadd.xlane.f32.xlu1 %v3682_v15 }
0x17cf   : > { %v5932_v31 = vpop.eup %5931 }
0x17d0   : > { %v3685_v16 = vsel %vm1233_vm9, %v5932_v31, 0.0 }
0x17d1   : > { %3686 = vadd.xlane.f32.xlu0 %v3685_v16 }
0x17de   : > { %5816 = vrot.lane.b32.xlu1 %v6741_v21, %s7275_s29 }
0x17e2   : > { %3895 = vrot.lane.b32.xlu1 %v6743_v25, %s7275_s29 }
0x17e6   : > { %3885 = vrot.lane.b32.xlu1 %v6757_v33, %s7276_s28 }
0x17e7   : > { %3698 = vrot.lane.b32.xlu0 %v6743_v25, %s7274_s3  ;;  %s7278_s3 = sld [smem:[#allocation21_spill]] }
0x17ed   : > { %s7143_s29 = scalar_lea.hbm %s7278_s3, %s4899_s30 }
0x1856   : > { %v3681_v17 = vpop.xlane.xlu0 %3680 }
0x1857   : > { %5933 = vrcp.f32 %v3681_v17 }
0x185a   : > { %v3684_v19 = vpop.xlane.xlu1 %3683 }
0x185b   : > { %5935 = vrcp.f32 %v3684_v19 }
0x185e   : > { %v3687_v20 = vpop.xlane.xlu0 %3686  ;;  %v5817_v30 = vpop.permute.xlu1 %5816 }
0x185f   : > { %5937 = vrcp.f32 %v3687_v20  ;;  %v5819_v37 = vunpack.i.h.bf16 %v5817_v30  ;;  %v5818_v18 = vunpack.i.l.bf16 %v5817_v30 }
0x1861   : > { %v5934_v24 = vpop.eup %5933  ;;  %v5661_v39 = vpack.c.bf16 %v5819_v37, %v5818_v18  ;;  %v6987_v37 = vld [vmem:[%s7197_s12 + $0x1] ss:$0 sm:$0xff] }
0x1862   : > { %v3691_v35 = vmul.f32 %v5934_v24, %v5928_v8  ;;  %v3699_v36 = vpop.permute.xlu0 %3698  ;;  %v3896_v42 = vpop.permute.xlu1 %3895  ;;  %v4813_v8 = vld [vmem:[%s7196_s11 + $0x38] sm:$0xff] }
0x1863   : > { %5457 = vmatpush3.msk.msra.mxu1 %vm1278_vm10, %v3699_v36 }
0x1864   : > { %5459 = vmatmul.mubr.msk.f32.vlgmr.msra.gmra.mrb[72].mxu1 %vm1226_vm8, %v3691_v35  ;;  %5660 = vmatprep.subr.bf16.mxu1 %v6031_v26 }
0x1865   : > { %v5936_v33 = vpop.eup %5935  ;;  %5461 = vmatprep.mubr.msk.f32.mxu1 %vm6032_vm2, %v6033_v27 }
0x1866   : > { %v3692_v38 = vmul.f32 %v5936_v33, %v5930_v13  ;;  %v3886_v43 = vpop.permute.xlu1 %3885 }
0x1868   : > { %5462 = vmatmul.mubr.msk.f32.gmra.mrb[74].mxu1 %vm1226_vm8, %v3692_v38 }
0x1869   : > { %v5938_v40 = vpop.eup %5937  ;;  %5464 = vmatprep.mubr.msk.f32.mxu1 %vm6032_vm2, %v6033_v27 }
0x186a   : > { %5663 = vmatpush3.bf16.xpose.msk.msra.mxu1 %vm6366_vm7, %v5661_v39  ;;  %v3693_v41 = vmul.f32 %v5938_v40, %v5932_v31 }
0x186b   : > { %5482 = vmatprep.subr.mxu1 %v6033_v27 }
0x186c   : > { %5465 = vmatmul.mubr.msk.f32.gmra.mrb[76].mxu1 %vm1226_vm8, %v3693_v41 }
0x186d   : > { %5484 = vmatprep.mubr.msk.f32.mxu1 %vm6032_vm2, %v6033_v27 }
0x1872   : > { %5483 = vmatpush3.xpose.msk.msra.mxu1 %vm1130_vm6, %v3896_v42 }
0x1873   : > { %5508 = vmatprep.subr.mxu1 %v6033_v27 }
0x1875   : > { %5485 = vmatmul.mubr.msk.f32.vlgmr.msra.gmra.mrb[78].mxu1 %vm1130_vm6, %v3886_v43 }
0x1876   : > { %5487 = vmatprep.mubr.msk.f32.mxu1 %vm6032_vm2, %v6033_v27  ;;  %5509 = vmatpush3.msra.mxu1 %v4813_v8 }
0x1877   : > { %5673 = vmatprep.subr.bf16.mxu1 %v6031_v26 }
0x1937   : > { %v3779_v22 = vpop.f32.mrb[72].mxu1 }
0x1938   : > { %v5460_v44 = vpop.f32.mrb[73].mxu1  ;;  %5470 = vmatmul.mubr.msk.f32.vlgmr.msra.gmra.mrb[72].mxu0 %vm1130_vm6, %v3779_v22 }
0x1939   : > { %5472 = vmatprep.mubr.msk.f32.mxu0 %vm6032_vm2, %v6033_v27 }
0x193b   : > { %v3784_v46 = vpop.f32.mrb[74].mxu1 }
0x193c   : > { %v5463_v47 = vpop.f32.mrb[75].mxu1  ;;  %5473 = vmatmul.mubr.msk.f32.gmra.mrb[74].mxu0 %vm1130_vm6, %v3784_v46 }
0x193d   : > { %5475 = vmatprep.mubr.msk.f32.mxu0 %vm6032_vm2, %v6033_v27 }
0x193f   : > { %v3789_v29 = vpop.f32.mrb[76].mxu1 }
0x1940   : > { %v5466_v49 = vpop.f32.mrb[77].mxu1  ;;  %5476 = vmatmul.mubr.msk.f32.gmra.mrb[76].mxu0 %vm1130_vm6, %v3789_v29 }
0x1941   : > { %5499 = vmatprep.mubr.msk.f32.mxu0 %vm6032_vm2, %v6033_v27 }
0x1948   : > { %v3975_v51 = vpop.f32.mrb[78].mxu1 }
0x1949   : > { %v5486_v52 = vpop.f32.mrb[79].mxu1  ;;  %v3989_v53 = vsel %vm1226_vm8, %v3975_v51, -inf }
0x194a   : > { %3990 = vmax.xlane.f32.xlu0 %v3989_v53 }
0x1960   : > { %5821 = vrot.lane.b32.xlu0 %v6741_v21, %s7277_s6 }
0x1964   : > { %3887 = vrot.lane.b32.xlu0 %v6751_v32, %s7276_s28 }
0x19d7   : > { %v3991_v54 = vpop.xlane.xlu0 %3990 }
0x19d8   : > { %v3998_v56 = vsub.f32 %v3975_v51, %v3991_v54 }
0x19da   : > { %v4001_v55 = vmul.f32 1.442695, %v3998_v56  ;;  %v4872_v56 = vld [vmem:[%s7200_s15 + $0x20] sm:$0xff] }
0x19db   : > { %v5822_v57 = vpop.permute.xlu0 %5821 }
0x19dc   : > { %5939 = vpow2.f32 %v4001_v55  ;;  %v5824_v58 = vunpack.i.h.bf16 %v5822_v57  ;;  %v5823_v60 = vunpack.i.l.bf16 %v5822_v57  ;;  %v4873_v55 = vld [vmem:[%s7200_s15 + $0x28] sm:$0xff] }
0x19dd   : > { %v5668_v57 = vpack.c.bf16 %v4873_v55, %v4872_v56 }
0x19de   : > { %v5665_v61 = vpack.c.bf16 %v5824_v58, %v5823_v60  ;;  %v4874_v58 = vld [vmem:[%s7200_s15 + $0x30] sm:$0xff]  ;;  %v4875_v60 = vld [vmem:[%s7200_s15 + $0x38] sm:$0xff] }
0x19df   : > { %v3888_v59 = vpop.permute.xlu0 %3887 }
0x19e0   : > { %5488 = vmatmul.mubr.msk.f32.gmra.mrb[80].mxu1 %vm1130_vm6, %v3888_v59  ;;  %5666 = vmatpush3.bf16.msra.mxu0 %v5665_v61  ;;  %v5671_v61 = vpack.c.bf16 %v4875_v60, %v4874_v58 }
0x19e1   : > { %5497 = vmatprep.subr.mxu0 %v6033_v27  ;;  %5490 = vmatprep.mubr.msk.f32.mxu1 %vm6032_vm2, %v6033_v27 }
0x19e6   : > { %v5940_v21 = vpop.eup %5939 }
0x19e7   : > { %v4007_v32 = vsel %vm1226_vm8, %v5940_v21, 0.0 }
0x19e8   : > { %4008 = vadd.xlane.f32.xlu1 %v4007_v32 }
0x19f9   : > { %4026 = vrot.lane.b32.xlu1 %v6743_v25, %s7277_s6  ;;  %s5971_s6 = sshll.u32 %s6045_s7, 4  ;;  %s5972_s6 = int_to_ptr.vmem [resolvable:$false] %s5971_s6 }
0x19fa   : > { %s5973_s8 = scalar_lea.vmem %s5972_s6, 32  ;;  %p5974_p0 = scmp.lt.s32.totalorder %s7145_s0, %s5972_s6 }
0x19fb   : > { %p5975_p1 = scmp.lt.s32.totalorder %s5973_s8, %s5967_s9 }
0x19fd   : > { %3889 = vrot.lane.b32.xlu1 %v6762_v34, %s7276_s28  ;;  %s4651_s28 = scalar_lea.sflag [#allocation3], %s755_s27  ;;  %p5976_p2 = por %p5975_p1, %p5974_p0 }
0x19ff   : > { %p5977_p3 = pnand %p5976_p2, %p5970_p13 }
0x1a0b   : > { %v3868_v62 = vpop.f32.mrb[72].mxu0 }
0x1a0c   : > { %v3882_v63 = vadd.f32 %v3868_v62, %v6891_v45  ;;  %v5471_v0 = vpop.f32.mrb[73].mxu0 }
0x1a0f   : > { %v3873_v1 = vpop.f32.mrb[74].mxu0 }
0x1a10   : > { %v6962_v2 = vadd.f32 %v3873_v1, %v6893_v48  ;;  %v5474_v4 = vpop.f32.mrb[75].mxu0  ;;  %v7023_v1 = vld [vmem:[%s7199_s14 + $0x1] ss:$0 sm:$0xff] }
0x1a13   : > { %v3878_v3 = vpop.f32.mrb[76].mxu0 }
0x1a14   : > { %v6965_v9 = vadd.f32 %v3878_v3, %v6895_v50  ;;  %v5477_v5 = vpop.f32.mrb[77].mxu0 }
0x1a75   : > { %v4009_v23 = vpop.xlane.xlu1 %4008 }
0x1a76   : > { %5941 = vrcp.f32 %v4009_v23 }
0x1a79   : > { %v4027_v25 = vpop.permute.xlu1 %4026 }
0x1a7a   : > { %5498 = vmatpush3.msk.msra.mxu0 %vm1278_vm10, %v4027_v25 }
0x1a7b   : > { %5667 = vmatprep.subr.bf16.mxu0 %v6031_v26 }
0x1a7d   : > { %v3890_v34 = vpop.permute.xlu1 %3889 }
0x1a7e   : > { %5491 = vmatmul.mubr.msk.f32.gmra.mrb[82].mxu1 %vm1130_vm6, %v3890_v34 }
0x1a7f   : > { %5510 = vmatprep.mubr.msk.f32.mxu1 %vm6032_vm2, %v6033_v27 }
0x1a80   : > { %v5942_v45 = vpop.eup %5941 }
0x1a81   : > { %v4019_v48 = vmul.f32 %v5942_v45, %v5940_v21  ;;  %v4881_v45 = vld [vmem:[%s7202_s17 + $0x40] sm:$0xff] }
0x1a83   : > { %5500 = vmatmul.mubr.msk.f32.vlgmr.msra.gmra.mrb[78].mxu0 %vm1226_vm8, %v4019_v48  ;;  %v4882_v48 = vld [vmem:[%s7202_s17 + $0x48] sm:$0xff] }
0x1a84   : > { %5502 = vmatprep.mubr.msk.f32.mxu0 %vm6032_vm2, %v6033_v27  ;;  %5669 = vmatpush3.bf16.msra.mxu0 %v5668_v57 }
0x1a85   : > { %5670 = vmatprep.subr.bf16.mxu0 %v6031_v26 }
0x1a88   : > { %5672 = vmatpush3.bf16.msra.mxu0 %v5671_v61 }
0x1a89   : > { %5685 = vmatprep.subr.bf16.mxu0 %v6031_v26 }
0x1ab3   : > { %v3980_v50 = vpop.f32.mrb[80].mxu1 }
0x1ab4   : > { %v5489_v10 = vpop.f32.mrb[81].mxu1  ;;  %v3992_v7 = vsel %vm1226_vm8, %v3980_v50, -inf }
0x1ab5   : > { %3993 = vmax.xlane.f32.xlu0 %v3992_v7  ;;  %v4883_v10 = vld [vmem:[%s7202_s17 + $0x50] sm:$0xff]  ;;  %v4884_v7 = vld [vmem:[%s7202_s17 + $0x58] sm:$0xff] }
0x1ab6   : > { %v5677_v8 = vpack.c.bf16 %v4884_v7, %v4883_v10 }
0x1b42   : > { %v3994_v17 = vpop.xlane.xlu0 %3993 }
0x1b43   : > { %v3999_v19 = vsub.f32 %v3980_v50, %v3994_v17  ;;  %v5674_v50 = vpack.c.bf16 %v4882_v48, %v4881_v45 }
0x1b45   : > { %v4003_v24 = vmul.f32 1.442695, %v3999_v19  ;;  %v7069_v19 = vld [vmem:[%s7201_s16 + $0x1] ss:$0 sm:$0xff] }
0x1b47   : > { %5943 = vpow2.f32 %v4003_v24 }
0x1b51   : > { %v3985_v12 = vpop.f32.mrb[82].mxu1  ;;  %v5944_v41 = vpop.eup %5943 }
0x1b52   : > { %v5492_v13 = vpop.f32.mrb[83].mxu1  ;;  %v3995_v15 = vsel %vm1233_vm9, %v3985_v12, -inf  ;;  %v4010_v42 = vsel %vm1226_vm8, %v5944_v41, 0.0 }
0x1b53   : > { %3996 = vmax.xlane.f32.xlu1 %v3995_v15  ;;  %v4886_v13 = vld [vmem:[%s7202_s17 + $0x68] sm:$0xff] }
0x1b56   : > { %v4107_v31 = vpop.f32.mrb[78].mxu0 }
0x1b57   : > { %v5501_v16 = vpop.f32.mrb[79].mxu0  ;;  %5511 = vmatmul.mubr.msk.f32.vlgmr.msra.gmra.mrb[84].mxu1 %vm1130_vm6, %v4107_v31  ;;  %v4887_v31 = vld [vmem:[%s7202_s17 + $0x70] sm:$0xff] }
0x1b58   : > { %5513 = vmatprep.mubr.msk.f32.mxu1 %vm6032_vm2, %v6033_v27  ;;  %5675 = vmatpush3.bf16.msra.mxu1 %v5674_v50  ;;  %v4888_v16 = vld [vmem:[%s7202_s17 + $0x78] sm:$0xff] }
0x1b59   : > { %5676 = vmatprep.subr.bf16.mxu1 %v6031_v26  ;;  %v5683_v17 = vpack.c.bf16 %v4888_v16, %v4887_v31 }
0x1b5c   : > { %5678 = vmatpush3.bf16.msra.mxu1 %v5677_v8 }
0x1b5d   : > { %5679 = vmatprep.subr.bf16.mxu1 %v6031_v26 }
0x1be0   : > { %v3997_v20 = vpop.xlane.xlu1 %3996 }
0x1be1   : > { %v4000_v30 = vsub.f32 %v3985_v12, %v3997_v20  ;;  %v4885_v12 = vld [vmem:[%s7202_s17 + $0x60] sm:$0xff] }
0x1be2   : > { %v5680_v15 = vpack.c.bf16 %v4886_v13, %v4885_v12 }
0x1be3   : > { %v4005_v35 = vmul.f32 1.442695, %v4000_v30 }
0x1be4   : > { %5681 = vmatpush3.bf16.msra.mxu1 %v5680_v15 }
0x1be5   : > { %5945 = vpow2.f32 %v4005_v35  ;;  %5682 = vmatprep.subr.bf16.mxu1 %v6031_v26 }
0x1be8   : > { %5684 = vmatpush3.bf16.msra.mxu1 %v5683_v17 }
0x1bef   : > { %v5946_v43 = vpop.eup %5945 }
0x1bf0   : > { %v4013_v14 = vsel %vm1233_vm9, %v5946_v43, 0.0 }
0x1c2a   : > { %v4196_v36 = vpop.f32.mrb[84].mxu1 }
0x1c2b   : > { %v4210_v18 = vadd.f32 %v4196_v36, %v3882_v63  ;;  %v5512_v33 = vpop.f32.mrb[85].mxu1  ;;  %v7018_v63 = vld [vmem:[%s7198_s13 + $0x1] ss:$0 sm:$0xff] }
0x1c2d   : > { %v4221_v38 = vadd.f32 %v6987_v37, %v4210_v18 }
0x1c2f   : > { %v4224_v39 = vadd.f32 %v4221_v38, %v6720_v6 }
0x1c31   : > { %v4231_v40 = vsel %vm931_vm3, %v4224_v39, 0.0 }
0x1c32   : > { %4232 = vadd.xlane.f32.xlu0 %v4231_v40 }
0x1c36   : > { %4011 = vadd.xlane.f32.xlu0 %v4010_v42 }
0x1c3a   : > { %4014 = vadd.xlane.f32.xlu0 %v4013_v14 }
0x1cbf   : > { %v4233_v22 = vpop.xlane.xlu0 %4232 }
0x1cc0   : > { %v4240_v44 = vmul.f32 0.03125, %v4233_v22 }
0x1cc2   : > { %v4243_v46 = vsub.f32 %v4224_v39, %v4240_v44 }
0x1cc3   : > { %v4012_v47 = vpop.xlane.xlu0 %4011 }
0x1cc4   : > { %5947 = vrcp.f32 %v4012_v47  ;;  %v4246_v29 = vmul.f32 %v4243_v46, %v4243_v46 }
0x1cc6   : > { %v4249_v49 = vsel %vm931_vm3, %v4246_v29, 0.0 }
0x1cc7   : > { %4250 = vadd.xlane.f32.xlu1 %v4249_v49  ;;  %v4015_v6 = vpop.xlane.xlu0 %4014 }
0x1cc8   : > { %5949 = vrcp.f32 %v4015_v6 }
0x1cce   : > { %v5948_v51 = vpop.eup %5947 }
0x1ccf   : > { %v4020_v52 = vmul.f32 %v5948_v51, %v5944_v41 }
0x1cd1   : > { %5503 = vmatmul.mubr.msk.f32.gmra.mrb[80].mxu0 %vm1226_vm8, %v4020_v52 }
0x1cd2   : > { %v5950_v53 = vpop.eup %5949  ;;  %5505 = vmatprep.mubr.msk.f32.mxu0 %vm6032_vm2, %v6033_v27 }
0x1cd3   : > { %v4021_v54 = vmul.f32 %v5950_v53, %v5946_v43 }
0x1cd5   : > { %5506 = vmatmul.mubr.msk.f32.gmra.mrb[82].mxu0 %vm1226_vm8, %v4021_v54 }
0x1cd6   : > { %5527 = vmatprep.mubr.msk.f32.mxu0 %vm6032_vm2, %v6033_v27 }
0x1d54   : > { %v4251_v59 = vpop.xlane.xlu1 %4250 }
0x1d55   : > { %v4258_v21 = vmul.f32 0.03125, %v4251_v59 }
0x1d57   : > { %v4261_v32 = vadd.f32 1e-05, %v4258_v21 }
0x1d59   : > { %5951 = vrsqrt.f32 %v4261_v32 }
0x1d63   : > { %v5952_v62 = vpop.eup %5951 }
0x1d64   : > { %v4267_v0 = vmul.f32 %v5952_v62, %v4243_v46 }
0x1d66   : > { %v4276_v4 = vmul.f32 %v7018_v63, %v4267_v0 }
0x1d68   : > { %v7027_v3 = vadd.f32 %v7023_v1, %v4276_v4 }
0x1d6a   : > { %5528 = vmatmul.mubr.msk.f32.vlgmr.msra.gmra.mrb[84].mxu0 %vm931_vm3, %v7027_v3 }
0x1d6b   : > { %5530 = vmatprep.mubr.msk.f32.mxu0 %vm6032_vm2, %v6033_v27 }
0x1da4   : > { %v4112_v5 = vpop.f32.mrb[80].mxu0 }
0x1da5   : > { %v5504_v23 = vpop.f32.mrb[81].mxu0  ;;  %5514 = vmatmul.mubr.msk.f32.gmra.mrb[86].mxu1 %vm1130_vm6, %v4112_v5 }
0x1da6   : > { %5516 = vmatprep.mubr.msk.f32.mxu1 %vm6032_vm2, %v6033_v27 }
0x1da8   : > { %v4117_v25 = vpop.f32.mrb[82].mxu0 }
0x1da9   : > { %v5507_v34 = vpop.f32.mrb[83].mxu0  ;;  %5517 = vmatmul.mubr.msk.f32.gmra.mrb[88].mxu1 %vm1130_vm6, %v4117_v25 }
0x1daa   : > { %5552 = vmatprep.mubr.msk.f32.mxu1 %vm6032_vm2, %v6033_v27 }
0x1e3d   : > { %v4376_v20 = vpop.f32.mrb[84].mxu0 }
0x1e3e   : > { %v4377_v24 = vadd.f32 %v7069_v19, %v4376_v20  ;;  %v5529_v30 = vpop.f32.mrb[85].mxu0 }
0x1e40   : > { %v4393_v35 = vmul.f32 0.044715, %v4377_v24  ;;  %v4390_v40 = vmul.f32 0.5, %v4377_v24 }
0x1e42   : > { %v4396_v36 = vmul.f32 %v4393_v35, %v4377_v24 }
0x1e44   : > { %v4399_v18 = vmul.f32 %v4396_v36, %v4377_v24  ;;  %v4896_v36 = vld [vmem:[%s7204_s19 + $0x1] ss:$0 sm:$0xff] }
0x1e46   : > { %v4402_v33 = vadd.f32 %v4399_v18, %v4377_v24 }
0x1e48   : > { %v4405_v38 = vmul.f32 0.7978846, %v4402_v33 }
0x1e4a   : > { %5953 = vtanh.f32 %v4405_v38 }
0x1e54   : > { %v5954_v39 = vpop.eup %5953 }
0x1e55   : > { %v4411_v41 = vadd.f32 1.0, %v5954_v39 }
0x1e57   : > { %v4414_v42 = vmul.f32 %v4411_v41, %v4390_v40 }
0x1e59   : > { %5553 = vmatmul.mubr.msk.f32.vlgmr.msra.gmra.mrb[90].mxu1 %vm2645_vm11, %v4414_v42 }
0x1e5a   : > { %5555 = vmatprep.mubr.msk.f32.mxu1 %vm6032_vm2, %v6033_v27 }
0x1e78   : > { %v4201_v43 = vpop.f32.mrb[86].mxu1 }
0x1e79   : > { %v4211_v14 = vadd.f32 %v4201_v43, %v6962_v2  ;;  %v5515_v22 = vpop.f32.mrb[87].mxu1 }
0x1e7b   : > { %v4222_v44 = vadd.f32 %v6987_v37, %v4211_v14 }
0x1e7c   : > { %v4206_v46 = vpop.f32.mrb[88].mxu1 }
0x1e7d   : > { %v4212_v47 = vadd.f32 %v4206_v46, %v6965_v9  ;;  %v5518_v29 = vpop.f32.mrb[89].mxu1  ;;  %v4225_v49 = vadd.f32 %v4222_v44, %v6726_v11  ;;  %v4890_v11 = vld [vmem:[%s7203_s18 + $0x1] ss:$0 sm:$0xff] }
0x1e7f   : > { %v4223_v6 = vadd.f32 %v6987_v37, %v4212_v47  ;;  %v4234_v51 = vsel %vm931_vm3, %v4225_v49, 0.0 }
0x1e80   : > { %4235 = vadd.xlane.f32.xlu0 %v4234_v51 }
0x1e81   : > { %v4226_v52 = vadd.f32 %v4223_v6, %v6732_v28 }
0x1e83   : > { %v4237_v53 = vsel %vm938_vm4, %v4226_v52, 0.0 }
0x1e84   : > { %4238 = vadd.xlane.f32.xlu1 %v4237_v53 }
0x1f0d   : > { %v4236_v2 = vpop.xlane.xlu0 %4235 }
0x1f0e   : > { %v4241_v54 = vmul.f32 0.03125, %v4236_v2 }
0x1f10   : > { %v4244_v56 = vsub.f32 %v4225_v49, %v4241_v54 }
0x1f11   : > { %v4239_v9 = vpop.xlane.xlu1 %4238 }
0x1f12   : > { %v4247_v55 = vmul.f32 %v4244_v56, %v4244_v56  ;;  %v4242_v58 = vmul.f32 0.03125, %v4239_v9 }
0x1f14   : > { %v4252_v57 = vsel %vm931_vm3, %v4247_v55, 0.0  ;;  %v4245_v60 = vsub.f32 %v4226_v52, %v4242_v58 }
0x1f15   : > { %4253 = vadd.xlane.f32.xlu1 %v4252_v57 }
0x1f16   : > { %v4248_v32 = vmul.f32 %v4245_v60, %v4245_v60 }
0x1f18   : > { %v4255_v62 = vsel %vm938_vm4, %v4248_v32, 0.0  ;;  %v4572_v32 = vld [vmem:[%s7208_s23 + $0x10] sm:$0xff] }
0x1f2c   : > { %v4509_v37 = vpop.f32.mrb[90].mxu1 }
0x1f2d   : > { %v4510_v61 = vadd.f32 %v4890_v11, %v4509_v37  ;;  %v5554_v28 = vpop.f32.mrb[91].mxu1 }
0x1f2f   : > { %v4521_v59 = vadd.f32 %v4510_v61, %v7027_v3 }
0x1f31   : > { %v4526_v21 = vsel %vm931_vm3, %v4521_v59, 0.0 }
0x1f32   : > { %4527 = vadd.xlane.f32.xlu0 %v4526_v21 }
0x1f36   : > { %4256 = vadd.xlane.f32.xlu0 %v4255_v62  ;;  %v4573_v62 = vld [vmem:[%s7208_s23 + $0x18] sm:$0xff] }
0x1fa2   : > { %v4254_v0 = vpop.xlane.xlu1 %4253 }
0x1fa3   : > { %v4259_v4 = vmul.f32 0.03125, %v4254_v0  ;;  %v5689_v0 = vpack.c.bf16 %v4573_v62, %v4572_v32 }
0x1fa5   : > { %v4262_v5 = vadd.f32 1e-05, %v4259_v4 }
0x1fa7   : > { %5955 = vrsqrt.f32 %v4262_v5 }
0x1fb1   : > { %v5956_v23 = vpop.eup %5955 }
0x1fb2   : > { %v4268_v25 = vmul.f32 %v5956_v23, %v4244_v56 }
0x1fb4   : > { %v4277_v34 = vmul.f32 %v7018_v63, %v4268_v25 }
0x1fb6   : > { %v4286_v45 = vadd.f32 %v7023_v1, %v4277_v34 }
0x1fb8   : > { %5531 = vmatmul.mubr.msk.f32.gmra.mrb[86].mxu0 %vm931_vm3, %v4286_v45 }
0x1fb9   : > { %5533 = vmatprep.mubr.msk.f32.mxu0 %vm6032_vm2, %v6033_v27 }
0x1fbf   : > { %v4528_v3 = vpop.xlane.xlu0 %4527 }
0x1fc0   : > { %v4529_v48 = vmul.f32 0.03125, %v4528_v3  ;;  %v4553_v3 = vld [vmem:[%s7206_s21] sm:$0x1] }
0x1fc2   : > { %v4530_v50 = vsub.f32 %v4521_v59, %v4529_v48  ;;  %v4571_v59 = vld [vmem:[%s7208_s23 + $0x8] sm:$0xff] }
0x1fc3   : > { %v4257_v10 = vpop.xlane.xlu0 %4256 }
0x1fc4   : > { %v4260_v7 = vmul.f32 0.03125, %v4257_v10  ;;  %v4531_v8 = vmul.f32 %v4530_v50, %v4530_v50  ;;  %v4554_v10 = vld [vmem:[%s7207_s22] sm:$0x1] }
0x1fc6   : > { %v4263_v12 = vadd.f32 1e-05, %v4260_v7  ;;  %v4532_v13 = vsel %vm931_vm3, %v4531_v8, 0.0 }
0x1fc7   : > { %4533 = vadd.xlane.f32.xlu1 %v4532_v13 }
0x1fc8   : > { %5957 = vrsqrt.f32 %v4263_v12  ;;  %v4574_v12 = vld [vmem:[%s7209_s24] sm:$0x1] }
0x1fd2   : > { %v5958_v15 = vpop.eup %5957 }
0x1fd3   : > { %v4269_v31 = vmul.f32 %v5958_v15, %v4245_v60 }
0x1fd5   : > { %v4278_v16 = vmul.f32 %v7018_v63, %v4269_v31  ;;  %v4897_v63 = vld [vmem:[%s7205_s20 + $0x1] ss:$0 sm:$0xff] }
0x1fd7   : > { %v4287_v17 = vadd.f32 %v7023_v1, %v4278_v16 }
0x1fd9   : > { %5534 = vmatmul.mubr.msk.f32.gmra.mrb[88].mxu0 %vm931_vm3, %v4287_v17 }
0x1fda   : > { %5569 = vmatprep.mubr.msk.f32.mxu0 %vm6032_vm2, %v6033_v27 }
0x2054   : > { %v4534_v20 = vpop.xlane.xlu1 %4533 }
0x2055   : > { %v4535_v24 = vmul.f32 0.03125, %v4534_v20 }
0x2057   : > { %v4536_v30 = vadd.f32 1e-05, %v4535_v24 }
0x2059   : > { %5959 = vrsqrt.f32 %v4536_v30 }
0x2063   : > { %v5960_v35 = vpop.eup %5959 }
0x2064   : > { %v4538_v18 = vmul.f32 %v5960_v35, %v4530_v50 }
0x2066   : > { %v4545_v1 = vmul.f32 %v4896_v36, %v4538_v18 }
0x2068   : > { %v4552_v33 = vadd.f32 %v4897_v63, %v4545_v1 }
0x206a   : > { %v4555_v38 = vsel %vm938_vm4, %v4552_v33, 0.0 }
0x206b   : > { %4556 = vadd.xlane.f32.xlu0 %v4555_v38 }
0x208b   : > { %v4381_v39 = vpop.f32.mrb[86].mxu0 }
0x208c   : > { %v4382_v40 = vadd.f32 %v7069_v19, %v4381_v39  ;;  %v5532_v41 = vpop.f32.mrb[87].mxu0 }
0x208e   : > { %v4394_v42 = vmul.f32 0.044715, %v4382_v40  ;;  %v4391_v47 = vmul.f32 0.5, %v4382_v40 }
0x2090   : > { %v4397_v43 = vmul.f32 %v4394_v42, %v4382_v40 }
0x2092   : > { %v4400_v14 = vmul.f32 %v4397_v43, %v4382_v40 }
0x2094   : > { %v4403_v22 = vadd.f32 %v4400_v14, %v4382_v40 }
0x2096   : > { %v4406_v44 = vmul.f32 0.7978846, %v4403_v22 }
0x2098   : > { %5961 = vtanh.f32 %v4406_v44 }
0x20a2   : > { %v5962_v46 = vpop.eup %5961 }
0x20a3   : > { %v4412_v29 = vadd.f32 1.0, %v5962_v46 }
0x20a5   : > { %v4415_v49 = vmul.f32 %v4412_v29, %v4391_v47 }
0x20a7   : > { %5556 = vmatmul.mubr.msk.f32.gmra.mrb[92].mxu1 %vm2645_vm11, %v4415_v49 }
0x20a8   : > { %5558 = vmatprep.mubr.msk.f32.mxu1 %vm6032_vm2, %v6033_v27 }
0x20ac   : > { %v4386_v6 = vpop.f32.mrb[88].mxu0 }
0x20ad   : > { %v4387_v51 = vadd.f32 %v7069_v19, %v4386_v6  ;;  %v5535_v52 = vpop.f32.mrb[89].mxu0  ;;  %v4570_v19 = vld [vmem:[%s7208_s23] sm:$0xff] }
0x20ae   : > { %v5686_v21 = vpack.c.bf16 %v4571_v59, %v4570_v19 }
0x20af   : > { %v4395_v53 = vmul.f32 0.044715, %v4387_v51  ;;  %v4392_v9 = vmul.f32 0.5, %v4387_v51 }
0x20b0   : > { %5687 = vmatpush3.bf16.msra.mxu0 %v5686_v21 }
0x20b1   : > { %v4398_v2 = vmul.f32 %v4395_v53, %v4387_v51  ;;  %5688 = vmatprep.subr.bf16.mxu0 %v6031_v26 }
0x20b3   : > { %v4401_v54 = vmul.f32 %v4398_v2, %v4387_v51 }
0x20b4   : > { %5690 = vmatpush3.bf16.msra.mxu0 %v5689_v0 }
0x20b5   : > { %v4404_v56 = vadd.f32 %v4401_v54, %v4387_v51 }
0x20b7   : > { %v4407_v55 = vmul.f32 0.7978846, %v4404_v56 }
0x20b9   : > { %5963 = vtanh.f32 %v4407_v55 }
0x20c3   : > { %v5964_v57 = vpop.eup %5963 }
0x20c4   : > { %v4413_v58 = vadd.f32 1.0, %v5964_v57 }
0x20c6   : > { %v4416_v11 = vmul.f32 %v4413_v58, %v4392_v9 }
0x20c8   : > { %5559 = vmatmul.mubr.msk.f32.gmra.mrb[94].mxu1 %vm2645_vm11, %v4416_v11 }
0x20f8   : > { %v4557_v37 = vpop.xlane.xlu0 %4556 }
0x20f9   : > { %v4558_v60 = vmul.f32 0.03125, %v4557_v37 }
0x20fb   : > { %v4559_v61 = vsub.f32 %v4552_v33, %v4558_v60 }
0x20fd   : > { %v4560_v27 = vmul.f32 %v4559_v61, %v4559_v61 }
0x20ff   : > { %v4561_v28 = vsel %vm938_vm4, %v4560_v27, 0.0 }
0x2100   : > { %4562 = vadd.xlane.f32.xlu1 %v4561_v28 }
0x217a   : > { %v4514_v4 = vpop.f32.mrb[92].mxu1 }
0x217b   : > { %v5557_v5 = vpop.f32.mrb[93].mxu1 }
0x218d   : > { %v4563_v23 = vpop.xlane.xlu1 %4562 }
0x218e   : > { %v4564_v25 = vmul.f32 0.03125, %v4563_v23 }
0x2190   : > { %v4565_v34 = vadd.f32 1e-05, %v4564_v25 }
0x2192   : > { %5965 = vrsqrt.f32 %v4565_v34 }
0x219b   : > { %v4518_v45 = vpop.f32.mrb[94].mxu1 }
0x219c   : > { %v5966_v26 = vpop.eup %5965  ;;  %v5560_v48 = vpop.f32.mrb[95].mxu1 }
0x219d   : > { %v4567_v50 = vmul.f32 %v5966_v26, %v4559_v61 }
0x219f   : > { %v4568_v7 = vmul.f32 %v4567_v50, %v4553_v3 }
0x21a1   : > { %v4569_v8 = vadd.f32 %v4568_v7, %v4554_v10 }
0x21a3   : > { %5570 = vmatmul.mubr.msk.f32.vlgmr.msra.gmra.mrb[90].mxu0 %vm931_vm3, %v4569_v8 }
0x2276   : > { %v4644_v13 = vpop.f32.mrb[90].mxu0 }
0x2277   : > { %v4645_v15 = vadd.f32 %v4644_v13, %v4574_v12  ;;  %v5571_v31 = vpop.f32.mrb[91].mxu0 }
0x2279   : > { %4649 = vst.msk [vmem:[%s756_s1] sm:$0x1] %vm4648_vm12, %v4645_v15 }
0x227a   : > { %5980 = shalt.err (!%p5977_p3)
}
0x227b   : > { %s5981_s27 = scalar_lea.hbm %s7143_s29, 16  ;;  %s5985_s26 = scalar_lea.hbm %s7278_s3, 32 }
0x227c   : > { %p5982_p4 = scmp.ne.s32.totalorder %s7143_s29, %s5981_s27  ;;  %p5986_p9 = scmp.lt.u32.totalorder %s7143_s29, %s7278_s3 }
0x227d   : > { %p5987_p10 = scmp.lt.u32.totalorder %s5985_s26, %s5981_s27  ;;  %p5989_p12 = scmp.lt.u32.totalorder %s5981_s27, %s7143_s29 }
0x227e   : > { %p5983_p7 = pnand %p5982_p4, %p6214_p5 }
0x227f   : > { %p5988_p11 = por %p5987_p10, %p5986_p9 }
0x2280   : > { %p5984_p8 = pneg %p5983_p7 }
0x2281   : > { %p5990_p13 = por %p5989_p12, %p5988_p11 }
0x2283   : > { %p5991_p0 = pnand %p5990_p13, %p5984_p8 }
0x2285   : > { %5994 = shalt.err (!%p5991_p0)
}
0x2286   : > { %5692 = dma.vmem_to_hbm [thread:$0]  (%p6214_p5), %s7145_s0, 16, %s7143_s29, %s4651_s28  }
0x2287 PF: > { %s7279_s8 = sld [smem:[#allocation7_spill]]  ;;  %s7280_s9 = sld [smem:[#allocation5_spill]] }
0x228d   : > { %p5698_p1 = scmp.ge.s32.totalorder %s7279_s8, 2  ;;  %s4675_s30 = sand.u32 1, %s7280_s9  }
0x228e   : > { %s4676_s1 = scalar_lea.sflag [#allocation3], %s4675_s30 }
0x228f   : > { %p5695_p2 = pnand %p5698_p1, %p6218_p6 }
0x2291   : > { %6012 = dma.done.wait (!%p5695_p2), %s4676_s1, 16  }
0x2292   : > { %6014 = vsyncadd (!%p5695_p2), %s4676_s1, 4294967280  ;;  %s7282_s30 = sld [smem:[#allocation8_spill]]  ;;  %s7283_s27 = sld [smem:[#allocation6_spill]] }
0x2293   : > { %s7284_s6 = sld [smem:[#allocation9_spill]]  ;;  %s7285_s29 = smov %s6021_s2 }
0x2298   : > { %p35_p3 = scmp.ge.s32.totalorder %s7282_s30, 4   ;;  %s7286_s2 = smov %s7283_s27 }
0x229a   :  { %37 = sbr.rel (!%p35_p3) target bundleno = 15 (0xf), region = 167 }
0x22a1   :  { %4680 = vsyncpa [#allocation3], 1 }
0x22a2   :  { %4682 = vsyncpa [#allocation3 + $0x1], 1 }

</bundles_post_ra>
